<compile_context>
chip_gen: v7x
topology: tpu7x:2x2x1
jax: 0.10.0
libtpu: 0.0.40
codegen_flags: <defaults>
</compile_context>

<pallas_src>
import functools

import jax
import jax.numpy as jnp
from jax import lax
from jax.experimental import pallas as pl
from jax.experimental.pallas import tpu as pltpu


# ---------------------------------------------------------------------------
# Fused Basic_Block kernel (implicit-GEMM convs, K-folded taps, all in VMEM)
# ---------------------------------------------------------------------------
def _basic_block_kernel(xs2b_ref, w1_ref, sb1_ref, w2_ref, sb2_ref,
                        out_ref,
                        p1_ref, h1pad_ref, p2_ref, resid_ref, *,
                        n, ho, wo, cin, coutp, stride, has_shortcut):
    m = n * ho * wo

    # ---- stage 1: im2col into p1 scratch (bf16), one [M,9*Cin]@[9*Cin,N1] dot
    for di in range(3):
        for dj in range(3):
            ph, oi = di % stride, di // stride
            pw, oj = dj % stride, dj // stride
            slab = xs2b_ref[ph, pw, :, oi:oi + ho, oj:oj + wo, :]   # bf16, no cast
            t = di * 3 + dj
            p1_ref[:, t * cin:(t + 1) * cin] = slab.reshape(m, cin)
    acc1 = jnp.dot(p1_ref[...], w1_ref[...], preferred_element_type=jnp.float32)
    y1 = acc1 * sb1_ref[0:1, :] + sb1_ref[1:2, :]          # folded BN (f32 epilogue)
    h1 = jnp.maximum(y1[:, :coutp], 0.0)                   # relu(ConvLayer1); pad lanes stay 0

    if has_shortcut:
        resid_ref[...] = y1[:, coutp:]                     # shortcut conv + BN (f32)
    else:
        # identity shortcut (module guarantees stride == 1, cin == cout here)
        ident = xs2b_ref[0, 0, :, 1:1 + ho, 1:1 + wo, :]
        ident = ident.reshape(m, cin).astype(jnp.float32)
        resid_ref[...] = jnp.zeros((m, coutp), jnp.float32)
        resid_ref[:, :cin] = ident

    # ---- stage 2: h1 -> padded bf16 scratch (halo-only zeroing), im2col, one dot
    h1b = h1.astype(jnp.bfloat16).reshape(n, ho, wo, coutp)
    zrow = jnp.zeros((n, 1, wo + 2, coutp), jnp.bfloat16)
    zcol = jnp.zeros((n, ho, 1, coutp), jnp.bfloat16)
    h1pad_ref[:, 0:1, :, :] = zrow
    h1pad_ref[:, ho + 1:ho + 2, :, :] = zrow
    h1pad_ref[:, 1:1 + ho, 0:1, :] = zcol
    h1pad_ref[:, 1:1 + ho, wo + 1:wo + 2, :] = zcol
    h1pad_ref[:, 1:1 + ho, 1:1 + wo, :] = h1b              # lane-dense (coutp) store

    for di in range(3):
        for dj in range(3):
            t = di * 3 + dj
            slab = h1pad_ref[:, di:di + ho, dj:dj + wo, :]          # bf16, lane-dense
            p2_ref[:, t * coutp:(t + 1) * coutp] = slab.reshape(m, coutp)
    acc2 = jnp.dot(p2_ref[...], w2_ref[...], preferred_element_type=jnp.float32)
    y2 = acc2 * sb2_ref[0:1, :] + sb2_ref[1:2, :]          # folded BN
    y2 = jnp.maximum(y2, 0.0)                              # relu(ConvLayer2)
    out_ref[...] = jnp.maximum(y2 + resid_ref[...], 0.0).astype(out_ref.dtype)


def _vmem():
    return pl.BlockSpec(memory_space=pltpu.MemorySpace.VMEM)


# ---------------------------------------------------------------------------
# Wrapper glue (all fused by jit around the single pallas_call)
# ---------------------------------------------------------------------------
def _space_to_batch(x_nhwc, stride):
    """Pad spatially by 1 and split into `stride` phases.

    Returns [s, s, N, Hp/s, Wp/s, C] so every 3x3 tap inside the kernel is a
    unit-stride static slice.  Same byte count as the input (no 9x im2col
    expansion in HBM).  Assumes (H+2), (W+2) divisible by stride."""
    n, h, w, c = x_nhwc.shape
    xp = jnp.pad(x_nhwc, ((0, 0), (1, 1), (1, 1), (0, 0)))
    hp, wp = h + 2, w + 2
    if stride == 1:
        return xp[None, None]
    xs = xp.reshape(n, hp // stride, stride, wp // stride, stride, c)
    return jnp.transpose(xs, (2, 4, 0, 1, 3, 5))


def _taps_k_matrix(w_oihw, cinp, coutp):
    # [Cout, Cin, 3, 3] -> [9*cinp, coutp]; row index = (di*3+dj)*cinp + ci.
    cout, cin, kh, kw = w_oihw.shape
    w = jnp.transpose(w_oihw, (2, 3, 1, 0))                 # [3, 3, cin, cout]
    w = jnp.pad(w, ((0, 0), (0, 0), (0, cinp - cin), (0, coutp - cout)))
    return w.reshape(kh * kw * cinp, coutp)


def _pad_to(v, p):
    return jnp.pad(v, (0, p - v.shape[0]))


def fold_bn(conv_bias, gamma, beta, mean, var, eps=1e-5):
    scale = gamma / jnp.sqrt(var + eps)
    bias = (conv_bias - mean) * scale + beta
    return scale, bias


@functools.partial(jax.jit, static_argnames=("stride", "downsample"))
def basic_block_forward(x_nchw, params, *, stride, downsample):
    x = jnp.transpose(x_nchw, (0, 2, 3, 1)).astype(jnp.bfloat16)   # NCHW -> NHWC, bf16
    n, h, w, cin = x.shape
    ho, wo = h // stride, w // stride
    cout = params["w1"].shape[0]
    coutp = -(-cout // 128) * 128                                  # lane-dense channel pad
    m = n * ho * wo

    xs2b = _space_to_batch(x, stride)                              # bf16 in HBM

    # conv1 and shortcut conv share input windows -> one wider GEMM N
    w1 = _taps_k_matrix(params["w1"], cin, coutp)
    sc1, bi1 = _pad_to(params["scale1"], coutp), _pad_to(params["bias1"], coutp)
    if downsample:
        w1 = jnp.concatenate([w1, _taps_k_matrix(params["w_sc"], cin, coutp)], axis=-1)
        sc1 = jnp.concatenate([sc1, _pad_to(params["scale_sc"], coutp)])
        bi1 = jnp.concatenate([bi1, _pad_to(params["bias_sc"], coutp)])
    sb1 = jnp.stack([sc1, bi1])
    w2 = _taps_k_matrix(params["w2"], coutp, coutp)
    sb2 = jnp.stack([_pad_to(params["scale2"], coutp), _pad_to(params["bias2"], coutp)])

    kernel = functools.partial(
        _basic_block_kernel, n=n, ho=ho, wo=wo, cin=cin,
        coutp=coutp, stride=stride, has_shortcut=bool(downsample))

    out = pl.pallas_call(
        kernel,
        out_shape=jax.ShapeDtypeStruct((m, coutp), jnp.float32),   # lane-dense output
        in_specs=[_vmem()] * 5,
        out_specs=_vmem(),
        scratch_shapes=[
            pltpu.VMEM((m, 9 * cin), jnp.bfloat16),                # stage-1 im2col patches
            pltpu.VMEM((n, ho + 2, wo + 2, coutp), jnp.bfloat16),  # padded h1 (bf16)
            pltpu.VMEM((m, 9 * coutp), jnp.bfloat16),              # stage-2 im2col patches
            pltpu.VMEM((m, coutp), jnp.float32),                   # residual
        ],
    )(xs2b,
      w1.astype(jnp.bfloat16), sb1.astype(jnp.float32),
      w2.astype(jnp.bfloat16), sb2.astype(jnp.float32))

    out_nhwc = out[:, :cout].reshape(n, ho, wo, cout)
    return jnp.transpose(out_nhwc, (0, 3, 1, 2))                   # NHWC -> NCHW


# ---------------------------------------------------------------------------
# Matched-precision JAX reference (bf16 conv operands, f32 accumulate/epilogue)
# ---------------------------------------------------------------------------
def _conv_bn_ref(x_nchw, w_oihw, scale, bias, stride):
    y = lax.conv_general_dilated(
        x_nchw.astype(jnp.bfloat16), w_oihw.astype(jnp.bfloat16),
        (stride, stride), ((1, 1), (1, 1)),
        dimension_numbers=("NCHW", "OIHW", "NCHW"),
        preferred_element_type=jnp.float32)
    return y * scale[None, :, None, None] + bias[None, :, None, None]


def basic_block_ref(x_nchw, params, *, stride, downsample):
    if downsample:
        residual = _conv_bn_ref(x_nchw, params["w_sc"], params["scale_sc"],
                                params["bias_sc"], stride)
    else:
        residual = x_nchw
    h = jax.nn.relu(_conv_bn_ref(x_nchw, params["w1"], params["scale1"],
                                 params["bias1"], stride))
    h = jax.nn.relu(_conv_bn_ref(h, params["w2"], params["scale2"],
                                 params["bias2"], 1))
    return jax.nn.relu(h + residual)


# ---------------------------------------------------------------------------
# Deterministic parameter init (inference-mode BN stats folded)
# ---------------------------------------------------------------------------
def init_params(key, in_channels, proc_channel, downsample):
    def conv_bn_params(k, cin, cout):
        k1, k2, k3, k4, k5, k6 = jax.random.split(k, 6)
        w = jax.random.normal(k1, (cout, cin, 3, 3), jnp.float32) * 0.1
        b = jax.random.normal(k2, (cout,), jnp.float32) * 0.1
        gamma = 1.0 + 0.1 * jax.random.normal(k3, (cout,), jnp.float32)
        beta = 0.1 * jax.random.normal(k4, (cout,), jnp.float32)
        mean = 0.1 * jax.random.normal(k5, (cout,), jnp.float32)
        var = jnp.abs(jax.random.normal(k6, (cout,), jnp.float32)) + 0.5
        scale, bias = fold_bn(b, gamma, beta, mean, var)
        return w, scale, bias

    keys = jax.random.split(key, 3)
    params = {}
    params["w1"], params["scale1"], params["bias1"] = conv_bn_params(
        keys[0], in_channels, proc_channel)
    params["w2"], params["scale2"], params["bias2"] = conv_bn_params(
        keys[1], proc_channel, proc_channel)
    if downsample:
        params["w_sc"], params["scale_sc"], params["bias_sc"] = conv_bn_params(
            keys[2], in_channels, proc_channel)
    return params


# ---------------------------------------------------------------------------
if __name__ == "__main__":
    # Basic_Block(Proc_Channel=8, DownSample=1): in_channels=4, stride=2
    PROC_CHANNEL = 8
    DOWNSAMPLE = 1
    if DOWNSAMPLE == 1 and PROC_CHANNEL != 64:
        IN_CHANNELS, STRIDE = PROC_CHANNEL // 2, 2
    else:
        IN_CHANNELS, STRIDE = PROC_CHANNEL, 1

    key = jax.random.PRNGKey(0)
    kx, kp = jax.random.split(key)
    x = jax.random.normal(kx, (2, IN_CHANNELS, 16, 16), jnp.float32)  # NCHW
    params = init_params(kp, IN_CHANNELS, PROC_CHANNEL, bool(DOWNSAMPLE))

    out = basic_block_forward(x, params, stride=STRIDE, downsample=bool(DOWNSAMPLE))
    out = jax.block_until_ready(out)

    ref = jax.block_until_ready(
        basic_block_ref(x, params, stride=STRIDE, downsample=bool(DOWNSAMPLE)))

    assert out.shape == ref.shape == (2, PROC_CHANNEL, 8, 8), out.shape
    max_err = float(jnp.max(jnp.abs(out - ref)))
    assert jnp.allclose(out, ref, atol=1e-2, rtol=1e-2), max_err
    print("KERNEL_OK")
</pallas_src>

<mosaic_0001>
module attributes {stable_mosaic.version = 11 : i64} {
  func.func @_basic_block_kernel(%arg0: memref<2x2x2x9x9x4xbf16, #tpu.memory_space<vmem>>, %arg1: memref<36x256xbf16, #tpu.memory_space<vmem>>, %arg2: memref<2x256xf32, #tpu.memory_space<vmem>>, %arg3: memref<1152x128xbf16, #tpu.memory_space<vmem>>, %arg4: memref<2x128xf32, #tpu.memory_space<vmem>>, %arg5: memref<128x128xf32, #tpu.memory_space<vmem>>, %arg6: memref<128x36xbf16, #tpu.memory_space<vmem>>, %arg7: memref<2x10x10x128xbf16, #tpu.memory_space<vmem>>, %arg8: memref<128x1152xbf16, #tpu.memory_space<vmem>>, %arg9: memref<128x128xf32, #tpu.memory_space<vmem>>) attributes {dimension_semantics = [], scalar_prefetch = 0 : i64, scratch_operands = 4 : i64, tpu.core_type = #tpu.core_type<tc>} {
    %c0 = arith.constant 0 : index
    %c0_0 = arith.constant 0 : index
    %c0_1 = arith.constant 0 : index
    %c0_2 = arith.constant 0 : index
    %c0_3 = arith.constant 0 : index
    %c0_4 = arith.constant 0 : index
    %0 = vector.load %arg0[%c0, %c0_0, %c0_1, %c0_2, %c0_3, %c0_4] : memref<2x2x2x9x9x4xbf16, #tpu.memory_space<vmem>>, vector<1x1x2x8x8x4xbf16>
    %1 = vector.shape_cast %0 : vector<1x1x2x8x8x4xbf16> to vector<2x8x8x4xbf16>
    %2 = vector.shape_cast %1 : vector<2x8x8x4xbf16> to vector<128x4xbf16>
    %c0_5 = arith.constant 0 : index
    %c0_6 = arith.constant 0 : index
    %3 = vector.load %arg6[%c0_5, %c0_6] : memref<128x36xbf16, #tpu.memory_space<vmem>>, vector<128x4xbf16>
    tpu.vector_store %arg6[%c0_5, %c0_6], %2 {strides = array<i32>} : memref<128x36xbf16, #tpu.memory_space<vmem>>, vector<128x4xbf16>,
    %c0_7 = arith.constant 0 : index
    %c1 = arith.constant 1 : index
    %c0_8 = arith.constant 0 : index
    %c0_9 = arith.constant 0 : index
    %c0_10 = arith.constant 0 : index
    %c0_11 = arith.constant 0 : index
    %4 = vector.load %arg0[%c0_7, %c1, %c0_8, %c0_9, %c0_10, %c0_11] : memref<2x2x2x9x9x4xbf16, #tpu.memory_space<vmem>>, vector<1x1x2x8x8x4xbf16>
    %5 = vector.shape_cast %4 : vector<1x1x2x8x8x4xbf16> to vector<2x8x8x4xbf16>
    %6 = vector.shape_cast %5 : vector<2x8x8x4xbf16> to vector<128x4xbf16>
    %c0_12 = arith.constant 0 : index
    %c4 = arith.constant 4 : index
    %7 = vector.load %arg6[%c0_12, %c4] : memref<128x36xbf16, #tpu.memory_space<vmem>>, vector<128x4xbf16>
    tpu.vector_store %arg6[%c0_12, %c4], %6 {strides = array<i32>} : memref<128x36xbf16, #tpu.memory_space<vmem>>, vector<128x4xbf16>,
    %c0_13 = arith.constant 0 : index
    %c0_14 = arith.constant 0 : index
    %c0_15 = arith.constant 0 : index
    %c0_16 = arith.constant 0 : index
    %c1_17 = arith.constant 1 : index
    %c0_18 = arith.constant 0 : index
    %8 = vector.load %arg0[%c0_13, %c0_14, %c0_15, %c0_16, %c1_17, %c0_18] : memref<2x2x2x9x9x4xbf16, #tpu.memory_space<vmem>>, vector<1x1x2x8x8x4xbf16>
    %9 = vector.shape_cast %8 : vector<1x1x2x8x8x4xbf16> to vector<2x8x8x4xbf16>
    %10 = vector.shape_cast %9 : vector<2x8x8x4xbf16> to vector<128x4xbf16>
    %c0_19 = arith.constant 0 : index
    %c8 = arith.constant 8 : index
    %11 = vector.load %arg6[%c0_19, %c8] : memref<128x36xbf16, #tpu.memory_space<vmem>>, vector<128x4xbf16>
    tpu.vector_store %arg6[%c0_19, %c8], %10 {strides = array<i32>} : memref<128x36xbf16, #tpu.memory_space<vmem>>, vector<128x4xbf16>,
    %c1_20 = arith.constant 1 : index
    %c0_21 = arith.constant 0 : index
    %c0_22 = arith.constant 0 : index
    %c0_23 = arith.constant 0 : index
    %c0_24 = arith.constant 0 : index
    %c0_25 = arith.constant 0 : index
    %12 = vector.load %arg0[%c1_20, %c0_21, %c0_22, %c0_23, %c0_24, %c0_25] : memref<2x2x2x9x9x4xbf16, #tpu.memory_space<vmem>>, vector<1x1x2x8x8x4xbf16>
    %13 = vector.shape_cast %12 : vector<1x1x2x8x8x4xbf16> to vector<2x8x8x4xbf16>
    %14 = vector.shape_cast %13 : vector<2x8x8x4xbf16> to vector<128x4xbf16>
    %c0_26 = arith.constant 0 : index
    %c12 = arith.constant 12 : index
    %15 = vector.load %arg6[%c0_26, %c12] : memref<128x36xbf16, #tpu.memory_space<vmem>>, vector<128x4xbf16>
    tpu.vector_store %arg6[%c0_26, %c12], %14 {strides = array<i32>} : memref<128x36xbf16, #tpu.memory_space<vmem>>, vector<128x4xbf16>,
    %c1_27 = arith.constant 1 : index
    %c1_28 = arith.constant 1 : index
    %c0_29 = arith.constant 0 : index
    %c0_30 = arith.constant 0 : index
    %c0_31 = arith.constant 0 : index
    %c0_32 = arith.constant 0 : index
    %16 = vector.load %arg0[%c1_27, %c1_28, %c0_29, %c0_30, %c0_31, %c0_32] : memref<2x2x2x9x9x4xbf16, #tpu.memory_space<vmem>>, vector<1x1x2x8x8x4xbf16>
    %17 = vector.shape_cast %16 : vector<1x1x2x8x8x4xbf16> to vector<2x8x8x4xbf16>
    %18 = vector.shape_cast %17 : vector<2x8x8x4xbf16> to vector<128x4xbf16>
    %c0_33 = arith.constant 0 : index
    %c16 = arith.constant 16 : index
    %19 = vector.load %arg6[%c0_33, %c16] : memref<128x36xbf16, #tpu.memory_space<vmem>>, vector<128x4xbf16>
    tpu.vector_store %arg6[%c0_33, %c16], %18 {strides = array<i32>} : memref<128x36xbf16, #tpu.memory_space<vmem>>, vector<128x4xbf16>,
    %c1_34 = arith.constant 1 : index
    %c0_35 = arith.constant 0 : index
    %c0_36 = arith.constant 0 : index
    %c0_37 = arith.constant 0 : index
    %c1_38 = arith.constant 1 : index
    %c0_39 = arith.constant 0 : index
    %20 = vector.load %arg0[%c1_34, %c0_35, %c0_36, %c0_37, %c1_38, %c0_39] : memref<2x2x2x9x9x4xbf16, #tpu.memory_space<vmem>>, vector<1x1x2x8x8x4xbf16>
    %21 = vector.shape_cast %20 : vector<1x1x2x8x8x4xbf16> to vector<2x8x8x4xbf16>
    %22 = vector.shape_cast %21 : vector<2x8x8x4xbf16> to vector<128x4xbf16>
    %c0_40 = arith.constant 0 : index
    %c20 = arith.constant 20 : index
    %23 = vector.load %arg6[%c0_40, %c20] : memref<128x36xbf16, #tpu.memory_space<vmem>>, vector<128x4xbf16>
    tpu.vector_store %arg6[%c0_40, %c20], %22 {strides = array<i32>} : memref<128x36xbf16, #tpu.memory_space<vmem>>, vector<128x4xbf16>,
    %c0_41 = arith.constant 0 : index
    %c0_42 = arith.constant 0 : index
    %c0_43 = arith.constant 0 : index
    %c1_44 = arith.constant 1 : index
    %c0_45 = arith.constant 0 : index
    %c0_46 = arith.constant 0 : index
    %24 = vector.load %arg0[%c0_41, %c0_42, %c0_43, %c1_44, %c0_45, %c0_46] : memref<2x2x2x9x9x4xbf16, #tpu.memory_space<vmem>>, vector<1x1x2x8x8x4xbf16>
    %25 = vector.shape_cast %24 : vector<1x1x2x8x8x4xbf16> to vector<2x8x8x4xbf16>
    %26 = vector.shape_cast %25 : vector<2x8x8x4xbf16> to vector<128x4xbf16>
    %c0_47 = arith.constant 0 : index
    %c24 = arith.constant 24 : index
    %27 = vector.load %arg6[%c0_47, %c24] : memref<128x36xbf16, #tpu.memory_space<vmem>>, vector<128x4xbf16>
    tpu.vector_store %arg6[%c0_47, %c24], %26 {strides = array<i32>} : memref<128x36xbf16, #tpu.memory_space<vmem>>, vector<128x4xbf16>,
    %c0_48 = arith.constant 0 : index
    %c1_49 = arith.constant 1 : index
    %c0_50 = arith.constant 0 : index
    %c1_51 = arith.constant 1 : index
    %c0_52 = arith.constant 0 : index
    %c0_53 = arith.constant 0 : index
    %28 = vector.load %arg0[%c0_48, %c1_49, %c0_50, %c1_51, %c0_52, %c0_53] : memref<2x2x2x9x9x4xbf16, #tpu.memory_space<vmem>>, vector<1x1x2x8x8x4xbf16>
    %29 = vector.shape_cast %28 : vector<1x1x2x8x8x4xbf16> to vector<2x8x8x4xbf16>
    %30 = vector.shape_cast %29 : vector<2x8x8x4xbf16> to vector<128x4xbf16>
    %c0_54 = arith.constant 0 : index
    %c28 = arith.constant 28 : index
    %31 = vector.load %arg6[%c0_54, %c28] : memref<128x36xbf16, #tpu.memory_space<vmem>>, vector<128x4xbf16>
    tpu.vector_store %arg6[%c0_54, %c28], %30 {strides = array<i32>} : memref<128x36xbf16, #tpu.memory_space<vmem>>, vector<128x4xbf16>,
    %c0_55 = arith.constant 0 : index
    %c0_56 = arith.constant 0 : index
    %c0_57 = arith.constant 0 : index
    %c1_58 = arith.constant 1 : index
    %c1_59 = arith.constant 1 : index
    %c0_60 = arith.constant 0 : index
    %32 = vector.load %arg0[%c0_55, %c0_56, %c0_57, %c1_58, %c1_59, %c0_60] : memref<2x2x2x9x9x4xbf16, #tpu.memory_space<vmem>>, vector<1x1x2x8x8x4xbf16>
    %33 = vector.shape_cast %32 : vector<1x1x2x8x8x4xbf16> to vector<2x8x8x4xbf16>
    %34 = vector.shape_cast %33 : vector<2x8x8x4xbf16> to vector<128x4xbf16>
    %c0_61 = arith.constant 0 : index
    %c32 = arith.constant 32 : index
    %35 = vector.load %arg6[%c0_61, %c32] : memref<128x36xbf16, #tpu.memory_space<vmem>>, vector<128x4xbf16>
    tpu.vector_store %arg6[%c0_61, %c32], %34 {strides = array<i32>} : memref<128x36xbf16, #tpu.memory_space<vmem>>, vector<128x4xbf16>,
    %c0_62 = arith.constant 0 : index
    %c0_63 = arith.constant 0 : index
    %36 = vector.load %arg6[%c0_62, %c0_63] : memref<128x36xbf16, #tpu.memory_space<vmem>>, vector<128x36xbf16>
    %c0_64 = arith.constant 0 : index
    %c0_65 = arith.constant 0 : index
    %37 = vector.load %arg1[%c0_64, %c0_65] : memref<36x256xbf16, #tpu.memory_space<vmem>>, vector<36x256xbf16>
    %cst = arith.constant dense<0.000000e+00> : vector<128x256xf32>
    %38 = tpu.matmul %36, %37, %cst {dimension_numbers = #tpu.dot_dimension_numbers<[1], [0], [0], [1], [0, 0, 1, 1], [], []>} : vector<128x36xbf16>, vector<36x256xbf16>, vector<128x256xf32> -> vector<128x256xf32>
    %c0_66 = arith.constant 0 : index
    %c0_67 = arith.constant 0 : index
    %39 = vector.load %arg2[%c0_66, %c0_67] : memref<2x256xf32, #tpu.memory_space<vmem>>, vector<1x256xf32>
    %40 = vector.broadcast %39 : vector<1x256xf32> to vector<128x256xf32>
    %41 = arith.mulf %38, %40 : vector<128x256xf32>
    %c1_68 = arith.constant 1 : index
    %c0_69 = arith.constant 0 : index
    %42 = vector.load %arg2[%c1_68, %c0_69] : memref<2x256xf32, #tpu.memory_space<vmem>>, vector<1x256xf32>
    %43 = vector.broadcast %42 : vector<1x256xf32> to vector<128x256xf32>
    %44 = arith.addf %41, %43 : vector<128x256xf32>
    %45 = vector.extract_strided_slice %44 {offsets = [0, 0], sizes = [128, 128], strides = [1, 1]} : vector<128x256xf32> to vector<128x128xf32>
    %cst_70 = arith.constant 0.000000e+00 : f32
    %46 = vector.broadcast %cst_70 : f32 to vector<128x128xf32>
    %47 = arith.maximumf %45, %46 : vector<128x128xf32>
    %48 = vector.extract_strided_slice %44 {offsets = [0, 128], sizes = [128, 128], strides = [1, 1]} : vector<128x256xf32> to vector<128x128xf32>
    %c0_71 = arith.constant 0 : index
    %c0_72 = arith.constant 0 : index
    %49 = vector.load %arg9[%c0_71, %c0_72] : memref<128x128xf32, #tpu.memory_space<vmem>>, vector<128x128xf32>
    tpu.vector_store %arg9[%c0_71, %c0_72], %48 {strides = array<i32>} : memref<128x128xf32, #tpu.memory_space<vmem>>, vector<128x128xf32>,
    %50 = arith.truncf %47 : vector<128x128xf32> to vector<128x128xbf16>
    %51 = vector.shape_cast %50 : vector<128x128xbf16> to vector<2x8x8x128xbf16>
    %cst_73 = arith.constant 0.000000e+00 : bf16
    %52 = vector.broadcast %cst_73 : bf16 to vector<2x1x10x128xbf16>
    %cst_74 = arith.constant 0.000000e+00 : bf16
    %53 = vector.broadcast %cst_74 : bf16 to vector<2x8x1x128xbf16>
    %c0_75 = arith.constant 0 : index
    %c0_76 = arith.constant 0 : index
    %c0_77 = arith.constant 0 : index
    %c0_78 = arith.constant 0 : index
    %54 = vector.load %arg7[%c0_75, %c0_76, %c0_77, %c0_78] : memref<2x10x10x128xbf16, #tpu.memory_space<vmem>>, vector<2x1x10x128xbf16>
    tpu.vector_store %arg7[%c0_75, %c0_76, %c0_77, %c0_78], %52 {strides = array<i32>} : memref<2x10x10x128xbf16, #tpu.memory_space<vmem>>, vector<2x1x10x128xbf16>,
    %c0_79 = arith.constant 0 : index
    %c9 = arith.constant 9 : index
    %c0_80 = arith.constant 0 : index
    %c0_81 = arith.constant 0 : index
    %55 = vector.load %arg7[%c0_79, %c9, %c0_80, %c0_81] : memref<2x10x10x128xbf16, #tpu.memory_space<vmem>>, vector<2x1x10x128xbf16>
    tpu.vector_store %arg7[%c0_79, %c9, %c0_80, %c0_81], %52 {strides = array<i32>} : memref<2x10x10x128xbf16, #tpu.memory_space<vmem>>, vector<2x1x10x128xbf16>,
    %c0_82 = arith.constant 0 : index
    %c1_83 = arith.constant 1 : index
    %c0_84 = arith.constant 0 : index
    %c0_85 = arith.constant 0 : index
    %56 = vector.load %arg7[%c0_82, %c1_83, %c0_84, %c0_85] : memref<2x10x10x128xbf16, #tpu.memory_space<vmem>>, vector<2x8x1x128xbf16>
    tpu.vector_store %arg7[%c0_82, %c1_83, %c0_84, %c0_85], %53 {strides = array<i32>} : memref<2x10x10x128xbf16, #tpu.memory_space<vmem>>, vector<2x8x1x128xbf16>,
    %c0_86 = arith.constant 0 : index
    %c1_87 = arith.constant 1 : index
    %c9_88 = arith.constant 9 : index
    %c0_89 = arith.constant 0 : index
    %57 = vector.load %arg7[%c0_86, %c1_87, %c9_88, %c0_89] : memref<2x10x10x128xbf16, #tpu.memory_space<vmem>>, vector<2x8x1x128xbf16>
    tpu.vector_store %arg7[%c0_86, %c1_87, %c9_88, %c0_89], %53 {strides = array<i32>} : memref<2x10x10x128xbf16, #tpu.memory_space<vmem>>, vector<2x8x1x128xbf16>,
    %c0_90 = arith.constant 0 : index
    %c1_91 = arith.constant 1 : index
    %c1_92 = arith.constant 1 : index
    %c0_93 = arith.constant 0 : index
    %58 = vector.load %arg7[%c0_90, %c1_91, %c1_92, %c0_93] : memref<2x10x10x128xbf16, #tpu.memory_space<vmem>>, vector<2x8x8x128xbf16>
    tpu.vector_store %arg7[%c0_90, %c1_91, %c1_92, %c0_93], %51 {strides = array<i32>} : memref<2x10x10x128xbf16, #tpu.memory_space<vmem>>, vector<2x8x8x128xbf16>,
    %c0_94 = arith.constant 0 : index
    %c0_95 = arith.constant 0 : index
    %c0_96 = arith.constant 0 : index
    %c0_97 = arith.constant 0 : index
    %59 = vector.load %arg7[%c0_94, %c0_95, %c0_96, %c0_97] : memref<2x10x10x128xbf16, #tpu.memory_space<vmem>>, vector<2x8x8x128xbf16>
    %60 = vector.shape_cast %59 : vector<2x8x8x128xbf16> to vector<128x128xbf16>
    %c0_98 = arith.constant 0 : index
    %c0_99 = arith.constant 0 : index
    %61 = vector.load %arg8[%c0_98, %c0_99] : memref<128x1152xbf16, #tpu.memory_space<vmem>>, vector<128x128xbf16>
    tpu.vector_store %arg8[%c0_98, %c0_99], %60 {strides = array<i32>} : memref<128x1152xbf16, #tpu.memory_space<vmem>>, vector<128x128xbf16>,
    %c0_100 = arith.constant 0 : index
    %c0_101 = arith.constant 0 : index
    %c1_102 = arith.constant 1 : index
    %c0_103 = arith.constant 0 : index
    %62 = vector.load %arg7[%c0_100, %c0_101, %c1_102, %c0_103] : memref<2x10x10x128xbf16, #tpu.memory_space<vmem>>, vector<2x8x8x128xbf16>
    %63 = vector.shape_cast %62 : vector<2x8x8x128xbf16> to vector<128x128xbf16>
    %c0_104 = arith.constant 0 : index
    %c128 = arith.constant 128 : index
    %64 = vector.load %arg8[%c0_104, %c128] : memref<128x1152xbf16, #tpu.memory_space<vmem>>, vector<128x128xbf16>
    tpu.vector_store %arg8[%c0_104, %c128], %63 {strides = array<i32>} : memref<128x1152xbf16, #tpu.memory_space<vmem>>, vector<128x128xbf16>,
    %c0_105 = arith.constant 0 : index
    %c0_106 = arith.constant 0 : index
    %c2 = arith.constant 2 : index
    %c0_107 = arith.constant 0 : index
    %65 = vector.load %arg7[%c0_105, %c0_106, %c2, %c0_107] : memref<2x10x10x128xbf16, #tpu.memory_space<vmem>>, vector<2x8x8x128xbf16>
    %66 = vector.shape_cast %65 : vector<2x8x8x128xbf16> to vector<128x128xbf16>
    %c0_108 = arith.constant 0 : index
    %c256 = arith.constant 256 : index
    %67 = vector.load %arg8[%c0_108, %c256] : memref<128x1152xbf16, #tpu.memory_space<vmem>>, vector<128x128xbf16>
    tpu.vector_store %arg8[%c0_108, %c256], %66 {strides = array<i32>} : memref<128x1152xbf16, #tpu.memory_space<vmem>>, vector<128x128xbf16>,
    %c0_109 = arith.constant 0 : index
    %c1_110 = arith.constant 1 : index
    %c0_111 = arith.constant 0 : index
    %c0_112 = arith.constant 0 : index
    %68 = vector.load %arg7[%c0_109, %c1_110, %c0_111, %c0_112] : memref<2x10x10x128xbf16, #tpu.memory_space<vmem>>, vector<2x8x8x128xbf16>
    %69 = vector.shape_cast %68 : vector<2x8x8x128xbf16> to vector<128x128xbf16>
    %c0_113 = arith.constant 0 : index
    %c384 = arith.constant 384 : index
    %70 = vector.load %arg8[%c0_113, %c384] : memref<128x1152xbf16, #tpu.memory_space<vmem>>, vector<128x128xbf16>
    tpu.vector_store %arg8[%c0_113, %c384], %69 {strides = array<i32>} : memref<128x1152xbf16, #tpu.memory_space<vmem>>, vector<128x128xbf16>,
    %c0_114 = arith.constant 0 : index
    %c1_115 = arith.constant 1 : index
    %c1_116 = arith.constant 1 : index
    %c0_117 = arith.constant 0 : index
    %71 = vector.load %arg7[%c0_114, %c1_115, %c1_116, %c0_117] : memref<2x10x10x128xbf16, #tpu.memory_space<vmem>>, vector<2x8x8x128xbf16>
    %72 = vector.shape_cast %71 : vector<2x8x8x128xbf16> to vector<128x128xbf16>
    %c0_118 = arith.constant 0 : index
    %c512 = arith.constant 512 : index
    %73 = vector.load %arg8[%c0_118, %c512] : memref<128x1152xbf16, #tpu.memory_space<vmem>>, vector<128x128xbf16>
    tpu.vector_store %arg8[%c0_118, %c512], %72 {strides = array<i32>} : memref<128x1152xbf16, #tpu.memory_space<vmem>>, vector<128x128xbf16>,
    %c0_119 = arith.constant 0 : index
    %c1_120 = arith.constant 1 : index
    %c2_121 = arith.constant 2 : index
    %c0_122 = arith.constant 0 : index
    %74 = vector.load %arg7[%c0_119, %c1_120, %c2_121, %c0_122] : memref<2x10x10x128xbf16, #tpu.memory_space<vmem>>, vector<2x8x8x128xbf16>
    %75 = vector.shape_cast %74 : vector<2x8x8x128xbf16> to vector<128x128xbf16>
    %c0_123 = arith.constant 0 : index
    %c640 = arith.constant 640 : index
    %76 = vector.load %arg8[%c0_123, %c640] : memref<128x1152xbf16, #tpu.memory_space<vmem>>, vector<128x128xbf16>
    tpu.vector_store %arg8[%c0_123, %c640], %75 {strides = array<i32>} : memref<128x1152xbf16, #tpu.memory_space<vmem>>, vector<128x128xbf16>,
    %c0_124 = arith.constant 0 : index
    %c2_125 = arith.constant 2 : index
    %c0_126 = arith.constant 0 : index
    %c0_127 = arith.constant 0 : index
    %77 = vector.load %arg7[%c0_124, %c2_125, %c0_126, %c0_127] : memref<2x10x10x128xbf16, #tpu.memory_space<vmem>>, vector<2x8x8x128xbf16>
    %78 = vector.shape_cast %77 : vector<2x8x8x128xbf16> to vector<128x128xbf16>
    %c0_128 = arith.constant 0 : index
    %c768 = arith.constant 768 : index
    %79 = vector.load %arg8[%c0_128, %c768] : memref<128x1152xbf16, #tpu.memory_space<vmem>>, vector<128x128xbf16>
    tpu.vector_store %arg8[%c0_128, %c768], %78 {strides = array<i32>} : memref<128x1152xbf16, #tpu.memory_space<vmem>>, vector<128x128xbf16>,
    %c0_129 = arith.constant 0 : index
    %c2_130 = arith.constant 2 : index
    %c1_131 = arith.constant 1 : index
    %c0_132 = arith.constant 0 : index
    %80 = vector.load %arg7[%c0_129, %c2_130, %c1_131, %c0_132] : memref<2x10x10x128xbf16, #tpu.memory_space<vmem>>, vector<2x8x8x128xbf16>
    %81 = vector.shape_cast %80 : vector<2x8x8x128xbf16> to vector<128x128xbf16>
    %c0_133 = arith.constant 0 : index
    %c896 = arith.constant 896 : index
    %82 = vector.load %arg8[%c0_133, %c896] : memref<128x1152xbf16, #tpu.memory_space<vmem>>, vector<128x128xbf16>
    tpu.vector_store %arg8[%c0_133, %c896], %81 {strides = array<i32>} : memref<128x1152xbf16, #tpu.memory_space<vmem>>, vector<128x128xbf16>,
    %c0_134 = arith.constant 0 : index
    %c2_135 = arith.constant 2 : index
    %c2_136 = arith.constant 2 : index
    %c0_137 = arith.constant 0 : index
    %83 = vector.load %arg7[%c0_134, %c2_135, %c2_136, %c0_137] : memref<2x10x10x128xbf16, #tpu.memory_space<vmem>>, vector<2x8x8x128xbf16>
    %84 = vector.shape_cast %83 : vector<2x8x8x128xbf16> to vector<128x128xbf16>
    %c0_138 = arith.constant 0 : index
    %c1024 = arith.constant 1024 : index
    %85 = vector.load %arg8[%c0_138, %c1024] : memref<128x1152xbf16, #tpu.memory_space<vmem>>, vector<128x128xbf16>
    tpu.vector_store %arg8[%c0_138, %c1024], %84 {strides = array<i32>} : memref<128x1152xbf16, #tpu.memory_space<vmem>>, vector<128x128xbf16>,
    %c0_139 = arith.constant 0 : index
    %c0_140 = arith.constant 0 : index
    %86 = vector.load %arg8[%c0_139, %c0_140] : memref<128x1152xbf16, #tpu.memory_space<vmem>>, vector<128x1152xbf16>
    %c0_141 = arith.constant 0 : index
    %c0_142 = arith.constant 0 : index
    %87 = vector.load %arg3[%c0_141, %c0_142] : memref<1152x128xbf16, #tpu.memory_space<vmem>>, vector<1152x128xbf16>
    %cst_143 = arith.constant dense<0.000000e+00> : vector<128x128xf32>
    %88 = tpu.matmul %86, %87, %cst_143 {dimension_numbers = #tpu.dot_dimension_numbers<[1], [0], [0], [1], [0, 0, 1, 1], [], []>} : vector<128x1152xbf16>, vector<1152x128xbf16>, vector<128x128xf32> -> vector<128x128xf32>
    %c0_144 = arith.constant 0 : index
    %c0_145 = arith.constant 0 : index
    %89 = vector.load %arg4[%c0_144, %c0_145] : memref<2x128xf32, #tpu.memory_space<vmem>>, vector<1x128xf32>
    %90 = vector.broadcast %89 : vector<1x128xf32> to vector<128x128xf32>
    %91 = arith.mulf %88, %90 : vector<128x128xf32>
    %c1_146 = arith.constant 1 : index
    %c0_147 = arith.constant 0 : index
    %92 = vector.load %arg4[%c1_146, %c0_147] : memref<2x128xf32, #tpu.memory_space<vmem>>, vector<1x128xf32>
    %93 = vector.broadcast %92 : vector<1x128xf32> to vector<128x128xf32>
    %94 = arith.addf %91, %93 : vector<128x128xf32>
    %cst_148 = arith.constant 0.000000e+00 : f32
    %95 = vector.broadcast %cst_148 : f32 to vector<128x128xf32>
    %96 = arith.maximumf %94, %95 : vector<128x128xf32>
    %c0_149 = arith.constant 0 : index
    %c0_150 = arith.constant 0 : index
    %97 = vector.load %arg9[%c0_149, %c0_150] : memref<128x128xf32, #tpu.memory_space<vmem>>, vector<128x128xf32>
    %98 = arith.addf %96, %97 : vector<128x128xf32>
    %cst_151 = arith.constant 0.000000e+00 : f32
    %99 = vector.broadcast %cst_151 : f32 to vector<128x128xf32>
    %100 = arith.maximumf %98, %99 : vector<128x128xf32>
    %c0_152 = arith.constant 0 : index
    %c0_153 = arith.constant 0 : index
    %101 = vector.load %arg5[%c0_152, %c0_153] : memref<128x128xf32, #tpu.memory_space<vmem>>, vector<128x128xf32>
    tpu.vector_store %arg5[%c0_152, %c0_153], %100 {strides = array<i32>} : memref<128x128xf32, #tpu.memory_space<vmem>>, vector<128x128xf32>,
    return
  }
}

</mosaic_0001>

<bundles_post_ra>
// kernel: basic_block_forward.1
= control target key start
LH: loop header
LB: loop body
LE: loop exit
PB: predicated region body
PF: predicated region fallthrough
CT: control target
= control target key end

     0   :  { %vm216_vm0 = vsmask.f32 3328  ;;  %vm217_vm1 = vsmask.f32 7440  ;;  %s5999_s22 = smov 4   ;;  %s6000_s25 = smov 12   ;;  %s7916_s0 = inlined_call_operand.vmem [shape: bf16[2,2,2,9,9,4], index: 0, kind: input, shape index: {}]   ;;  %s7917_s1 = inlined_call_operand.vmem [shape: bf16[36,256], index: 1, kind: input, shape index: {}]   ;;  %s7918_s3 = inlined_call_operand.vmem [shape: bf16[1152,128], index: 3, kind: input, shape index: {}]   ;;  %s7919_s2 = inlined_call_operand.vmem [shape: f32[2,256], index: 2, kind: input, shape index: {}]   ;;  %s7920_s4 = inlined_call_operand.vmem [shape: f32[2,128], index: 4, kind: input, shape index: {}]   ;;  %s7921_s5 = inlined_call_operand.vmem [shape: f32[128,128], index: 5, kind: output, shape index: {}]  }
   0x1   :  { %v5849_v0 = vld [vmem:[%s7916_s0 + $0x90] ss:$8 sps:$4 sm:$0xff]   ;;  %v5850_v1 = vld [vmem:[%s7916_s0 + $0x120] ss:$8 sps:$4 sm:$0xff]   ;;  %v185_v5 = vld [vmem:[%s7916_s0 + $0x4] sm:$0x1] }
   0x2   :  { %151 = vrot.lane.b32.xlu0 %v5849_v0, %s5999_s22  ;;  %v5851_v2 = vld [vmem:[%s7916_s0 + $0x98] ss:$8 sps:$4 sm:$0xff]   ;;  %557 = vrot.lane.b32.xlu1 %v5850_v1, %s6000_s25  ;;  %v186_v6 = vld [vmem:[%s7916_s0 + $0x8] sm:$0xf]  ;;  %s6001_s11 = smov 28   ;;  %v229_v10 = vshll.u32 %v185_v5, 16  ;;  %vm6080_vm2 = vmor %vm216_vm0, %vm217_vm1 }
   0x3   :  { %v5852_v3 = vld [vmem:[%s7916_s0 + $0x1b0] ss:$8 sps:$4 sm:$0xff]   ;;  %v184_v4 = vld [vmem:[%s7916_s0] sm:$0xf]  ;;  %v187_v7 = vld [vmem:[%s7916_s0 + $0xc] sm:$0x1] }
   0x4   :  { %v220_v8 = vshrl.u32 %v184_v4, 16  ;;  %v223_v9 = vshll.u32 %v184_v4, 16  ;;  %v234_v11 = vshrl.u32 %v186_v6, 16  ;;  %v237_v12 = vshll.u32 %v186_v6, 16  ;;  %s6002_s12 = smov 16   ;;  %s6003_s24 = smov 24  }
   0x5   :  { %v243_v13 = vshll.u32 %v187_v7, 16  ;;  %v231_v16 = vrot.slane %v229_v10, 5  ;;  %v5853_v20 = vld [vmem:[%s7916_s0 + $0x8] ss:$8 sps:$4 sm:$0xff]   ;;  %v5166_v22 = vld [vmem:[%s7916_s0 + $0x120] sm:$0xf] }
   0x6   :  { %1140 = vrot.lane.b32.xlu0 %v5851_v2, %s6001_s11  ;;  %647 = vrot.lane.b32.xlu1 %v5852_v3, %s6002_s12  ;;  %v222_v14 = vrot.slane %v220_v8, 4  ;;  %v225_v15 = vrot.slane %v223_v9, 5  ;;  %v236_v17 = vrot.slane %v234_v11, 4  ;;  %v239_v18 = vrot.slane %v237_v12, 5  ;;  %v5167_v23 = vld [vmem:[%s7916_s0 + $0x124] sm:$0x1] }
   0x7   :  { %v245_v19 = vrot.slane %v243_v13, 5  ;;  %v5168_v24 = vld [vmem:[%s7916_s0 + $0x128] sm:$0xf]  ;;  %v5169_v27 = vld [vmem:[%s7916_s0 + $0x12c] sm:$0x1]  ;;  %v713_v28 = vshrl.u32 %v5166_v22, 16 }
   0x8   :  { %v226_v21 = vor.u32 %v225_v15, %v222_v14  ;;  %v240_v26 = vor.u32 %v239_v18, %v236_v17  ;;  %v716_v29 = vshll.u32 %v5166_v22, 16  ;;  %v722_v30 = vshll.u32 %v5167_v23, 16  ;;  %v5254_v35 = vld [vmem:[%s7916_s0 + $0x8] sm:$0xf]  ;;  %v5255_v40 = vld [vmem:[%s7916_s0 + $0xc] sm:$0x1] }
   0x9   :  { %v727_v32 = vshrl.u32 %v5168_v24, 16  ;;  %v730_v33 = vshll.u32 %v5168_v24, 16  ;;  %v736_v34 = vshll.u32 %v5169_v27, 16  ;;  %v715_v37 = vrot.slane %v713_v28, 4  ;;  %v5256_v45 = vld [vmem:[%s7916_s0 + $0x10] sm:$0xf] }
   0xa   :  { %v227_v31 = vrot.slane %v226_v21, 4  ;;  %1050 = vrot.lane.b32.xlu1 %v5853_v20, %s6003_s24  ;;  %v241_v36 = vrot.slane %v240_v26, 4  ;;  %v718_v38 = vrot.slane %v716_v29, 5  ;;  %v724_v39 = vrot.slane %v722_v30, 5  ;;  %v5257_v48 = vld [vmem:[%s7916_s0 + $0x14] sm:$0x1] }
   0xb   :  { %v729_v42 = vrot.slane %v727_v32, 4  ;;  %v732_v43 = vrot.slane %v730_v33, 5  ;;  %v738_v44 = vrot.slane %v736_v34, 5  ;;  %v1206_v49 = vshrl.u32 %v5254_v35, 16  ;;  %v188_v59 = vld [vmem:[%s7916_s0 + $0x10] sm:$0xf] }
   0xc   :  { %v232_v41 = vsel %vm6080_vm2, %v227_v31, %v231_v16  ;;  %v246_v46 = vsel %vm6080_vm2, %v241_v36, %v245_v19  ;;  %v719_v47 = vor.u32 %v718_v38, %v715_v37  ;;  %v1209_v50 = vshll.u32 %v5254_v35, 16  ;;  %s6004_s13 = smov 8   ;;  %v189_v0 = vld [vmem:[%s7916_s0 + $0x14] sm:$0x1]  ;;  %v190_v4 = vld [vmem:[%s7916_s0 + $0x18] sm:$0xf] }
   0xd   :  { %v5110_v51 = vcombine.low %v232_v41, %v246_v46  ;;  %v733_v52 = vor.u32 %v732_v43, %v729_v42  ;;  %v1215_v53 = vshll.u32 %v5255_v40, 16  ;;  %v1220_v54 = vshrl.u32 %v5256_v45, 16  ;;  %v191_v5 = vld [vmem:[%s7916_s0 + $0x1c] sm:$0x1]  ;;  %v5854_v14 = vld [vmem:[%s7916_s0 + $0xa0] ss:$8 sps:$4 sm:$0xff]  }
   0xe   :  { %v720_v55 = vrot.slane %v719_v47, 4  ;;  %v1208_v56 = vrot.slane %v1206_v49, 4  ;;  %v1211_v57 = vrot.slane %v1209_v50, 5  ;;  %v1223_v58 = vshll.u32 %v5256_v45, 16  ;;  %s6005_s23 = smov 20   ;;  %s6006_s14 = smov 32  }
   0xf   :  { %467 = vrot.lane.b32.xlu0 %v5110_v51, %s6004_s13  ;;  %v734_v60 = vrot.slane %v733_v52, 4  ;;  %v1217_v61 = vrot.slane %v1215_v53, 5  ;;  %v1222_v62 = vrot.slane %v1220_v54, 4  ;;  %v1229_v63 = vshll.u32 %v5257_v48, 16  ;;  %v5170_v27 = vld [vmem:[%s7916_s0 + $0x130] sm:$0xf] }
  0x10   :  { %v725_v1 = vsel %vm6080_vm2, %v720_v55, %v724_v39  ;;  %v1212_v2 = vor.u32 %v1211_v57, %v1208_v56  ;;  %v1225_v3 = vrot.slane %v1223_v58, 5  ;;  %v248_v6 = vshrl.u32 %v188_v59, 16  ;;  %v5171_v28 = vld [vmem:[%s7916_s0 + $0x134] sm:$0x1]  ;;  %v5172_v31 = vld [vmem:[%s7916_s0 + $0x138] sm:$0xf] }
  0x11   :  { %v739_v7 = vsel %vm6080_vm2, %v734_v60, %v738_v44  ;;  %v1231_v8 = vrot.slane %v1229_v63, 5  ;;  %v251_v9 = vshll.u32 %v188_v59, 16  ;;  %v257_v10 = vshll.u32 %v189_v0, 16  ;;  %v5173_v32 = vld [vmem:[%s7916_s0 + $0x13c] sm:$0x1] }
  0x12   :  { %v5198_v11 = vcombine.low %v725_v1, %v739_v7  ;;  %v1213_v12 = vrot.slane %v1212_v2, 4  ;;  %v1226_v13 = vor.u32 %v1225_v3, %v1222_v62  ;;  %v250_v15 = vrot.slane %v248_v6, 4  ;;  %v5855_v38 = vld [vmem:[%s7916_s0 + $0x130] ss:$8 sps:$4 sm:$0xff]   ;;  %v5856_v55 = vld [vmem:[%s7916_s0 + $0x1c0] ss:$8 sps:$4 sm:$0xff]  }
  0x13   :  { %v253_v16 = vrot.slane %v251_v9, 5  ;;  %v262_v17 = vshrl.u32 %v190_v4, 16  ;;  %v265_v18 = vshll.u32 %v190_v4, 16  ;;  %v259_v21 = vrot.slane %v257_v10, 5  ;;  %v5258_v53 = vld [vmem:[%s7916_s0 + $0x18] sm:$0xf] }
  0x14   :  { %960 = vrot.lane.b32.xlu0 %v5198_v11, %s6005_s23  ;;  %v1218_v19 = vsel %vm6080_vm2, %v1213_v12, %v1217_v61  ;;  %v1227_v20 = vrot.slane %v1226_v13, 4  ;;  %v271_v22 = vshll.u32 %v191_v5, 16  ;;  %v741_v33 = vshrl.u32 %v5170_v27, 16  ;;  %v5259_v57 = vld [vmem:[%s7916_s0 + $0x1c] sm:$0x1] }
  0x15   :  { %v254_v23 = vor.u32 %v253_v16, %v250_v15  ;;  %v264_v24 = vrot.slane %v262_v17, 4  ;;  %v267_v26 = vrot.slane %v265_v18, 5  ;;  %v744_v37 = vshll.u32 %v5170_v27, 16  ;;  %v5260_v58 = vld [vmem:[%s7916_s0 + $0x20] sm:$0xf] }
  0x16   :  { %v1232_v29 = vsel %vm6080_vm2, %v1227_v20, %v1231_v8  ;;  %v273_v30 = vrot.slane %v271_v22, 5  ;;  %v743_v39 = vrot.slane %v741_v33, 4  ;;  %v750_v40 = vshll.u32 %v5171_v28, 16  ;;  %v5261_v59 = vld [vmem:[%s7916_s0 + $0x24] sm:$0x1] }
  0x17   :  { %v5286_v34 = vcombine.low %v1218_v19, %v1232_v29  ;;  %v255_v35 = vrot.slane %v254_v23, 4  ;;  %v268_v36 = vor.u32 %v267_v26, %v264_v24  ;;  %v755_v41 = vshrl.u32 %v5172_v31, 16  ;;  %v5857_v9 = vld [vmem:[%s7916_s0 + $0x18] ss:$8 sps:$4 sm:$0xff]   ;;  %v5858_v15 = vld [vmem:[%s7916_s0 + $0xa8] ss:$8 sps:$4 sm:$0xff]  }
  0x18   :  { %153 = vrot.lane.b32.xlu0 %v5854_v14, %s5999_s22  ;;  %v758_v42 = vshll.u32 %v5172_v31, 16  ;;  %v746_v45 = vrot.slane %v744_v37, 5  ;;  %v764_v46 = vshll.u32 %v5173_v32, 16  ;;  %v752_v51 = vrot.slane %v750_v40, 5  ;;  %v192_v13 = vld [vmem:[%s7916_s0 + $0x20] sm:$0xf] }
  0x19   :  { %1453 = vrot.lane.b32.xlu1 %v5286_v34, %s6006_s14  ;;  %v260_v43 = vsel %vm6080_vm2, %v255_v35, %v259_v21  ;;  %v269_v44 = vrot.slane %v268_v36, 4  ;;  %v757_v47 = vrot.slane %v755_v41, 4  ;;  %v1234_v61 = vshrl.u32 %v5258_v53, 16  ;;  %v193_v17 = vld [vmem:[%s7916_s0 + $0x24] sm:$0x1] }
  0x1a   :  { %v760_v48 = vrot.slane %v758_v42, 5  ;;  %v747_v50 = vor.u32 %v746_v45, %v743_v39  ;;  %v766_v52 = vrot.slane %v764_v46, 5  ;;  %v1237_v62 = vshll.u32 %v5258_v53, 16  ;;  %v194_v18 = vld [vmem:[%s7916_s0 + $0x28] sm:$0xf] }
  0x1b   :  { %v274_v49 = vsel %vm6080_vm2, %v269_v44, %v273_v30  ;;  %v1243_v63 = vshll.u32 %v5259_v57, 16  ;;  %v1248_v1 = vshrl.u32 %v5260_v58, 16  ;;  %v1251_v2 = vshll.u32 %v5260_v58, 16  ;;  %v195_v19 = vld [vmem:[%s7916_s0 + $0x2c] sm:$0x1] }
  0x1c   :  { %v5111_v54 = vcombine.low %v260_v43, %v274_v49  ;;  %559 = vrot.lane.b32.xlu0 %v5855_v38, %s6000_s25  ;;  %v761_v56 = vor.u32 %v760_v48, %v757_v47  ;;  %v748_v60 = vrot.slane %v747_v50, 4  ;;  %v1257_v3 = vshll.u32 %v5261_v59, 16  ;;  %v5859_v33 = vld [vmem:[%s7916_s0 + $0xb0] ss:$8 sps:$4 sm:$0xff]   ;;  %v5174_v40 = vld [vmem:[%s7916_s0 + $0x140] sm:$0xf] }
  0x1d   :  { %v1236_v5 = vrot.slane %v1234_v61, 4  ;;  %v1239_v6 = vrot.slane %v1237_v62, 5  ;;  %v1245_v7 = vrot.slane %v1243_v63, 5  ;;  %v1250_v10 = vrot.slane %v1248_v1, 4  ;;  %v5175_v43 = vld [vmem:[%s7916_s0 + $0x144] sm:$0x1] }
  0x1e   :  { %469 = vrot.lane.b32.xlu1 %v5111_v54, %s6004_s13  ;;  %v762_v0 = vrot.slane %v761_v56, 4  ;;  %v753_v4 = vsel %vm6080_vm2, %v748_v60, %v752_v51  ;;  %v1253_v11 = vrot.slane %v1251_v2, 5  ;;  %v1259_v12 = vrot.slane %v1257_v3, 5  ;;  %v5176_v44 = vld [vmem:[%s7916_s0 + $0x148] sm:$0xf] }
  0x1f   :  { %v1240_v16 = vor.u32 %v1239_v6, %v1236_v5  ;;  %v276_v21 = vshrl.u32 %v192_v13, 16  ;;  %v279_v22 = vshll.u32 %v192_v13, 16  ;;  %v285_v23 = vshll.u32 %v193_v17, 16  ;;  %v5177_v45 = vld [vmem:[%s7916_s0 + $0x14c] sm:$0x1] }
  0x20   :  { %v767_v8 = vsel %vm6080_vm2, %v762_v0, %v766_v52  ;;  %v1254_v20 = vor.u32 %v1253_v11, %v1250_v10  ;;  %v290_v26 = vshrl.u32 %v194_v18, 16  ;;  %v293_v27 = vshll.u32 %v194_v18, 16  ;;  %v5860_v58 = vld [vmem:[%s7916_s0 + $0x140] ss:$8 sps:$4 sm:$0xff]   ;;  %v5861_v62 = vld [vmem:[%s7916_s0 + $0x1d0] ss:$8 sps:$4 sm:$0xff]  }
  0x21   :  { %v5199_v14 = vcombine.low %v753_v4, %v767_v8  ;;  %v1241_v24 = vrot.slane %v1240_v16, 4  ;;  %v299_v28 = vshll.u32 %v195_v19, 16  ;;  %v278_v30 = vrot.slane %v276_v21, 4  ;;  %v5262_v2 = vld [vmem:[%s7916_s0 + $0x28] sm:$0xf] }
  0x22   :  { %649 = vrot.lane.b32.xlu1 %v5856_v55, %s6002_s12  ;;  %v1255_v29 = vrot.slane %v1254_v20, 4  ;;  %v281_v31 = vrot.slane %v279_v22, 5  ;;  %v292_v34 = vrot.slane %v290_v26, 4  ;;  %v295_v35 = vrot.slane %v293_v27, 5  ;;  %v5263_v4 = vld [vmem:[%s7916_s0 + $0x2c] sm:$0x1] }
  0x23   :  { %962 = vrot.lane.b32.xlu0 %v5199_v14, %s6005_s23  ;;  %v1246_v32 = vsel %vm6080_vm2, %v1241_v24, %v1245_v7  ;;  %v287_v38 = vrot.slane %v285_v23, 5  ;;  %v301_v39 = vrot.slane %v299_v28, 5  ;;  %v769_v47 = vshrl.u32 %v5174_v40, 16  ;;  %v5264_v5 = vld [vmem:[%s7916_s0 + $0x30] sm:$0xf] }
  0x24   :  { %v1260_v36 = vsel %vm6080_vm2, %v1255_v29, %v1259_v12  ;;  %v282_v37 = vor.u32 %v281_v31, %v278_v30  ;;  %v296_v42 = vor.u32 %v295_v35, %v292_v34  ;;  %v772_v48 = vshll.u32 %v5174_v40, 16  ;;  %v5265_v6 = vld [vmem:[%s7916_s0 + $0x34] sm:$0x1]  ;;  %v5862_v16 = vld [vmem:[%s7916_s0 + $0x28] ss:$8 sps:$4 sm:$0xff]  }
  0x25   :  { %v5287_v41 = vcombine.low %v1246_v32, %v1260_v36  ;;  %v778_v49 = vshll.u32 %v5175_v43, 16  ;;  %v783_v51 = vshrl.u32 %v5176_v44, 16  ;;  %v786_v52 = vshll.u32 %v5176_v44, 16  ;;  %v196_v24 = vld [vmem:[%s7916_s0 + $0x30] sm:$0xf] }
  0x26   :  { %1052 = vrot.lane.b32.xlu1 %v5857_v9, %s6003_s24  ;;  %v283_v46 = vrot.slane %v282_v37, 4  ;;  %v297_v50 = vrot.slane %v296_v42, 4  ;;  %v792_v53 = vshll.u32 %v5177_v45, 16  ;;  %v771_v55 = vrot.slane %v769_v47, 4  ;;  %v5863_v27 = vld [vmem:[%s7916_s0 + $0xb8] ss:$8 sps:$4 sm:$0xff]  }
  0x27   :  { %1142 = vrot.lane.b32.xlu0 %v5858_v15, %s6001_s11  ;;  %v774_v56 = vrot.slane %v772_v48, 5  ;;  %v785_v59 = vrot.slane %v783_v51, 4  ;;  %v788_v60 = vrot.slane %v786_v52, 5  ;;  %v780_v0 = vrot.slane %v778_v49, 5  ;;  %v197_v29 = vld [vmem:[%s7916_s0 + $0x34] sm:$0x1] }
  0x28   :  { %v288_v54 = vsel %vm6080_vm2, %v283_v46, %v287_v38  ;;  %v302_v57 = vsel %vm6080_vm2, %v297_v50, %v301_v39  ;;  %v794_v1 = vrot.slane %v792_v53, 5  ;;  %v1262_v8 = vshrl.u32 %v5262_v2, 16  ;;  %v198_v30 = vld [vmem:[%s7916_s0 + $0x38] sm:$0xf]  ;;  %v199_v31 = vld [vmem:[%s7916_s0 + $0x3c] sm:$0x1] }
  0x29   :  { %v5112_v61 = vcombine.low %v288_v54, %v302_v57  ;;  %v775_v63 = vor.u32 %v774_v56, %v771_v55  ;;  %v789_v3 = vor.u32 %v788_v60, %v785_v59  ;;  %v1265_v9 = vshll.u32 %v5262_v2, 16  ;;  %v5864_v44 = vld [vmem:[%s7916_s0 + $0xc0] ss:$8 sps:$4 sm:$0xff]   ;;  %v5178_v51 = vld [vmem:[%s7916_s0 + $0x150] sm:$0xf] }
  0x2a   :  { %1455 = vrot.lane.b32.xlu1 %v5287_v41, %s6006_s14  ;;  %v1271_v10 = vshll.u32 %v5263_v4, 16  ;;  %v1276_v12 = vshrl.u32 %v5264_v5, 16  ;;  %v1279_v13 = vshll.u32 %v5264_v5, 16  ;;  %v1285_v14 = vshll.u32 %v5265_v6, 16  ;;  %v5179_v54 = vld [vmem:[%s7916_s0 + $0x154] sm:$0x1] }
  0x2b   :  { %155 = vrot.lane.b32.xlu0 %v5859_v33, %s5999_s22  ;;  %v776_v7 = vrot.slane %v775_v63, 4  ;;  %v790_v11 = vrot.slane %v789_v3, 4  ;;  %v1264_v17 = vrot.slane %v1262_v8, 4  ;;  %v1267_v18 = vrot.slane %v1265_v9, 5  ;;  %v5180_v55 = vld [vmem:[%s7916_s0 + $0x158] sm:$0xf] }
  0x2c   :  { %v1273_v19 = vrot.slane %v1271_v10, 5  ;;  %v1278_v21 = vrot.slane %v1276_v12, 4  ;;  %v1281_v22 = vrot.slane %v1279_v13, 5  ;;  %v1287_v23 = vrot.slane %v1285_v14, 5  ;;  %v5181_v56 = vld [vmem:[%s7916_s0 + $0x15c] sm:$0x1] }
  0x2d   :  { %v781_v15 = vsel %vm6080_vm2, %v776_v7, %v780_v0  ;;  %v795_v20 = vsel %vm6080_vm2, %v790_v11, %v794_v1  ;;  %v1268_v28 = vor.u32 %v1267_v18, %v1264_v17  ;;  %v304_v33 = vshrl.u32 %v196_v24, 16  ;;  %v5865_v5 = vld [vmem:[%s7916_s0 + $0x150] ss:$8 sps:$4 sm:$0xff]   ;;  %v5866_v9 = vld [vmem:[%s7916_s0 + $0x1e0] ss:$8 sps:$4 sm:$0xff]  }
  0x2e   :  { %471 = vrot.lane.b32.xlu1 %v5112_v61, %s6004_s13  ;;  %v5200_v26 = vcombine.low %v781_v15, %v795_v20  ;;  %v1282_v32 = vor.u32 %v1281_v22, %v1278_v21  ;;  %v307_v34 = vshll.u32 %v196_v24, 16  ;;  %v313_v35 = vshll.u32 %v197_v29, 16  ;;  %v5266_v13 = vld [vmem:[%s7916_s0 + $0x38] sm:$0xf]  ;;  %v5267_v15 = vld [vmem:[%s7916_s0 + $0x3c] sm:$0x1] }
  0x2f   :  { %561 = vrot.lane.b32.xlu0 %v5860_v58, %s6000_s25  ;;  %v1269_v36 = vrot.slane %v1268_v28, 4  ;;  %v318_v37 = vshrl.u32 %v198_v30, 16  ;;  %v321_v38 = vshll.u32 %v198_v30, 16  ;;  %v327_v39 = vshll.u32 %v199_v31, 16  ;;  %v5269_v17 = vld [vmem:[%s7916_s0 + $0x44] sm:$0x1] }
  0x30   :  { %v1283_v40 = vrot.slane %v1282_v32, 4  ;;  %v306_v41 = vrot.slane %v304_v33, 4  ;;  %v309_v42 = vrot.slane %v307_v34, 5  ;;  %v315_v49 = vrot.slane %v313_v35, 5  ;;  %v5867_v28 = vld [vmem:[%s7916_s0 + $0x38] ss:$8 sps:$4 sm:$0xff]  }
  0x31   :  { %v1274_v43 = vsel %vm6080_vm2, %v1269_v36, %v1273_v19  ;;  %v320_v45 = vrot.slane %v318_v37, 4  ;;  %v323_v46 = vrot.slane %v321_v38, 5  ;;  %v329_v50 = vrot.slane %v327_v39, 5  ;;  %v200_v36 = vld [vmem:[%s7916_s0 + $0x48] sm:$0xf] }
  0x32   :  { %651 = vrot.lane.b32.xlu1 %v5861_v62, %s6002_s12  ;;  %v1288_v47 = vsel %vm6080_vm2, %v1283_v40, %v1287_v23  ;;  %v310_v48 = vor.u32 %v309_v42, %v306_v41  ;;  %v797_v58 = vshrl.u32 %v5178_v51, 16  ;;  %v800_v59 = vshll.u32 %v5178_v51, 16  ;;  %v5868_v38 = vld [vmem:[%s7916_s0 + $0xc8] ss:$8 sps:$4 sm:$0xff]   ;;  %v201_v40 = vld [vmem:[%s7916_s0 + $0x4c] sm:$0x1] }
  0x33   :  { %964 = vrot.lane.b32.xlu0 %v5200_v26, %s6005_s23  ;;  %v5288_v52 = vcombine.low %v1274_v43, %v1288_v47  ;;  %v324_v53 = vor.u32 %v323_v46, %v320_v45  ;;  %v806_v60 = vshll.u32 %v5179_v54, 16  ;;  %v811_v62 = vshrl.u32 %v5180_v55, 16  ;;  %v202_v41 = vld [vmem:[%s7916_s0 + $0x50] sm:$0xf]  ;;  %v203_v42 = vld [vmem:[%s7916_s0 + $0x54] sm:$0x1] }
  0x34   :  { %v311_v57 = vrot.slane %v310_v48, 4  ;;  %v814_v63 = vshll.u32 %v5180_v55, 16  ;;  %v820_v0 = vshll.u32 %v5181_v56, 16  ;;  %v799_v2 = vrot.slane %v797_v58, 4  ;;  %v5869_v55 = vld [vmem:[%s7916_s0 + $0xd8] ss:$8 sps:$4 sm:$0xff]  }
  0x35   :  { %v325_v61 = vrot.slane %v324_v53, 4  ;;  %v802_v3 = vrot.slane %v800_v59, 5  ;;  %v813_v6 = vrot.slane %v811_v62, 4  ;;  %v808_v11 = vrot.slane %v806_v60, 5  ;;  %v5182_v62 = vld [vmem:[%s7916_s0 + $0x168] sm:$0xf] }
  0x36   :  { %1054 = vrot.lane.b32.xlu1 %v5862_v16, %s6003_s24  ;;  %v316_v1 = vsel %vm6080_vm2, %v311_v57, %v315_v49  ;;  %v816_v7 = vrot.slane %v814_v63, 5  ;;  %v822_v12 = vrot.slane %v820_v0, 5  ;;  %v5268_v16 = vld [vmem:[%s7916_s0 + $0x40] sm:$0xf]  ;;  %v1290_v19 = vshrl.u32 %v5266_v13, 16 }
  0x37   :  { %1144 = vrot.lane.b32.xlu0 %v5863_v27, %s6001_s11  ;;  %v330_v4 = vsel %vm6080_vm2, %v325_v61, %v329_v50  ;;  %v803_v10 = vor.u32 %v802_v3, %v799_v2  ;;  %v1293_v20 = vshll.u32 %v5266_v13, 16  ;;  %v1299_v21 = vshll.u32 %v5267_v15, 16  ;;  %v5184_v2 = vld [vmem:[%s7916_s0 + $0x170] sm:$0xf]  ;;  %v5185_v3 = vld [vmem:[%s7916_s0 + $0x174] sm:$0x1] }
  0x38   :  { %v5113_v8 = vcombine.low %v316_v1, %v330_v4  ;;  %v817_v14 = vor.u32 %v816_v7, %v813_v6  ;;  %v1304_v23 = vshrl.u32 %v5268_v16, 16  ;;  %v1307_v24 = vshll.u32 %v5268_v16, 16  ;;  %v5183_v1 = vld [vmem:[%s7916_s0 + $0x16c] sm:$0x1]  ;;  %v5870_v16 = vld [vmem:[%s7916_s0 + $0x168] ss:$8 sps:$4 sm:$0xff]  }
  0x39   :  { %v804_v18 = vrot.slane %v803_v10, 4  ;;  %v1313_v26 = vshll.u32 %v5269_v17, 16  ;;  %v1292_v29 = vrot.slane %v1290_v19, 4  ;;  %v1295_v30 = vrot.slane %v1293_v20, 5  ;;  %v5871_v20 = vld [vmem:[%s7916_s0 + $0x1f8] ss:$8 sps:$4 sm:$0xff]  }
  0x3a   :  { %1457 = vrot.lane.b32.xlu1 %v5288_v52, %s6006_s14  ;;  %v818_v22 = vrot.slane %v817_v14, 4  ;;  %v1301_v31 = vrot.slane %v1299_v21, 5  ;;  %v1306_v33 = vrot.slane %v1304_v23, 4  ;;  %v1309_v34 = vrot.slane %v1307_v24, 5  ;;  %v5270_v24 = vld [vmem:[%s7916_s0 + $0x50] sm:$0xf] }
  0x3b   :  { %157 = vrot.lane.b32.xlu0 %v5864_v44, %s5999_s22  ;;  %v809_v27 = vsel %vm6080_vm2, %v804_v18, %v808_v11  ;;  %v1315_v35 = vrot.slane %v1313_v26, 5  ;;  %v1296_v39 = vor.u32 %v1295_v30, %v1292_v29  ;;  %v332_v44 = vshrl.u32 %v200_v36, 16  ;;  %v5273_v29 = vld [vmem:[%s7916_s0 + $0x5c] sm:$0x1] }
  0x3c   :  { %v823_v32 = vsel %vm6080_vm2, %v818_v22, %v822_v12  ;;  %v1310_v43 = vor.u32 %v1309_v34, %v1306_v33  ;;  %v335_v45 = vshll.u32 %v200_v36, 16  ;;  %v341_v46 = vshll.u32 %v201_v40, 16 }
  0x3d   :  { %v5201_v37 = vcombine.low %v809_v27, %v823_v32  ;;  %v1297_v47 = vrot.slane %v1296_v39, 4  ;;  %v346_v48 = vshrl.u32 %v202_v41, 16  ;;  %v349_v49 = vshll.u32 %v202_v41, 16  ;;  %v5271_v27 = vld [vmem:[%s7916_s0 + $0x54] sm:$0x1] }
  0x3e   :  { %473 = vrot.lane.b32.xlu1 %v5113_v8, %s6004_s13  ;;  %v355_v50 = vshll.u32 %v203_v42, 16  ;;  %v1311_v51 = vrot.slane %v1310_v43, 4  ;;  %v334_v52 = vrot.slane %v332_v44, 4  ;;  %v337_v53 = vrot.slane %v335_v45, 5  ;;  %v5872_v39 = vld [vmem:[%s7916_s0 + $0x50] ss:$8 sps:$4 sm:$0xff]  }
  0x3f   :  { %563 = vrot.lane.b32.xlu0 %v5865_v5, %s6000_s25  ;;  %v1302_v54 = vsel %vm6080_vm2, %v1297_v47, %v1301_v31  ;;  %v348_v56 = vrot.slane %v346_v48, 4  ;;  %v351_v57 = vrot.slane %v349_v49, 5  ;;  %v343_v60 = vrot.slane %v341_v46, 5  ;;  %v204_v47 = vld [vmem:[%s7916_s0 + $0x58] sm:$0xf] }
  0x40   :  { %v1316_v58 = vsel %vm6080_vm2, %v1311_v51, %v1315_v35  ;;  %v338_v59 = vor.u32 %v337_v53, %v334_v52  ;;  %v357_v61 = vrot.slane %v355_v50, 5  ;;  %v825_v5 = vshrl.u32 %v5182_v62, 16  ;;  %v5873_v49 = vld [vmem:[%s7916_s0 + $0xe0] ss:$8 sps:$4 sm:$0xff]   ;;  %v205_v51 = vld [vmem:[%s7916_s0 + $0x5c] sm:$0x1] }
  0x41   :  { %v5289_v63 = vcombine.low %v1302_v54, %v1316_v58  ;;  %v352_v0 = vor.u32 %v351_v57, %v348_v56  ;;  %v828_v6 = vshll.u32 %v5182_v62, 16  ;;  %v834_v7 = vshll.u32 %v5183_v1, 16  ;;  %v206_v52 = vld [vmem:[%s7916_s0 + $0x60] sm:$0xf]  ;;  %v207_v53 = vld [vmem:[%s7916_s0 + $0x64] sm:$0x1] }
  0x42   :  { %653 = vrot.lane.b32.xlu1 %v5866_v9, %s6002_s12  ;;  %v339_v4 = vrot.slane %v338_v59, 4  ;;  %v839_v9 = vshrl.u32 %v5184_v2, 16  ;;  %v842_v10 = vshll.u32 %v5184_v2, 16  ;;  %v848_v11 = vshll.u32 %v5185_v3, 16  ;;  %v5874_v2 = vld [vmem:[%s7916_s0 + $0xe8] ss:$8 sps:$4 sm:$0xff]  }
  0x43   :  { %966 = vrot.lane.b32.xlu0 %v5201_v37, %s6005_s23  ;;  %v353_v8 = vrot.slane %v352_v0, 4  ;;  %v827_v13 = vrot.slane %v825_v5, 4  ;;  %v830_v14 = vrot.slane %v828_v6, 5  ;;  %v836_v22 = vrot.slane %v834_v7, 5 }
  0x44   :  { %v344_v12 = vsel %vm6080_vm2, %v339_v4, %v343_v60  ;;  %v841_v17 = vrot.slane %v839_v9, 4  ;;  %v844_v18 = vrot.slane %v842_v10, 5  ;;  %v850_v23 = vrot.slane %v848_v11, 5  ;;  %v5186_v9 = vld [vmem:[%s7916_s0 + $0x178] sm:$0xf] }
  0x45   :  { %v358_v15 = vsel %vm6080_vm2, %v353_v8, %v357_v61  ;;  %v831_v21 = vor.u32 %v830_v14, %v827_v13  ;;  %v1318_v31 = vshrl.u32 %v5270_v24, 16  ;;  %v1321_v32 = vshll.u32 %v5270_v24, 16  ;;  %v5188_v13 = vld [vmem:[%s7916_s0 + $0x180] sm:$0xf]  ;;  %v5189_v14 = vld [vmem:[%s7916_s0 + $0x184] sm:$0x1] }
  0x46   :  { %1056 = vrot.lane.b32.xlu1 %v5867_v28, %s6003_s24  ;;  %v5114_v19 = vcombine.low %v344_v12, %v358_v15  ;;  %v845_v26 = vor.u32 %v844_v18, %v841_v17  ;;  %v5272_v28 = vld [vmem:[%s7916_s0 + $0x58] sm:$0xf]  ;;  %v1327_v33 = vshll.u32 %v5271_v27, 16  ;;  %v1341_v37 = vshll.u32 %v5273_v29, 16  ;;  %v5187_v12 = vld [vmem:[%s7916_s0 + $0x17c] sm:$0x1] }
  0x47   :  { %1146 = vrot.lane.b32.xlu0 %v5868_v38, %s6001_s11  ;;  %v832_v30 = vrot.slane %v831_v21, 4  ;;  %v1332_v35 = vshrl.u32 %v5272_v28, 16  ;;  %v1335_v36 = vshll.u32 %v5272_v28, 16  ;;  %v1320_v40 = vrot.slane %v1318_v31, 4  ;;  %v5875_v28 = vld [vmem:[%s7916_s0 + $0x178] ss:$8 sps:$4 sm:$0xff]  }
  0x48   :  { %v846_v34 = vrot.slane %v845_v26, 4  ;;  %v1323_v41 = vrot.slane %v1321_v32, 5  ;;  %v1329_v42 = vrot.slane %v1327_v33, 5  ;;  %v1343_v46 = vrot.slane %v1341_v37, 5  ;;  %v5876_v32 = vld [vmem:[%s7916_s0 + $0x208] ss:$8 sps:$4 sm:$0xff]  }
  0x49   :  { %v837_v38 = vsel %vm6080_vm2, %v832_v30, %v836_v22  ;;  %v1334_v44 = vrot.slane %v1332_v35, 4  ;;  %v1337_v45 = vrot.slane %v1335_v36, 5  ;;  %v363_v56 = vshll.u32 %v204_v47, 16  ;;  %v5274_v36 = vld [vmem:[%s7916_s0 + $0x60] sm:$0xf] }
  0x4a   :  { %1459 = vrot.lane.b32.xlu1 %v5289_v63, %s6006_s14  ;;  %v851_v43 = vsel %vm6080_vm2, %v846_v34, %v850_v23  ;;  %v1324_v50 = vor.u32 %v1323_v41, %v1320_v40  ;;  %v369_v57 = vshll.u32 %v205_v51, 16  ;;  %v374_v59 = vshrl.u32 %v206_v52, 16  ;;  %v5277_v40 = vld [vmem:[%s7916_s0 + $0x6c] sm:$0x1] }
  0x4b   :  { %159 = vrot.lane.b32.xlu0 %v5869_v55, %s5999_s22  ;;  %v5202_v48 = vcombine.low %v837_v38, %v851_v43  ;;  %v1338_v54 = vor.u32 %v1337_v45, %v1334_v44  ;;  %v360_v55 = vshrl.u32 %v204_v47, 16  ;;  %v377_v60 = vshll.u32 %v206_v52, 16  ;;  %v5275_v38 = vld [vmem:[%s7916_s0 + $0x64] sm:$0x1] }
  0x4c   :  { %v1325_v58 = vrot.slane %v1324_v50, 4  ;;  %v383_v61 = vshll.u32 %v207_v53, 16  ;;  %v365_v0 = vrot.slane %v363_v56, 5  ;;  %v376_v3 = vrot.slane %v374_v59, 4  ;;  %v5877_v50 = vld [vmem:[%s7916_s0 + $0x60] ss:$8 sps:$4 sm:$0xff]  }
  0x4d   :  { %v1339_v62 = vrot.slane %v1338_v54, 4  ;;  %v362_v63 = vrot.slane %v360_v55, 4  ;;  %v379_v4 = vrot.slane %v377_v60, 5  ;;  %v371_v7 = vrot.slane %v369_v57, 5  ;;  %v5878_v60 = vld [vmem:[%s7916_s0 + $0xf0] ss:$8 sps:$4 sm:$0xff]  }
  0x4e   :  { %475 = vrot.lane.b32.xlu1 %v5114_v19, %s6004_s13  ;;  %v1330_v1 = vsel %vm6080_vm2, %v1325_v58, %v1329_v42  ;;  %v385_v8 = vrot.slane %v383_v61, 5  ;;  %v856_v17 = vshll.u32 %v5186_v9, 16  ;;  %v862_v18 = vshll.u32 %v5187_v12, 16  ;;  %v208_v58 = vld [vmem:[%s7916_s0 + $0x68] sm:$0xf] }
  0x4f   :  { %565 = vrot.lane.b32.xlu0 %v5870_v16, %s6000_s25  ;;  %v1344_v5 = vsel %vm6080_vm2, %v1339_v62, %v1343_v46  ;;  %v366_v6 = vor.u32 %v365_v0, %v362_v63  ;;  %v380_v11 = vor.u32 %v379_v4, %v376_v3  ;;  %v853_v16 = vshrl.u32 %v5186_v9, 16  ;;  %v209_v62 = vld [vmem:[%s7916_s0 + $0x6c] sm:$0x1]  ;;  %v210_v63 = vld [vmem:[%s7916_s0 + $0x70] sm:$0xf] }
  0x50   :  { %v5290_v10 = vcombine.low %v1330_v1, %v1344_v5  ;;  %v870_v21 = vshll.u32 %v5188_v13, 16  ;;  %v876_v22 = vshll.u32 %v5189_v14, 16  ;;  %v858_v26 = vrot.slane %v856_v17, 5  ;;  %v211_v0 = vld [vmem:[%s7916_s0 + $0x74] sm:$0x1] }
  0x51   :  { %v367_v15 = vrot.slane %v366_v6, 4  ;;  %v381_v19 = vrot.slane %v380_v11, 4  ;;  %v855_v24 = vrot.slane %v853_v16, 4  ;;  %v864_v34 = vrot.slane %v862_v18, 5 }
  0x52   :  { %655 = vrot.lane.b32.xlu1 %v5871_v20, %s6002_s12  ;;  %v867_v20 = vshrl.u32 %v5188_v13, 16  ;;  %v872_v30 = vrot.slane %v870_v21, 5  ;;  %v878_v35 = vrot.slane %v876_v22, 5  ;;  %v1346_v42 = vshrl.u32 %v5274_v36, 16  ;;  %v5879_v13 = vld [vmem:[%s7916_s0 + $0xf8] ss:$8 sps:$4 sm:$0xff]  }
  0x53   :  { %968 = vrot.lane.b32.xlu0 %v5202_v48, %s6005_s23  ;;  %v372_v23 = vsel %vm6080_vm2, %v367_v15, %v371_v7  ;;  %v386_v27 = vsel %vm6080_vm2, %v381_v19, %v385_v8  ;;  %v859_v33 = vor.u32 %v858_v26, %v855_v24  ;;  %v1349_v43 = vshll.u32 %v5274_v36, 16  ;;  %v5192_v24 = vld [vmem:[%s7916_s0 + $0x190] sm:$0xf]  ;;  %v5193_v26 = vld [vmem:[%s7916_s0 + $0x194] sm:$0x1] }
  0x54   :  { %v869_v29 = vrot.slane %v867_v20, 4  ;;  %v5115_v31 = vcombine.low %v372_v23, %v386_v27  ;;  %v1355_v44 = vshll.u32 %v5275_v38, 16  ;;  %v1369_v48 = vshll.u32 %v5277_v40, 16  ;;  %v5190_v20 = vld [vmem:[%s7916_s0 + $0x188] sm:$0xf] }
  0x55   :  { %v860_v41 = vrot.slane %v859_v33, 4  ;;  %v1348_v51 = vrot.slane %v1346_v42, 4  ;;  %v1351_v52 = vrot.slane %v1349_v43, 5  ;;  %v391_v3 = vshll.u32 %v208_v58, 16  ;;  %v5191_v23 = vld [vmem:[%s7916_s0 + $0x18c] sm:$0x1] }
  0x56   :  { %1058 = vrot.lane.b32.xlu1 %v5872_v39, %s6003_s24  ;;  %v873_v37 = vor.u32 %v872_v30, %v869_v29  ;;  %v5276_v39 = vld [vmem:[%s7916_s0 + $0x68] sm:$0xf]  ;;  %v1357_v53 = vrot.slane %v1355_v44, 5  ;;  %v1371_v57 = vrot.slane %v1369_v48, 5  ;;  %v397_v4 = vshll.u32 %v209_v62, 16 }
  0x57   :  { %1148 = vrot.lane.b32.xlu0 %v5873_v49, %s6001_s11  ;;  %v1360_v46 = vshrl.u32 %v5276_v39, 16  ;;  %v1363_v47 = vshll.u32 %v5276_v39, 16  ;;  %v865_v49 = vsel %vm6080_vm2, %v860_v41, %v864_v34  ;;  %v1352_v61 = vor.u32 %v1351_v52, %v1348_v51  ;;  %v5880_v39 = vld [vmem:[%s7916_s0 + $0x188] ss:$8 sps:$4 sm:$0xff]   ;;  %v5881_v43 = vld [vmem:[%s7916_s0 + $0x218] ss:$8 sps:$4 sm:$0xff]  }
  0x58   :  { %v874_v45 = vrot.slane %v873_v37, 4  ;;  %v402_v6 = vshrl.u32 %v210_v63, 16  ;;  %v405_v7 = vshll.u32 %v210_v63, 16  ;;  %v411_v8 = vshll.u32 %v211_v0, 16  ;;  %v5281_v51 = vld [vmem:[%s7916_s0 + $0x7c] sm:$0x1] }
  0x59   :  { %v1362_v55 = vrot.slane %v1360_v46, 4  ;;  %v1365_v56 = vrot.slane %v1363_v47, 5  ;;  %v1353_v5 = vrot.slane %v1352_v61, 4  ;;  %v393_v11 = vrot.slane %v391_v3, 5  ;;  %v5278_v47 = vld [vmem:[%s7916_s0 + $0x70] sm:$0xf] }
  0x5a   :  { %1461 = vrot.lane.b32.xlu1 %v5290_v10, %s6006_s14  ;;  %v879_v54 = vsel %vm6080_vm2, %v874_v45, %v878_v35  ;;  %v404_v14 = vrot.slane %v402_v6, 4  ;;  %v407_v15 = vrot.slane %v405_v7, 5  ;;  %v399_v18 = vrot.slane %v397_v4, 5  ;;  %v5882_v61 = vld [vmem:[%s7916_s0 + $0x70] ss:$8 sps:$4 sm:$0xff]  }
  0x5b   :  { %161 = vrot.lane.b32.xlu0 %v5874_v2, %s5999_s22  ;;  %v5203_v59 = vcombine.low %v865_v49, %v879_v54  ;;  %v1366_v1 = vor.u32 %v1365_v56, %v1362_v55  ;;  %v388_v2 = vshrl.u32 %v208_v58, 16  ;;  %v1358_v12 = vsel %vm6080_vm2, %v1353_v5, %v1357_v53  ;;  %v5279_v49 = vld [vmem:[%s7916_s0 + $0x74] sm:$0x1]  ;;  %v212_v5 = vld [vmem:[%s7916_s0 + $0x78] sm:$0xf] }
  0x5c   :  { %v413_v19 = vrot.slane %v411_v8, 5  ;;  %v408_v22 = vor.u32 %v407_v15, %v404_v14  ;;  %v884_v29 = vshll.u32 %v5190_v20, 16  ;;  %v890_v30 = vshll.u32 %v5191_v23, 16  ;;  %v5883_v8 = vld [vmem:[%s7916_s0 + $0x100] ss:$8 sps:$4 sm:$0xff]  }
  0x5d   :  { %v1367_v9 = vrot.slane %v1366_v1, 4  ;;  %v390_v10 = vrot.slane %v388_v2, 4  ;;  %v898_v33 = vshll.u32 %v5192_v24, 16  ;;  %v904_v34 = vshll.u32 %v5193_v26, 16 }
  0x5e   :  { %477 = vrot.lane.b32.xlu1 %v5115_v31, %s6004_s13  ;;  %v409_v31 = vrot.slane %v408_v22, 4  ;;  %v886_v37 = vrot.slane %v884_v29, 5  ;;  %v892_v45 = vrot.slane %v890_v30, 5  ;;  %vm85_vm3 = vcmask 31744  }
  0x5f   :  { %567 = vrot.lane.b32.xlu0 %v5875_v28, %s6000_s25  ;;  %v1372_v16 = vsel %vm6080_vm2, %v1367_v9, %v1371_v57  ;;  %v394_v17 = vor.u32 %v393_v11, %v390_v10  ;;  %v881_v28 = vshrl.u32 %v5190_v20, 16  ;;  %v900_v41 = vrot.slane %v898_v33, 5  ;;  %v213_v10 = vld [vmem:[%s7916_s0 + $0x7c] sm:$0x1]  ;;  %v214_v11 = vld [vmem:[%s7916_s0 + $0x80] sm:$0xf] }
  0x60   :  { %v5291_v21 = vcombine.low %v1358_v12, %v1372_v16  ;;  %v414_v38 = vsel %vm6080_vm2, %v409_v31, %v413_v19  ;;  %v906_v46 = vrot.slane %v904_v34, 5  ;;  %v1374_v53 = vshrl.u32 %v5278_v47, 16  ;;  %v215_v12 = vld [vmem:[%s7916_s0 + $0x84] sm:$0x1] }
  0x61   :  { %v395_v27 = vrot.slane %v394_v17, 4  ;;  %v883_v36 = vrot.slane %v881_v28, 4  ;;  %v1377_v54 = vshll.u32 %v5278_v47, 16  ;;  %v1383_v55 = vshll.u32 %v5279_v49, 16  ;;  %v5884_v28 = vld [vmem:[%s7916_s0 + $0x108] ss:$8 sps:$4 sm:$0xff]  }
  0x62   :  { %657 = vrot.lane.b32.xlu1 %v5876_v32, %s6002_s12  ;;  %v895_v32 = vshrl.u32 %v5192_v24, 16  ;;  %v1376_v62 = vrot.slane %v1374_v53, 4  ;;  %v416_v14 = vshrl.u32 %v212_v5, 16  ;;  %v419_v15 = vshll.u32 %v212_v5, 16  ;;  %v5885_v24 = vld [vmem:[%s7916_s0] ss:$8 sps:$4 sm:$0xff]  }
  0x63   :  { %970 = vrot.lane.b32.xlu0 %v5203_v59, %s6005_s23  ;;  %v400_v35 = vsel %vm6080_vm2, %v395_v27, %v399_v18  ;;  %v887_v44 = vor.u32 %v886_v37, %v883_v36  ;;  %v1397_v59 = vshll.u32 %v5281_v51, 16  ;;  %v1379_v63 = vrot.slane %v1377_v54, 5  ;;  %86 = vst.msk [vmem:[#allocation2] sm:$0xff] %vm85_vm3, %v5885_v24  ;;  %v1494_v53 = vld [vmem:[%s7917_s1] sm:$0xff] }
  0x64   :  { %v897_v40 = vrot.slane %v895_v32, 4  ;;  %v5116_v42 = vcombine.low %v400_v35, %v414_v38  ;;  %v1385_v0 = vrot.slane %v1383_v55, 5  ;;  %v425_v16 = vshll.u32 %v213_v10, 16  ;;  %v5194_v38 = vld [vmem:[%s7916_s0 + $0x198] sm:$0xf] }
  0x65   :  { %v888_v52 = vrot.slane %v887_v44, 4  ;;  %v1399_v4 = vrot.slane %v1397_v59, 5  ;;  %v1380_v9 = vor.u32 %v1379_v63, %v1376_v62  ;;  %v430_v18 = vshrl.u32 %v214_v11, 16  ;;  %v5197_v44 = vld [vmem:[%s7916_s0 + $0x1a4] sm:$0x1]  ;;  %v1495_v63 = vld [vmem:[%s7917_s1 + $0x8] sm:$0xff] }
  0x66   :  { %1060 = vrot.lane.b32.xlu1 %v5877_v50, %s6003_s24  ;;  %v901_v48 = vor.u32 %v900_v41, %v897_v40  ;;  %v5280_v50 = vld [vmem:[%s7916_s0 + $0x78] sm:$0xf]  ;;  %v433_v19 = vshll.u32 %v214_v11, 16  ;;  %v439_v20 = vshll.u32 %v215_v12, 16  ;;  %v418_v22 = vrot.slane %v416_v14, 4 }
  0x67   :  { %1150 = vrot.lane.b32.xlu0 %v5878_v60, %s6001_s11  ;;  %v1388_v57 = vshrl.u32 %v5280_v50, 16  ;;  %v1391_v58 = vshll.u32 %v5280_v50, 16  ;;  %v893_v60 = vsel %vm6080_vm2, %v888_v52, %v892_v45  ;;  %v1381_v17 = vrot.slane %v1380_v9, 4  ;;  %v5195_v40 = vld [vmem:[%s7916_s0 + $0x19c] sm:$0x1] }
  0x68   :  { %v902_v56 = vrot.slane %v901_v48, 4  ;;  %v421_v23 = vrot.slane %v419_v15, 5  ;;  %vm175_vm4 = vcmask 64544   ;;  %v432_v29 = vrot.slane %v430_v18, 4  ;;  %v5196_v41 = vld [vmem:[%s7916_s0 + $0x1a0] sm:$0xf] }
  0x69   :  { %v1390_v2 = vrot.slane %v1388_v57, 4  ;;  %v1393_v3 = vrot.slane %v1391_v58, 5  ;;  %v1386_v27 = vsel %vm6080_vm2, %v1381_v17, %v1385_v0  ;;  %v435_v30 = vrot.slane %v433_v19, 5  ;;  %v5886_v55 = vld [vmem:[%s7916_s0 + $0x198] ss:$8 sps:$4 sm:$0xff]  }
  0x6a   :  { %1463 = vrot.lane.b32.xlu1 %v5291_v21, %s6006_s14  ;;  %v907_v1 = vsel %vm6080_vm2, %v902_v56, %v906_v46  ;;  %v422_v32 = vor.u32 %v421_v23, %v418_v22  ;;  %v427_v33 = vrot.slane %v425_v16, 5  ;;  %v441_v37 = vrot.slane %v439_v20, 5  ;;  %v5887_v59 = vld [vmem:[%s7916_s0 + $0x228] ss:$8 sps:$4 sm:$0xff]   ;;  %v5283_v5 = vld [vmem:[%s7916_s0 + $0x84] sm:$0x1] }
  0x6b   :  { %163 = vrot.lane.b32.xlu0 %v5879_v13, %s5999_s22  ;;  %v5204_v7 = vcombine.low %v893_v60, %v907_v1  ;;  %v1394_v13 = vor.u32 %v1393_v3, %v1390_v2  ;;  %v436_v36 = vor.u32 %v435_v30, %v432_v29  ;;  %v912_v45 = vshll.u32 %v5194_v38, 16  ;;  %v6596_v1 = vld [vmem:[%s7917_s1 + $0x10] sm:$0xff]  ;;  %v5285_v9 = vld [vmem:[%s7916_s0 + $0x8c] sm:$0x1] }
  0x6c   :  { %v918_v46 = vshll.u32 %v5195_v40, 16  ;;  %v923_v47 = vshrl.u32 %v5196_v41, 16  ;;  %v926_v51 = vshll.u32 %v5196_v41, 16  ;;  %v932_v52 = vshll.u32 %v5197_v44, 16  ;;  %v5890_v17 = vld [vmem:[%s7917_s1 + $0x4] ss:$8 sps:$4 sm:$0xff]  }
  0x6d   :  { %v1395_v21 = vrot.slane %v1394_v13, 4  ;;  %v914_v56 = vrot.slane %v912_v45, 5  ;;  %vm491_vm5 = vcmask 97344   ;;  %vm581_vm6 = vcmask 130144   ;;  %v5892_v23 = vld [vmem:[%s7917_s1 + $0x14] ss:$8 sps:$4 sm:$0xff]   ;;  %1556 = vmatprep.subr.bf16.mxu0 %v5890_v17 }
  0x6e   :  { %479 = vrot.lane.b32.xlu1 %v5116_v42, %s6004_s13  ;;  %v909_v42 = vshrl.u32 %v5194_v38, 16  ;;  %v925_v57 = vrot.slane %v923_v47, 4  ;;  %v920_v60 = vrot.slane %v918_v46, 5  ;;  %vm671_vm7 = vcmask 162944   ;;  %v1498_v40 = vld [vmem:[%s7917_s1 + $0x20] sm:$0x33] }
  0x6f   :  { %569 = vrot.lane.b32.xlu0 %v5880_v39, %s6000_s25  ;;  %v1400_v31 = vsel %vm6080_vm2, %v1395_v21, %v1399_v4  ;;  %v423_v39 = vrot.slane %v422_v32, 4  ;;  %v934_v3 = vrot.slane %v932_v52, 5  ;;  %v5282_v4 = vld [vmem:[%s7916_s0 + $0x80] sm:$0xf]  ;;  %v5294_v11 = vcombine.low %v1494_v53, %v1495_v63  ;;  %v5898_v52 = vld [vmem:[%s7916_s0 + $0x48] ss:$8 sps:$4 sm:$0xff]  }
  0x70   :  { %v5292_v35 = vcombine.low %v1386_v27, %v1400_v31  ;;  %v911_v50 = vrot.slane %v909_v42, 4  ;;  %v1402_v10 = vshrl.u32 %v5282_v4, 16  ;;  %v1405_v14 = vshll.u32 %v5282_v4, 16  ;;  %v5889_v31 = vld [vmem:[%s7916_s0 + $0x110] ss:$8 sps:$4 sm:$0xff]   ;;  %90 = vst.msk [vmem:[#allocation2 + $0x20] sm:$0xff] %vm85_vm3, %v5898_v52 }
  0x71   :  { %v428_v48 = vsel %vm6080_vm2, %v423_v39, %v427_v33  ;;  %v1411_v15 = vshll.u32 %v5283_v5, 16  ;;  %v1425_v21 = vshll.u32 %v5285_v9, 16  ;;  %vm984_vm8 = vcmask 195744   ;;  %1557 = vmatpush1.bf16.msra.mxu0 %v5294_v11  ;;  %v5896_v46 = vld [vmem:[%s7916_s0 + $0x20] ss:$8 sps:$4 sm:$0xff]  }
  0x72   :  { %659 = vrot.lane.b32.xlu1 %v5881_v43, %s6002_s12  ;;  %v437_v43 = vrot.slane %v436_v36, 4  ;;  %v915_v0 = vor.u32 %v914_v56, %v911_v50  ;;  %v1404_v19 = vrot.slane %v1402_v10, 4  ;;  %v1407_v27 = vrot.slane %v1405_v14, 5  ;;  %1558 = vmatprep.subr.bf16.mxu0 %v5892_v23  ;;  %v5894_v36 = vld [vmem:[%s7916_s0 + $0x10] ss:$8 sps:$4 sm:$0xff]   ;;  %v5902_v50 = vld [vmem:[%s7918_s3 + $0xc0] sm:$0xff]  }
  0x73   :  { %972 = vrot.lane.b32.xlu0 %v5204_v7, %s6005_s23  ;;  %v1413_v32 = vrot.slane %v1411_v15, 5  ;;  %vm1074_vm9 = vcmask 228544   ;;  %vm1164_vm10 = vcmask 261344   ;;  %vm1477_vm11 = vcmask 294144   ;;  %87 = vst.msk [vmem:[#allocation2 + $0x8] sm:$0xff] %vm85_vm3, %v5894_v36  ;;  %88 = vst.msk [vmem:[#allocation2 + $0x10] sm:$0xff] %vm85_vm3, %v5896_v46 }
  0x74   :  { %v152_v6 = vpop.permute.xlu0 %151  ;;  %v558_v26 = vpop.permute.xlu1 %557  ;;  %v442_v54 = vsel %vm6080_vm2, %v437_v43, %v441_v37  ;;  %v916_v7 = vrot.slane %v915_v0, 4  ;;  %v1427_v38 = vrot.slane %v1425_v21, 5  ;;  %vm1549_vm12 = vcmask 1041408  }
  0x75   :  { %176 = vst.msk [vmem:[#allocation2] sm:$0xff] %vm175_vm4, %v152_v6  ;;  %v5117_v58 = vcombine.low %v428_v48, %v442_v54  ;;  %v6609_v6 = vld [vmem:[%s7917_s1 + $0x18] sm:$0xff]  ;;  %v5299_v43 = vcombine.high %v1498_v40, %v1498_v40  ;;  %v5298_v44 = vcombine.low %v1498_v40, %v1498_v40  ;;  %v6007_v45 = vmov 0  }
  0x76   :  { %1062 = vrot.lane.b32.xlu1 %v5882_v61, %s6003_s24  ;;  %v928_v61 = vrot.slane %v926_v51, 5  ;;  %v921_v18 = vsel %vm6080_vm2, %v916_v7, %v920_v60  ;;  %v5296_v29 = vcombine.low %v6596_v1, %v6609_v6  ;;  %1588 = vmatprep.mubr.bf16.mxu0 %v6007_v45  ;;  %1838 = vst [vmem:[#allocation3] sm:$0xf] %v6007_v45  ;;  %1839 = vst [vmem:[#allocation3 + $0x4] sm:$0x1] %v6007_v45  ;;  %vm1524_vm13 = vcmask 293888  }
  0x77   :  { %1152 = vrot.lane.b32.xlu0 %v5883_v8, %s6001_s11  ;;  %v5284_v8 = vld [vmem:[%s7916_s0 + $0x88] sm:$0xf]  ;;  %1840 = vst [vmem:[#allocation3 + $0x50] sm:$0xf] %v6007_v45  ;;  %1841 = vst [vmem:[#allocation3 + $0x54] sm:$0x1] %v6007_v45 }
  0x78   :  { %v6558_v34 = vpop.permute.xlu0 %1140  ;;  %v648_v49 = vpop.permute.xlu1 %647  ;;  %v929_v2 = vor.u32 %v928_v61, %v925_v57  ;;  %v1416_v16 = vshrl.u32 %v5284_v8, 16  ;;  %v1419_v20 = vshll.u32 %v5284_v8, 16  ;;  %1843 = vst [vmem:[#allocation3 + $0x48] sm:$0xf] %v6007_v45  ;;  %1844 = vst [vmem:[#allocation3 + $0x4c] sm:$0x1] %v6007_v45  ;;  %1559 = vmatpush1.bf16.msra.mxu0 %v5296_v29 }
  0x79   :  { %1845 = vst [vmem:[#allocation3 + $0x98] sm:$0xf] %v6007_v45  ;;  %1846 = vst [vmem:[#allocation3 + $0x9c] sm:$0x1] %v6007_v45  ;;  %5300 = vmatprep.subr.msk.bf16.mxu0 %vm1549_vm12, %v5299_v43  ;;  %v1551_v48 = vsel %vm1549_vm12, %v5298_v44, 0  ;;  %v5903_v60 = vld [vmem:[%s7918_s3 + $0x80] sm:$0xff]   ;;  %v1671_v44 = vlaneseq }
  0x7a   :  { %1465 = vrot.lane.b32.xlu1 %v5292_v35, %s6006_s14  ;;  %v930_v12 = vrot.slane %v929_v2, 4  ;;  %v1421_v33 = vrot.slane %v1419_v20, 5  ;;  %v1408_v35 = vor.u32 %v1407_v27, %v1404_v19  ;;  %v5900_v57 = vld [vmem:[%s7916_s0 + $0x68] ss:$8 sps:$4 sm:$0xff]   ;;  %vm1848_vm14 = vcmask 1040384  }
  0x7b   :  { %165 = vrot.lane.b32.xlu0 %v5884_v28, %s5999_s22  ;;  %v1418_v28 = vrot.slane %v1416_v16, 4  ;;  %92 = vst.msk [vmem:[#allocation2 + $0x30] sm:$0xff] %vm85_vm3, %v5900_v57  ;;  %vm1849_vm15 = vsmask.f32 256  ;;  %vm1899_vm1 = vsmask.f32 7938 }
  0x7c   :  { %v1051_v13 = vpop.permute.xlu1 %1050  ;;  %v935_v24 = vsel %vm6080_vm2, %v930_v12, %v934_v3  ;;  %v1409_v41 = vrot.slane %v1408_v35, 4  ;;  %1561 = vmatpush1.bf16.msra.mxu0 %v1551_v48  ;;  %vm6765_vm0 = vmand %vm1848_vm14, %vm1849_vm15 }
  0x7d   :  { %v5205_v30 = vcombine.low %v921_v18, %v935_v24  ;;  %v1422_v37 = vor.u32 %v1421_v33, %v1418_v28  ;;  %5600 = vmatprep.subr.bf16.mxu0 %v5902_v50 }
  0x7e   :  { %481 = vrot.lane.b32.xlu1 %v5117_v58, %s6004_s13  ;;  %v1414_v47 = vsel %vm6080_vm2, %v1409_v41, %v1413_v32  ;;  %v5901_v58 = vld [vmem:[%s7916_s0 + $0x78] ss:$8 sps:$4 sm:$0xff]  }
  0x7f   :  { %571 = vrot.lane.b32.xlu0 %v5886_v55, %s6000_s25  ;;  %v5899_v55 = vld [vmem:[%s7916_s0 + $0x58] ss:$8 sps:$4 sm:$0xff]   ;;  %93 = vst.msk [vmem:[#allocation2 + $0x38] sm:$0xff] %vm85_vm3, %v5901_v58 }
  0x80   :  { %91 = vst.msk [vmem:[#allocation2 + $0x28] sm:$0xff] %vm85_vm3, %v5899_v55 }
  0x81   :  { %v468_v62 = vpop.permute.xlu0 %467 }
  0x82   :  { %492 = vst.msk [vmem:[#allocation2] sm:$0xff] %vm491_vm5, %v468_v62  ;;  %661 = vrot.lane.b32.xlu1 %v5887_v59, %s6002_s12 }
  0x83   :  { %582 = vst.msk [vmem:[#allocation2] sm:$0xff] %vm581_vm6, %v558_v26  ;;  %v5888_v26 = vld [vmem:[%s7916_s0 + $0x80] ss:$8 sps:$4 sm:$0xff]   ;;  %974 = vrot.lane.b32.xlu0 %v5205_v30, %s6005_s23 }
  0x84   :  { %672 = vst.msk [vmem:[#allocation2] sm:$0xff] %vm671_vm7, %v648_v49  ;;  %v5897_v49 = vld [vmem:[%s7916_s0 + $0x30] ss:$8 sps:$4 sm:$0xff]  }
  0x85   :  { %89 = vst.msk [vmem:[#allocation2 + $0x18] sm:$0xff] %vm85_vm3, %v5897_v49  ;;  %v6762_v49 = vld [vmem:[%s7919_s2] ss:$2 sm:$0x3]  ;;  %vm6778_vm3 = vmand %vm1848_vm14, %vm1899_vm1 }
  0x86   :  { %v961_v22 = vpop.permute.xlu0 %960  ;;  %1064 = vrot.lane.b32.xlu1 %v5888_v26, %s6003_s24 }
  0x87   :  { %985 = vst.msk [vmem:[#allocation2] sm:$0xff] %vm984_vm8, %v961_v22  ;;  %1154 = vrot.lane.b32.xlu0 %v5889_v31, %s6001_s11 }
  0x88   :  { %1075 = vst.msk [vmem:[#allocation2] sm:$0xff] %vm1074_vm9, %v1051_v13 }
  0x89   :  { %1165 = vst.msk [vmem:[#allocation2] sm:$0xff] %vm1164_vm10, %v6558_v34  ;;  %v1423_v34 = vrot.slane %v1422_v37, 4 }
  0x8a   :  { %v154_v39 = vpop.permute.xlu0 %153 }
  0x8b   :  { %v1454_v42 = vpop.permute.xlu1 %1453  ;;  %177 = vst.msk [vmem:[#allocation2 + $0x8] sm:$0xff] %vm175_vm4, %v154_v39  ;;  %v1428_v51 = vsel %vm6080_vm2, %v1423_v34, %v1427_v38 }
  0x8c   :  { %1478 = vst.msk [vmem:[#allocation2] sm:$0xff] %vm1477_vm11, %v1454_v42  ;;  %v5293_v53 = vcombine.low %v1414_v47, %v1428_v51  ;;  %v6756_v47 = vshrl.u32 %v1671_v44, 7  ;;  %v1851_v51 = vld [vmem:[#allocation3 + $0x8] sm:$0x1]  ;;  %v5928_v44 = vld [vmem:[%s7918_s3 + $0xf8] sm:$0xff]  }
  0x8d   :  { %v1852_v57 = vsel %vm6765_vm0, 0, %v1851_v51  ;;  %v1863_v51 = vld [vmem:[#allocation3 + $0x28] sm:$0x1] }
  0x8e   :  { %v560_v54 = vpop.permute.xlu0 %559  ;;  %1467 = vrot.lane.b32.xlu1 %v5293_v53, %s6006_s14  ;;  %v1901_v53 = vld [vmem:[#allocation3 + $0xc] sm:$0x1]  ;;  %1853 = vst [vmem:[#allocation3 + $0x8] sm:$0x1] %v1852_v57  ;;  %v5934_v57 = vld [vmem:[%s7918_s3 + $0x38] sm:$0xff]  }
  0x90   :  { %v470_v56 = vpop.permute.xlu1 %469 }
  0x91   :  { %493 = vst.msk [vmem:[#allocation2 + $0x8] sm:$0xff] %vm491_vm5, %v470_v56  ;;  %v6773_v56 = vld [vmem:[%s7919_s2 + $0x1] ss:$2 sm:$0x3] }
  0x92   :  { %583 = vst.msk [vmem:[#allocation2 + $0x8] sm:$0xff] %vm581_vm6, %v560_v54  ;;  %v1677_v54 = vsub.s32 1, %v6756_v47 }
  0x93   :  { %v1486_v59 = vld [vmem:[#allocation2] sm:$0xff] }
  0x94   :  { %v650_v61 = vpop.permute.xlu1 %649  ;;  %5301 = vmatmul.mubr.msk.bf16.vlgmr.msra.gmra.mrb[0].mxu0 %vm1524_vm13, %v1486_v59  ;;  %v5904_v59 = vld [vmem:[%s7918_s3 + $0xc8] sm:$0xff]  }
  0x95   :  { %673 = vst.msk [vmem:[#allocation2 + $0x8] sm:$0xff] %vm671_vm7, %v650_v61  ;;  %v963_v62 = vpop.permute.xlu0 %962  ;;  %1598 = vmatprep.mubr.bf16.mxu0 %v6007_v45  ;;  %5601 = vmatpush3.bf16.msra.mxu0 %v5903_v60  ;;  %v1902_v60 = vsel %vm6778_vm3, 0, %v1901_v53  ;;  %v6789_v61 = vrot.slane %v6762_v49, %v1677_v54  ;;  %v1864_v53 = vsel %vm6765_vm0, 0, %v1863_v51 }
  0x96   :  { %986 = vst.msk [vmem:[#allocation2 + $0x8] sm:$0xff] %vm984_vm8, %v963_v62  ;;  %v5905_v62 = vld [vmem:[%s7918_s3 + $0x88] sm:$0xff]   ;;  %1903 = vst [vmem:[#allocation3 + $0xc] sm:$0x1] %v1902_v60  ;;  %5602 = vmatprep.subr.bf16.mxu0 %v5904_v59  ;;  %v1866_v60 = vld [vmem:[#allocation3 + $0x30] sm:$0x1] }
  0x97   :  { %1865 = vst [vmem:[#allocation3 + $0x28] sm:$0x1] %v1864_v53 }
  0x98   :  { %v1053_v63 = vpop.permute.xlu1 %1052 }
  0x99   :  { %1076 = vst.msk [vmem:[#allocation2 + $0x8] sm:$0xff] %vm1074_vm9, %v1053_v63  ;;  %v1143_v0 = vpop.permute.xlu0 %1142  ;;  %5603 = vmatpush3.bf16.msra.mxu0 %v5905_v62  ;;  %v1916_v62 = vld [vmem:[#allocation3 + $0x34] sm:$0x1] }
  0x9a   :  { %1166 = vst.msk [vmem:[#allocation2 + $0x8] sm:$0xff] %vm1164_vm10, %v1143_v0  ;;  %v6796_v0 = vrot.slane %v6773_v56, %v1677_v54  ;;  %v1913_v54 = vld [vmem:[#allocation3 + $0x2c] sm:$0x1] }
  0x9b   :  { %v1914_v59 = vsel %vm6778_vm3, 0, %v1913_v54 }
  0x9c   :  { %v1456_v1 = vpop.permute.xlu1 %1455  ;;  %1915 = vst [vmem:[#allocation3 + $0x2c] sm:$0x1] %v1914_v59 }
  0x9d   :  { %1479 = vst.msk [vmem:[#allocation2 + $0x8] sm:$0xff] %vm1477_vm11, %v1456_v1  ;;  %v156_v2 = vpop.permute.xlu0 %155  ;;  %v5906_v1 = vld [vmem:[%s7918_s3 + $0x40] sm:$0xff]  }
  0x9e   :  { %178 = vst.msk [vmem:[#allocation2 + $0x10] sm:$0xff] %vm175_vm4, %v156_v2  ;;  %v5907_v2 = vld [vmem:[%s7918_s3] sm:$0xff]   ;;  %5536 = vmatprep.subr.bf16.mxu1 %v5906_v1  ;;  %v1917_v1 = vsel %vm6778_vm3, 0, %v1916_v62 }
  0x9f   :  { %5537 = vmatpush3.bf16.msra.mxu1 %v5907_v2  ;;  %1918 = vst [vmem:[#allocation3 + $0x34] sm:$0x1] %v1917_v1  ;;  %v1869_v2 = vld [vmem:[#allocation3 + $0x38] sm:$0x1] }
  0xa0   :  { %v472_v3 = vpop.permute.xlu1 %471 }
  0xa1   :  { %494 = vst.msk [vmem:[#allocation2 + $0x10] sm:$0xff] %vm491_vm5, %v472_v3  ;;  %v562_v4 = vpop.permute.xlu0 %561  ;;  %v5908_v3 = vld [vmem:[%s7918_s3 + $0xd0] sm:$0xff]  }
  0xa2   :  { %584 = vst.msk [vmem:[#allocation2 + $0x10] sm:$0xff] %vm581_vm6, %v562_v4  ;;  %5604 = vmatprep.subr.bf16.mxu0 %v5908_v3  ;;  %v1919_v3 = vld [vmem:[#allocation3 + $0x3c] sm:$0x1] }
  0xa4   :  { %v652_v5 = vpop.permute.xlu1 %651  ;;  %v1487_v6 = vld [vmem:[#allocation2 + $0x8] sm:$0xff] }
  0xa5   :  { %674 = vst.msk [vmem:[#allocation2 + $0x10] sm:$0xff] %vm671_vm7, %v652_v5  ;;  %5302 = vmatmul.mubr.msk.bf16.gmra.mrb[4].mxu0 %vm1524_vm13, %v1487_v6  ;;  %v965_v7 = vpop.permute.xlu0 %964  ;;  %v5909_v5 = vld [vmem:[%s7918_s3 + $0x90] sm:$0xff]  }
  0xa6   :  { %1608 = vmatprep.mubr.bf16.mxu0 %v6007_v45  ;;  %987 = vst.msk [vmem:[#allocation2 + $0x10] sm:$0xff] %vm984_vm8, %v965_v7  ;;  %v1854_v7 = vld [vmem:[#allocation3 + $0x10] sm:$0x1]  ;;  %5605 = vmatpush3.bf16.msra.mxu0 %v5909_v5  ;;  %v1920_v5 = vsel %vm6778_vm3, 0, %v1919_v3 }
  0xa7   :  { %1921 = vst [vmem:[#allocation3 + $0x3c] sm:$0x1] %v1920_v5 }
  0xa8   :  { %v1055_v8 = vpop.permute.xlu1 %1054 }
  0xa9   :  { %1077 = vst.msk [vmem:[#allocation2 + $0x10] sm:$0xff] %vm1074_vm9, %v1055_v8  ;;  %v1145_v9 = vpop.permute.xlu0 %1144  ;;  %v1904_v8 = vld [vmem:[#allocation3 + $0x14] sm:$0x1] }
  0xaa   :  { %1167 = vst.msk [vmem:[#allocation2 + $0x10] sm:$0xff] %vm1164_vm10, %v1145_v9  ;;  %v5910_v9 = vld [vmem:[%s7918_s3 + $0x48] sm:$0xff]  }
  0xab   :  { %5538 = vmatprep.subr.bf16.mxu1 %v5910_v9 }
  0xac   :  { %v1458_v10 = vpop.permute.xlu1 %1457 }
  0xad   :  { %1480 = vst.msk [vmem:[#allocation2 + $0x10] sm:$0xff] %vm1477_vm11, %v1458_v10  ;;  %v158_v11 = vpop.permute.xlu0 %157 }
  0xae   :  { %179 = vst.msk [vmem:[#allocation2 + $0x18] sm:$0xff] %vm175_vm4, %v158_v11  ;;  %v1855_v11 = vsel %vm6765_vm0, 0, %v1854_v7  ;;  %v1922_v7 = vld [vmem:[#allocation3 + $0x44] sm:$0x1] }
  0xaf   :  { %1856 = vst [vmem:[#allocation3 + $0x10] sm:$0x1] %v1855_v11  ;;  %v1923_v9 = vsel %vm6778_vm3, 0, %v1922_v7  ;;  %v1925_v11 = vld [vmem:[#allocation3 + $0x5c] sm:$0x1] }
  0xb0   :  { %v474_v12 = vpop.permute.xlu1 %473  ;;  %1924 = vst [vmem:[#allocation3 + $0x44] sm:$0x1] %v1923_v9  ;;  %v2114_v9 = vld [vmem:[#allocation3 + $0xc] sm:$0x1] }
  0xb1   :  { %495 = vst.msk [vmem:[#allocation2 + $0x18] sm:$0xff] %vm491_vm5, %v474_v12  ;;  %v564_v13 = vpop.permute.xlu0 %563  ;;  %v1905_v12 = vsel %vm6778_vm3, 0, %v1904_v8 }
  0xb2   :  { %585 = vst.msk [vmem:[#allocation2 + $0x18] sm:$0xff] %vm581_vm6, %v564_v13  ;;  %v5911_v13 = vld [vmem:[%s7918_s3 + $0x8] sm:$0xff]   ;;  %1906 = vst [vmem:[#allocation3 + $0x14] sm:$0x1] %v1905_v12 }
  0xb3   :  { %5539 = vmatpush3.bf16.msra.mxu1 %v5911_v13  ;;  %v1926_v13 = vsel %vm6778_vm3, 0, %v1925_v11 }
  0xb4   :  { %v1488_v14 = vld [vmem:[#allocation2 + $0x10] sm:$0xff]  ;;  %v654_v15 = vpop.permute.xlu1 %653  ;;  %1927 = vst [vmem:[#allocation3 + $0x5c] sm:$0x1] %v1926_v13 }
  0xb5   :  { %5303 = vmatmul.mubr.msk.bf16.gmra.mrb[8].mxu0 %vm1524_vm13, %v1488_v14  ;;  %675 = vst.msk [vmem:[#allocation2 + $0x18] sm:$0xff] %vm671_vm7, %v654_v15  ;;  %v967_v16 = vpop.permute.xlu0 %966  ;;  %v5912_v15 = vld [vmem:[%s7918_s3 + $0xd8] sm:$0xff]  }
  0xb6   :  { %1618 = vmatprep.mubr.bf16.mxu0 %v6007_v45  ;;  %988 = vst.msk [vmem:[#allocation2 + $0x18] sm:$0xff] %vm984_vm8, %v967_v16  ;;  %v5913_v16 = vld [vmem:[%s7918_s3 + $0x98] sm:$0xff]   ;;  %5606 = vmatprep.subr.bf16.mxu0 %v5912_v15  ;;  %v1928_v15 = vld [vmem:[#allocation3 + $0x64] sm:$0x1] }
  0xb7   :  { %5607 = vmatpush3.bf16.msra.mxu0 %v5913_v16 }
  0xb8   :  { %v1057_v17 = vpop.permute.xlu1 %1056 }
  0xb9   :  { %1078 = vst.msk [vmem:[#allocation2 + $0x18] sm:$0xff] %vm1074_vm9, %v1057_v17  ;;  %v1147_v18 = vpop.permute.xlu0 %1146  ;;  %v5914_v17 = vld [vmem:[%s7918_s3 + $0x50] sm:$0xff]  }
  0xba   :  { %1168 = vst.msk [vmem:[#allocation2 + $0x18] sm:$0xff] %vm1164_vm10, %v1147_v18  ;;  %v5915_v18 = vld [vmem:[%s7918_s3 + $0x10] sm:$0xff]   ;;  %5540 = vmatprep.subr.bf16.mxu1 %v5914_v17  ;;  %v1929_v17 = vsel %vm6778_vm3, 0, %v1928_v15 }
  0xbb   :  { %5541 = vmatpush3.bf16.msra.mxu1 %v5915_v18  ;;  %1930 = vst [vmem:[#allocation3 + $0x64] sm:$0x1] %v1929_v17  ;;  %v1881_v18 = vld [vmem:[#allocation3 + $0x68] sm:$0x1]  ;;  %v2120_v15 = vld [vmem:[#allocation3 + $0x14] sm:$0x1] }
  0xbc   :  { %v1460_v19 = vpop.permute.xlu1 %1459 }
  0xbd   :  { %1481 = vst.msk [vmem:[#allocation2 + $0x18] sm:$0xff] %vm1477_vm11, %v1460_v19  ;;  %v160_v20 = vpop.permute.xlu0 %159  ;;  %v5916_v19 = vld [vmem:[%s7918_s3 + $0xe0] sm:$0xff]  }
  0xbe   :  { %180 = vst.msk [vmem:[#allocation2 + $0x20] sm:$0xff] %vm175_vm4, %v160_v20  ;;  %5608 = vmatprep.subr.bf16.mxu0 %v5916_v19  ;;  %v1931_v19 = vld [vmem:[#allocation3 + $0x6c] sm:$0x1] }
  0xc0   :  { %v476_v21 = vpop.permute.xlu1 %475 }
  0xc1   :  { %496 = vst.msk [vmem:[#allocation2 + $0x20] sm:$0xff] %vm491_vm5, %v476_v21  ;;  %v566_v22 = vpop.permute.xlu0 %565  ;;  %v5917_v21 = vld [vmem:[%s7918_s3 + $0xa0] sm:$0xff]  }
  0xc2   :  { %586 = vst.msk [vmem:[#allocation2 + $0x20] sm:$0xff] %vm581_vm6, %v566_v22  ;;  %v1857_v22 = vld [vmem:[#allocation3 + $0x18] sm:$0x1]  ;;  %5609 = vmatpush3.bf16.msra.mxu0 %v5917_v21  ;;  %v1884_v21 = vld [vmem:[#allocation3 + $0x70] sm:$0x1] }
  0xc4   :  { %v1489_v23 = vld [vmem:[#allocation2 + $0x18] sm:$0xff]  ;;  %v656_v24 = vpop.permute.xlu1 %655 }
  0xc5   :  { %5304 = vmatmul.mubr.msk.bf16.gmra.mrb[12].mxu0 %vm1524_vm13, %v1489_v23  ;;  %676 = vst.msk [vmem:[#allocation2 + $0x20] sm:$0xff] %vm671_vm7, %v656_v24  ;;  %v969_v26 = vpop.permute.xlu0 %968  ;;  %v1907_v23 = vld [vmem:[#allocation3 + $0x1c] sm:$0x1] }
  0xc6   :  { %1628 = vmatprep.mubr.bf16.mxu0 %v6007_v45  ;;  %989 = vst.msk [vmem:[#allocation2 + $0x20] sm:$0xff] %vm984_vm8, %v969_v26  ;;  %v5918_v24 = vld [vmem:[%s7918_s3 + $0x58] sm:$0xff]  }
  0xc7   :  { %5542 = vmatprep.subr.bf16.mxu1 %v5918_v24 }
  0xc8   :  { %v1059_v27 = vpop.permute.xlu1 %1058 }
  0xc9   :  { %1079 = vst.msk [vmem:[#allocation2 + $0x20] sm:$0xff] %vm1074_vm9, %v1059_v27  ;;  %v1149_v28 = vpop.permute.xlu0 %1148  ;;  %v1858_v27 = vsel %vm6765_vm0, 0, %v1857_v22  ;;  %v1934_v22 = vld [vmem:[#allocation3 + $0x74] sm:$0x1] }
  0xca   :  { %1169 = vst.msk [vmem:[#allocation2 + $0x20] sm:$0xff] %vm1164_vm10, %v1149_v28  ;;  %v1908_v28 = vsel %vm6778_vm3, 0, %v1907_v23  ;;  %1859 = vst [vmem:[#allocation3 + $0x18] sm:$0x1] %v1858_v27  ;;  %v1885_v23 = vsel %vm6765_vm0, 0, %v1884_v21  ;;  %v1935_v24 = vsel %vm6778_vm3, 0, %v1934_v22 }
  0xcb   :  { %1909 = vst [vmem:[#allocation3 + $0x1c] sm:$0x1] %v1908_v28  ;;  %1886 = vst [vmem:[#allocation3 + $0x70] sm:$0x1] %v1885_v23  ;;  %v1887_v27 = vld [vmem:[#allocation3 + $0x78] sm:$0x1] }
  0xcc   :  { %v1462_v29 = vpop.permute.xlu1 %1461  ;;  %1936 = vst [vmem:[#allocation3 + $0x74] sm:$0x1] %v1935_v24  ;;  %v1937_v28 = vld [vmem:[#allocation3 + $0x7c] sm:$0x1]  ;;  %v2576_v21 = vld [vmem:[#allocation3 + $0x4] sm:$0x1] }
  0xcd   :  { %1482 = vst.msk [vmem:[#allocation2 + $0x20] sm:$0xff] %vm1477_vm11, %v1462_v29  ;;  %v162_v30 = vpop.permute.xlu0 %161  ;;  %v5919_v29 = vld [vmem:[%s7918_s3 + $0x18] sm:$0xff]  }
  0xce   :  { %181 = vst.msk [vmem:[#allocation2 + $0x28] sm:$0xff] %vm175_vm4, %v162_v30  ;;  %v5920_v30 = vld [vmem:[%s7918_s3 + $0xe8] sm:$0xff]   ;;  %5543 = vmatpush3.bf16.msra.mxu1 %v5919_v29  ;;  %v1888_v29 = vsel %vm6765_vm0, 0, %v1887_v27 }
  0xcf   :  { %5610 = vmatprep.subr.bf16.mxu0 %v5920_v30  ;;  %v1938_v30 = vsel %vm6778_vm3, 0, %v1937_v28  ;;  %1889 = vst [vmem:[#allocation3 + $0x78] sm:$0x1] %v1888_v29 }
  0xd0   :  { %v478_v31 = vpop.permute.xlu1 %477  ;;  %1939 = vst [vmem:[#allocation3 + $0x7c] sm:$0x1] %v1938_v30 }
  0xd1   :  { %497 = vst.msk [vmem:[#allocation2 + $0x28] sm:$0xff] %vm491_vm5, %v478_v31  ;;  %v568_v32 = vpop.permute.xlu0 %567  ;;  %v5921_v31 = vld [vmem:[%s7918_s3 + $0xa8] sm:$0xff]  }
  0xd2   :  { %587 = vst.msk [vmem:[#allocation2 + $0x28] sm:$0xff] %vm581_vm6, %v568_v32  ;;  %5611 = vmatpush3.bf16.msra.mxu0 %v5921_v31  ;;  %v1890_v31 = vld [vmem:[#allocation3 + $0x80] sm:$0x1] }
  0xd4   :  { %v1490_v33 = vld [vmem:[#allocation2 + $0x20] sm:$0xff]  ;;  %v658_v35 = vpop.permute.xlu1 %657 }
  0xd5   :  { %5305 = vmatmul.mubr.msk.bf16.gmra.mrb[16].mxu0 %vm1524_vm13, %v1490_v33  ;;  %677 = vst.msk [vmem:[#allocation2 + $0x28] sm:$0xff] %vm671_vm7, %v658_v35  ;;  %v971_v36 = vpop.permute.xlu0 %970  ;;  %v5922_v33 = vld [vmem:[%s7918_s3 + $0x60] sm:$0xff]  }
  0xd6   :  { %1638 = vmatprep.mubr.bf16.mxu0 %v6007_v45  ;;  %990 = vst.msk [vmem:[#allocation2 + $0x28] sm:$0xff] %vm984_vm8, %v971_v36  ;;  %v5923_v35 = vld [vmem:[%s7918_s3 + $0x20] sm:$0xff]   ;;  %v5924_v36 = vld [vmem:[%s7918_s3 + $0xf0] sm:$0xff]   ;;  %5544 = vmatprep.subr.bf16.mxu1 %v5922_v33  ;;  %v1891_v33 = vsel %vm6765_vm0, 0, %v1890_v31 }
  0xd7   :  { %5612 = vmatprep.subr.bf16.mxu0 %v5924_v36  ;;  %5545 = vmatpush3.bf16.msra.mxu1 %v5923_v35  ;;  %1892 = vst [vmem:[#allocation3 + $0x80] sm:$0x1] %v1891_v33  ;;  %v1673_v36 = vsub.s32 0, %v6756_v47  ;;  %v1896_v47 = vld [vmem:[#allocation3 + $0x90] sm:$0x1]  ;;  %v2644_v33 = vrot.slane %v2576_v21, 5 }
  0xd8   :  { %v1061_v37 = vpop.permute.xlu1 %1060 }
  0xd9   :  { %1080 = vst.msk [vmem:[#allocation2 + $0x28] sm:$0xff] %vm1074_vm9, %v1061_v37  ;;  %v1151_v38 = vpop.permute.xlu0 %1150  ;;  %v5925_v37 = vld [vmem:[%s7918_s3 + $0xb0] sm:$0xff]  }
  0xda   :  { %1170 = vst.msk [vmem:[#allocation2 + $0x28] sm:$0xff] %vm1164_vm10, %v1151_v38  ;;  %v1860_v38 = vld [vmem:[#allocation3 + $0x20] sm:$0x1]  ;;  %5613 = vmatpush3.bf16.msra.mxu0 %v5925_v37 }
  0xdb   :  { %5614 = vmatprep.subr.bf16.mxu0 %v5928_v44  ;;  %v5954_v37 = vld [vmem:[%s7918_s3 + $0x1c0] sm:$0xff]   ;;  %v1946_v44 = vld [vmem:[#allocation3 + $0x94] sm:$0x1] }
  0xdc   :  { %v1464_v39 = vpop.permute.xlu1 %1463 }
  0xdd   :  { %1483 = vst.msk [vmem:[#allocation2 + $0x28] sm:$0xff] %vm1477_vm11, %v1464_v39  ;;  %v164_v40 = vpop.permute.xlu0 %163  ;;  %v1910_v39 = vld [vmem:[#allocation3 + $0x24] sm:$0x1] }
  0xde   :  { %182 = vst.msk [vmem:[#allocation2 + $0x30] sm:$0xff] %vm175_vm4, %v164_v40  ;;  %v1861_v40 = vsel %vm6765_vm0, 0, %v1860_v38  ;;  %v6952_v38 = vrot.slane %v6762_v49, %v1673_v36  ;;  %v1897_v49 = vsel %vm6765_vm0, 0, %v1896_v47 }
  0xdf   :  { %1862 = vst [vmem:[#allocation3 + $0x20] sm:$0x1] %v1861_v40  ;;  %v1943_v40 = vld [vmem:[#allocation3 + $0x8c] sm:$0x1]  ;;  %1898 = vst [vmem:[#allocation3 + $0x90] sm:$0x1] %v1897_v49 }
  0xe0   :  { %v480_v41 = vpop.permute.xlu1 %479 }
  0xe1   :  { %498 = vst.msk [vmem:[#allocation2 + $0x30] sm:$0xff] %vm491_vm5, %v480_v41  ;;  %v570_v42 = vpop.permute.xlu0 %569  ;;  %v1911_v41 = vsel %vm6778_vm3, 0, %v1910_v39  ;;  %v1893_v39 = vld [vmem:[#allocation3 + $0x88] sm:$0x1] }
  0xe2   :  { %588 = vst.msk [vmem:[#allocation2 + $0x30] sm:$0xff] %vm581_vm6, %v570_v42  ;;  %v5926_v42 = vld [vmem:[%s7918_s3 + $0x68] sm:$0xff]   ;;  %1912 = vst [vmem:[#allocation3 + $0x24] sm:$0x1] %v1911_v41  ;;  %v1894_v41 = vsel %vm6765_vm0, 0, %v1893_v39 }
  0xe3   :  { %5546 = vmatprep.subr.bf16.mxu1 %v5926_v42  ;;  %v1944_v42 = vsel %vm6778_vm3, 0, %v1943_v40  ;;  %1895 = vst [vmem:[#allocation3 + $0x88] sm:$0x1] %v1894_v41 }
  0xe4   :  { %v1491_v43 = vld [vmem:[#allocation2 + $0x28] sm:$0xff]  ;;  %v660_v34 = vpop.permute.xlu1 %659  ;;  %1945 = vst [vmem:[#allocation3 + $0x8c] sm:$0x1] %v1944_v42 }
  0xe5   :  { %5306 = vmatmul.mubr.msk.bf16.gmra.mrb[20].mxu0 %vm1524_vm13, %v1491_v43  ;;  %678 = vst.msk [vmem:[#allocation2 + $0x30] sm:$0xff] %vm671_vm7, %v660_v34  ;;  %v973_v46 = vpop.permute.xlu0 %972  ;;  %v5927_v43 = vld [vmem:[%s7918_s3 + $0x28] sm:$0xff]   ;;  %v5929_v34 = vld [vmem:[%s7918_s3 + $0xb8] sm:$0xff]  }
  0xe6   :  { %1648 = vmatprep.mubr.bf16.mxu0 %v6007_v45  ;;  %991 = vst.msk [vmem:[#allocation2 + $0x30] sm:$0xff] %vm984_vm8, %v973_v46  ;;  %v5930_v46 = vld [vmem:[%s7918_s3 + $0x70] sm:$0xff]   ;;  %5547 = vmatpush3.bf16.msra.mxu1 %v5927_v43  ;;  %v6959_v43 = vrot.slane %v6773_v56, %v1673_v36 }
  0xe7   :  { %5548 = vmatprep.subr.bf16.mxu1 %v5930_v46  ;;  %5615 = vmatpush3.bf16.msra.mxu0 %v5929_v34  ;;  %v1947_v46 = vsel %vm6778_vm3, 0, %v1946_v44 }
  0xe8   :  { %v1063_v48 = vpop.permute.xlu1 %1062  ;;  %5728 = vmatprep.subr.bf16.mxu0 %v5954_v37  ;;  %1948 = vst [vmem:[#allocation3 + $0x94] sm:$0x1] %v1947_v46 }
  0xe9   :  { %1081 = vst.msk [vmem:[#allocation2 + $0x30] sm:$0xff] %vm1074_vm9, %v1063_v48  ;;  %v1153_v50 = vpop.permute.xlu0 %1152 }
  0xea   :  { %1171 = vst.msk [vmem:[#allocation2 + $0x30] sm:$0xff] %vm1164_vm10, %v1153_v50  ;;  %v5932_v50 = vld [vmem:[%s7918_s3 + $0x30] sm:$0xff]  }
  0xeb   :  { %5549 = vmatpush3.bf16.msra.mxu1 %v5932_v50 }
  0xec   :  { %v1466_v55 = vpop.permute.xlu1 %1465 }
  0xed   :  { %1484 = vst.msk [vmem:[#allocation2 + $0x30] sm:$0xff] %vm1477_vm11, %v1466_v55  ;;  %v166_v63 = vpop.permute.xlu0 %165  ;;  %v5933_v55 = vld [vmem:[%s7918_s3 + $0x78] sm:$0xff]  }
  0xee   :  { %183 = vst.msk [vmem:[#allocation2 + $0x38] sm:$0xff] %vm175_vm4, %v166_v63  ;;  %5550 = vmatprep.subr.bf16.mxu1 %v5933_v55  ;;  %v1867_v63 = vsel %vm6765_vm0, 0, %v1866_v60  ;;  %vm2109_vm4 = vcmask 1043456  }
  0xef   :  { %5551 = vmatpush3.bf16.msra.mxu1 %v5934_v57  ;;  %1868 = vst [vmem:[#allocation3 + $0x30] sm:$0x1] %v1867_v63 }
  0xf0   :  { %v482_v4 = vpop.permute.xlu1 %481 }
  0xf1   :  { %499 = vst.msk [vmem:[#allocation2 + $0x38] sm:$0xff] %vm491_vm5, %v482_v4  ;;  %v572_v6 = vpop.permute.xlu0 %571  ;;  %v1870_v4 = vsel %vm6765_vm0, 0, %v1869_v2  ;;  %vm6978_vm5 = vmand %vm2109_vm4, %vm1899_vm1 }
  0xf2   :  { %589 = vst.msk [vmem:[#allocation2 + $0x38] sm:$0xff] %vm581_vm6, %v572_v6  ;;  %1871 = vst [vmem:[#allocation3 + $0x38] sm:$0x1] %v1870_v4  ;;  %v1872_v6 = vld [vmem:[#allocation3 + $0x40] sm:$0x1]  ;;  %vm2639_vm6 = vcmask 1042432  }
  0xf3   :  { %v1873_v8 = vsel %vm6765_vm0, 0, %v1872_v6 }
  0xf4   :  { %v1492_v10 = vld [vmem:[#allocation2 + $0x30] sm:$0xff]  ;;  %v662_v14 = vpop.permute.xlu1 %661  ;;  %1874 = vst [vmem:[#allocation3 + $0x40] sm:$0x1] %v1873_v8  ;;  %v2111_v8 = vld [vmem:[#allocation3 + $0x8] sm:$0xf] }
  0xf5   :  { %5307 = vmatmul.mubr.msk.bf16.gmra.mrb[24].mxu0 %vm1524_vm13, %v1492_v10  ;;  %679 = vst.msk [vmem:[#allocation2 + $0x38] sm:$0xff] %vm671_vm7, %v662_v14  ;;  %v975_v20 = vpop.permute.xlu0 %974  ;;  %v1875_v10 = vld [vmem:[#allocation3 + $0x58] sm:$0x1]  ;;  %v1878_v14 = vld [vmem:[#allocation3 + $0x60] sm:$0x1]  ;;  %vm2640_vm7 = vcmask 1046532  }
  0xf6   :  { %1658 = vmatprep.mubr.bf16.mxu0 %v6007_v45  ;;  %992 = vst.msk [vmem:[#allocation2 + $0x38] sm:$0xff] %vm984_vm8, %v975_v20  ;;  %v1876_v12 = vsel %vm6765_vm0, 0, %v1875_v10  ;;  %v1879_v16 = vsel %vm6765_vm0, 0, %v1878_v14  ;;  %v1882_v20 = vsel %vm6765_vm0, 0, %v1881_v18  ;;  %v2117_v14 = vld [vmem:[#allocation3 + $0x10] sm:$0xf]  ;;  %vm6996_vm8 = vmor %vm2639_vm6, %vm2640_vm7 }
  0xf7   :  { %1877 = vst [vmem:[#allocation3 + $0x58] sm:$0x1] %v1876_v12  ;;  %1880 = vst [vmem:[#allocation3 + $0x60] sm:$0x1] %v1879_v16  ;;  %v2279_v16 = vld [vmem:[#allocation3] sm:$0xf] }
  0xf8   :  { %v1065_v45 = vpop.permute.xlu1 %1064  ;;  %1883 = vst [vmem:[#allocation3 + $0x68] sm:$0x1] %v1882_v20  ;;  %v2315_v27 = vshll.u32 %v2279_v16, 16 }
  0xf9   :  { %1082 = vst.msk [vmem:[#allocation2 + $0x38] sm:$0xff] %vm1074_vm9, %v1065_v45  ;;  %v1155_v26 = vpop.permute.xlu0 %1154  ;;  %v1932_v45 = vsel %vm6778_vm3, 0, %v1931_v19 }
  0xfa   :  { %1172 = vst.msk [vmem:[#allocation2 + $0x38] sm:$0xff] %vm1164_vm10, %v1155_v26  ;;  %1933 = vst [vmem:[#allocation3 + $0x6c] sm:$0x1] %v1932_v45  ;;  %v5942_v26 = vld [vmem:[%s7918_s3 + $0x140] sm:$0xff]   ;;  %v2317_v44 = vrot.slane %v2315_v27, 5 }
  0xfb   :  { %5664 = vmatprep.subr.bf16.mxu1 %v5942_v26  ;;  %v2575_v45 = vld [vmem:[#allocation3] sm:$0xe]  ;;  %v2312_v26 = vshrl.u32 %v2279_v16, 16  ;;  %v2126_v16 = vld [vmem:[#allocation3 + $0x1c] sm:$0x1] }
  0xfc   :  { %v2132_v27 = vld [vmem:[#allocation3 + $0x24] sm:$0x1] }
  0xfd   :  { %v2314_v47 = vrot.slane %v2312_v26, 4  ;;  %v5957_v26 = vld [vmem:[%s7918_s3 + $0x188] sm:$0xff]  }
 0x100   :  { %v1468_v32 = vpop.permute.xlu1 %1467 }
 0x101   :  { %1485 = vst.msk [vmem:[#allocation2 + $0x38] sm:$0xff] %vm1477_vm11, %v1468_v32  ;;  %v1940_v32 = vld [vmem:[#allocation3 + $0x84] sm:$0x1] }
 0x102   :  { %v1941_v35 = vsel %vm6778_vm3, 0, %v1940_v32  ;;  %v5342_v32 = vrot.slane %v2575_v45, 9 }
 0x103   :  { %1942 = vst [vmem:[#allocation3 + $0x84] sm:$0x1] %v1941_v35  ;;  %v2280_v35 = vld [vmem:[#allocation3 + $0x4] sm:$0x1] }
 0x104   :  { %v2321_v46 = vshll.u32 %v2280_v35, 16 }
 0x108   :  { %v1493_v48 = vld [vmem:[#allocation2 + $0x38] sm:$0xff] }
 0x109   :  { %5308 = vmatmul.mubr.msk.bf16.gmra.mrb[28].mxu0 %vm1524_vm13, %v1493_v48 }
 0x167   :  { %v1590_v34 = vpop.f32.mrb[0].mxu0 }
 0x168   :  { %v1681_v48 = vmul.f32 %v6952_v38, %v1590_v34  ;;  %v1592_v50 = vpop.f32.mrb[1].mxu0 }
 0x169   :  { %v1682_v51 = vmul.f32 %v6789_v61, %v1592_v50  ;;  %v1594_v56 = vpop.f32.mrb[2].mxu0 }
 0x16a   :  { %v1726_v53 = vadd.f32 %v6959_v43, %v1681_v48  ;;  %v1683_v54 = vmul.f32 %v6952_v38, %v1594_v56  ;;  %v1596_v55 = vpop.f32.mrb[3].mxu0  ;;  %v2645_v56 = vsel %vm6996_vm8, %v5342_v32, %v2644_v33 }
 0x16b   :  { %v6970_v57 = vadd.f32 %v6796_v0, %v1682_v51  ;;  %v1684_v59 = vmul.f32 %v6789_v61, %v1596_v55 }
 0x16c   :  { %v1758_v58 = vmax.f32 %v1726_v53, 0.0  ;;  %v1728_v60 = vadd.f32 %v6959_v43, %v1683_v54 }
 0x16d   :  { %v6975_v62 = vadd.f32 %v6796_v0, %v1684_v59 }
 0x16e   :  { %v5520_v63 = vpack.c.bf16 %v1758_v58, %v1758_v58  ;;  %v1759_v1 = vmax.f32 %v1728_v60, 0.0 }
 0x170   :  { %v1950_v2 = vshrl.u32 %v5520_v63, 16  ;;  %v5521_v3 = vpack.c.bf16 %v1759_v1, %v1759_v1  ;;  %v1953_v5 = vshll.u32 %v5520_v63, 16  ;;  %v2318_v63 = vor.u32 %v2317_v44, %v2314_v47  ;;  %v7032_v44 = vld [vmem:[#allocation3 + $0x50] sm:$0xf] }
 0x172   :  { %v1952_v4 = vrot.slane %v1950_v2, 7  ;;  %v1958_v6 = vshrl.u32 %v5521_v3, 16  ;;  %v1961_v13 = vshll.u32 %v5521_v3, 16 }
 0x174   :  { %v1955_v10 = vor.u32 %v1953_v5, %v1952_v4  ;;  %v1956_v11 = vrot.slane %v1952_v4, 4  ;;  %v1960_v12 = vrot.slane %v1958_v6, 7  ;;  %v5955_v5 = vld [vmem:[%s7918_s3 + $0x180] sm:$0xff]  }
 0x176   :  { %v2112_v17 = vsel %vm6978_vm5, %v1955_v10, %v2111_v8  ;;  %v2115_v18 = vsel %vm6765_vm0, %v1956_v11, %v2114_v9  ;;  %v1963_v19 = vor.u32 %v1961_v13, %v1960_v12  ;;  %v1964_v20 = vrot.slane %v1960_v12, 4  ;;  %v5956_v10 = vld [vmem:[%s7918_s3 + $0x1c8] sm:$0xff]   ;;  %v2123_v13 = vld [vmem:[#allocation3 + $0x18] sm:$0xf] }
 0x177   :  { %2113 = vst [vmem:[#allocation3 + $0x8] sm:$0xf] %v2112_v17  ;;  %2116 = vst [vmem:[#allocation3 + $0xc] sm:$0x1] %v2115_v18  ;;  %v2319_v17 = vrot.slane %v2318_v63, 4  ;;  %v5963_v63 = vld [vmem:[%s7918_s3 + $0x1d8] sm:$0xff]  }
 0x178   :  { %v2118_v22 = vsel %vm6978_vm5, %v1963_v19, %v2117_v14  ;;  %v2121_v23 = vsel %vm6765_vm0, %v1964_v20, %v2120_v15  ;;  %v1600_v24 = vpop.f32.mrb[4].mxu0  ;;  %v2323_v15 = vrot.slane %v2321_v46, 5 }
 0x179   :  { %2119 = vst [vmem:[#allocation3 + $0x10] sm:$0xf] %v2118_v22  ;;  %2122 = vst [vmem:[#allocation3 + $0x14] sm:$0x1] %v2121_v23  ;;  %v1685_v28 = vmul.f32 %v6952_v38, %v1600_v24  ;;  %v1602_v29 = vpop.f32.mrb[5].mxu0 }
 0x17a   :  { %v1686_v30 = vmul.f32 %v6789_v61, %v1602_v29  ;;  %v1604_v31 = vpop.f32.mrb[6].mxu0  ;;  %v2129_v24 = vld [vmem:[#allocation3 + $0x20] sm:$0xf]  ;;  %v5961_v29 = vld [vmem:[%s7918_s3 + $0x1d0] sm:$0xff]  }
 0x17b   :  { %v1730_v36 = vadd.f32 %v6959_v43, %v1685_v28  ;;  %v1687_v37 = vmul.f32 %v6952_v38, %v1604_v31  ;;  %v1606_v39 = vpop.f32.mrb[7].mxu0 }
 0x17c   :  { %v7001_v41 = vadd.f32 %v6796_v0, %v1686_v30  ;;  %v1688_v42 = vmul.f32 %v6789_v61, %v1606_v39  ;;  %v2324_v39 = vsel %vm6080_vm2, %v2319_v17, %v2323_v15  ;;  %v5964_v17 = vld [vmem:[%s7918_s3 + $0x198] sm:$0xff]  }
 0x17d   :  { %v1760_v34 = vmax.f32 %v1730_v36, 0.0  ;;  %v1732_v49 = vadd.f32 %v6959_v43, %v1687_v37  ;;  %v7028_v36 = vld [vmem:[#allocation3 + $0x50] sm:$0xe] }
 0x17e   :  { %v7006_v48 = vadd.f32 %v6796_v0, %v1688_v42  ;;  %v2577_v50 = vld [vmem:[#allocation3 + $0x8] sm:$0xe]  ;;  %v2578_v51 = vld [vmem:[#allocation3 + $0xc] sm:$0x1] }
 0x17f   :  { %v5522_v53 = vpack.c.bf16 %v1760_v34, %v1760_v34  ;;  %v1761_v54 = vmax.f32 %v1732_v49, 0.0  ;;  %v5343_v55 = vrot.slane %v2577_v50, 9  ;;  %v2648_v59 = vrot.slane %v2578_v51, 5  ;;  %v2281_v58 = vld [vmem:[#allocation3 + $0x8] sm:$0xf] }
 0x180   :  { %v5931_v60 = vld [vmem:[#allocation3 + $0x8] ss:$8 sps:$4 sm:$0xff]   ;;  %v2282_v4 = vld [vmem:[#allocation3 + $0xc] sm:$0x1]  ;;  %v2326_v8 = vshrl.u32 %v2281_v58, 16  ;;  %v2329_v9 = vshll.u32 %v2281_v58, 16 }
 0x181   :  { %v1966_v1 = vshrl.u32 %v5522_v53, 16  ;;  %v5523_v2 = vpack.c.bf16 %v1761_v54, %v1761_v54  ;;  %v2649_v3 = vsel %vm6996_vm8, %v5343_v55, %v2648_v59  ;;  %4596 = vmatprep.mubr.bf16.mxu0 %v5931_v60  ;;  %v1969_v12 = vshll.u32 %v5522_v53, 16  ;;  %v2283_v35 = vld [vmem:[#allocation3 + $0x10] sm:$0xf] }
 0x182   :  { %v5358_v6 = vcombine.low %v2645_v56, %v2649_v3  ;;  %v2328_v18 = vrot.slane %v2326_v8, 4  ;;  %v2331_v19 = vrot.slane %v2329_v9, 5  ;;  %v2335_v20 = vshll.u32 %v2282_v4, 16  ;;  %v2579_v51 = vld [vmem:[#allocation3 + $0x10] sm:$0xe] }
 0x183   :  { %v1968_v11 = vrot.slane %v1966_v1, 7  ;;  %v1974_v14 = vshrl.u32 %v5523_v2, 16  ;;  %v1977_v23 = vshll.u32 %v5523_v2, 16  ;;  %v2580_v56 = vld [vmem:[#allocation3 + $0x14] sm:$0x1]  ;;  %v2340_v58 = vshrl.u32 %v2283_v35, 16 }
 0x184   :  { %4597 = vmatmul.mubr.bf16.vlgmr.msra.gmra.mrb[32].mxu0 %v5358_v6  ;;  %v2332_v28 = vor.u32 %v2331_v19, %v2328_v18  ;;  %v2337_v47 = vrot.slane %v2335_v20, 5  ;;  %v5962_v53 = vld [vmem:[%s7918_s3 + $0x190] sm:$0xff]   ;;  %v2343_v60 = vshll.u32 %v2283_v35, 16  ;;  %v5935_v9 = vld [vmem:[#allocation3] ss:$8 sps:$4 sm:$0xff]   ;;  %v5344_v15 = vrot.slane %v2579_v51, 9 }
 0x185   :  { %v1971_v45 = vor.u32 %v1969_v12, %v1968_v11  ;;  %v1972_v21 = vrot.slane %v1968_v11, 4  ;;  %v1976_v22 = vrot.slane %v1974_v14, 7  ;;  %5729 = vmatpush3.bf16.msra.mxu0 %v5955_v5  ;;  %v5944_v5 = vld [vmem:[%s7918_s3 + $0x100] sm:$0xff]   ;;  %v2424_v11 = vshrl.u32 %v7032_v44, 16  ;;  %v5945_v12 = vld [vmem:[%s7918_s3 + $0x148] sm:$0xff]  }
 0x186   :  { %5730 = vmatprep.subr.bf16.mxu0 %v5956_v10  ;;  %v2333_v42 = vrot.slane %v2332_v28, 4  ;;  %v5350_v10 = vrot.slane %v7028_v36, 9  ;;  %v7069_v19 = vld [vmem:[#allocation3 + $0x14] sm:$0x1]  ;;  %v2342_v20 = vrot.slane %v2340_v58, 4 }
 0x187   :  { %v2124_v30 = vsel %vm6978_vm5, %v1971_v45, %v2123_v13  ;;  %v2127_v31 = vsel %vm6765_vm0, %v1972_v21, %v2126_v16  ;;  %v1979_v32 = vor.u32 %v1977_v23, %v1976_v22  ;;  %v1980_v33 = vrot.slane %v1976_v22, 4  ;;  %v5947_v21 = vld [vmem:[%s7918_s3 + $0x108] sm:$0xff]   ;;  %v5968_v22 = vld [vmem:[%s7918_s3 + $0x1e0] sm:$0xff]  }
 0x188   :  { %2125 = vst [vmem:[#allocation3 + $0x18] sm:$0xf] %v2124_v30  ;;  %2128 = vst [vmem:[#allocation3 + $0x1c] sm:$0x1] %v2127_v31  ;;  %v1610_v37 = vpop.f32.mrb[8].mxu0  ;;  %v2338_v59 = vsel %vm6080_vm2, %v2333_v42, %v2337_v47  ;;  %v2652_v16 = vrot.slane %v2580_v56, 5 }
 0x189   :  { %v2130_v34 = vsel %vm6978_vm5, %v1979_v32, %v2129_v24  ;;  %v2133_v49 = vsel %vm6765_vm0, %v1980_v33, %v2132_v27  ;;  %v1689_v46 = vmul.f32 %v6952_v38, %v1610_v37  ;;  %v1612_v50 = vpop.f32.mrb[9].mxu0  ;;  %5731 = vmatpush3.bf16.msra.mxu0 %v5957_v26  ;;  %v5334_v4 = vcombine.low %v2324_v39, %v2338_v59  ;;  %v5948_v27 = vld [vmem:[%s7918_s3 + $0x150] sm:$0xff]   ;;  %v5969_v31 = vld [vmem:[%s7918_s3 + $0x1a0] sm:$0xff]   ;;  %v2135_v47 = vld [vmem:[#allocation3 + $0x28] sm:$0xf] }
 0x18a   :  { %2131 = vst [vmem:[#allocation3 + $0x20] sm:$0xf] %v2130_v34  ;;  %2134 = vst [vmem:[#allocation3 + $0x24] sm:$0x1] %v2133_v49  ;;  %v1690_v54 = vmul.f32 %v6789_v61, %v1612_v50  ;;  %v1614_v55 = vpop.f32.mrb[10].mxu0  ;;  %5732 = vmatprep.subr.bf16.mxu0 %v5961_v29  ;;  %v2345_v45 = vrot.slane %v2343_v60, 5  ;;  %v2653_v37 = vsel %vm6996_vm8, %v5344_v15, %v2652_v16 }
 0x18b   :  { %v1734_v1 = vadd.f32 %v6959_v43, %v1689_v46  ;;  %v1691_v2 = vmul.f32 %v6952_v38, %v1614_v55  ;;  %v1616_v3 = vpop.f32.mrb[11].mxu0  ;;  %4499 = vmatprep.mubr.bf16.mxu1 %v5334_v4  ;;  %v2349_v39 = vshll.u32 %v7069_v19, 16  ;;  %v5950_v42 = vld [vmem:[%s7918_s3 + $0x110] sm:$0xff]   ;;  %v2138_v34 = vld [vmem:[#allocation3 + $0x2c] sm:$0x1] }
 0x18c   :  { %v7054_v6 = vadd.f32 %v6796_v0, %v1690_v54  ;;  %v1692_v8 = vmul.f32 %v6789_v61, %v1616_v3  ;;  %4500 = vmatmul.mubr.bf16.vlgmr.msra.gmra.mrb[0].mxu1 %v5935_v9  ;;  %v2346_v50 = vor.u32 %v2345_v45, %v2342_v20  ;;  %v2141_v60 = vld [vmem:[#allocation3 + $0x30] sm:$0xf]  ;;  %v5971_v15 = vld [vmem:[%s7918_s3 + $0x1a8] sm:$0xff]   ;;  %v7102_v20 = vrot.slane %v2424_v11, 4 }
 0x18d   :  { %v1762_v13 = vmax.f32 %v1734_v1, 0.0  ;;  %v1736_v14 = vadd.f32 %v6959_v43, %v1691_v2  ;;  %5733 = vmatpush3.bf16.msra.mxu0 %v5962_v53  ;;  %5665 = vmatpush3.bf16.msra.mxu1 %v5944_v5  ;;  %v5970_v53 = vld [vmem:[%s7918_s3 + $0x1e8] sm:$0xff]   ;;  %v5951_v5 = vld [vmem:[%s7918_s3 + $0x158] sm:$0xff]   ;;  %v2427_v45 = vshll.u32 %v7032_v44, 16  ;;  %v2351_v11 = vrot.slane %v2349_v39, 5  ;;  %v5976_v39 = vld [vmem:[%s7918_s3 + $0x1b0] sm:$0xff]  }
 0x18e   :  { %v7067_v18 = vadd.f32 %v6796_v0, %v1692_v8  ;;  %5734 = vmatprep.subr.bf16.mxu0 %v5963_v63  ;;  %5666 = vmatprep.subr.bf16.mxu1 %v5945_v12  ;;  %v2144_v63 = vld [vmem:[#allocation3 + $0x34] sm:$0x1]  ;;  %v2347_v16 = vrot.slane %v2346_v50, 4  ;;  %v5953_v44 = vld [vmem:[%s7918_s3 + $0x118] sm:$0xff]  }
 0x18f   :  { %v5524_v23 = vpack.c.bf16 %v1762_v13, %v1762_v13  ;;  %v1763_v24 = vmax.f32 %v1736_v14, 0.0  ;;  %v2581_v26 = vld [vmem:[#allocation3 + $0x18] sm:$0xe]  ;;  %v2582_v28 = vld [vmem:[#allocation3 + $0x1c] sm:$0x1]  ;;  %v7132_v50 = vrot.slane %v2427_v45, 5 }
 0x190   :  { %v5345_v29 = vrot.slane %v2581_v26, 9  ;;  %v2285_v30 = vld [vmem:[#allocation3 + $0x18] sm:$0xf]  ;;  %v2656_v49 = vrot.slane %v2582_v28, 5  ;;  %v2286_v46 = vld [vmem:[#allocation3 + $0x1c] sm:$0x1] }
 0x191   :  { %v1982_v32 = vshrl.u32 %v5524_v23, 16  ;;  %v5525_v33 = vpack.c.bf16 %v1763_v24, %v1763_v24  ;;  %v5936_v35 = vld [vmem:[#allocation3 + $0x18] ss:$8 sps:$4 sm:$0xff]   ;;  %5735 = vmatpush3.bf16.msra.mxu0 %v5964_v17  ;;  %v2354_v51 = vshrl.u32 %v2285_v30, 16  ;;  %v2357_v56 = vshll.u32 %v2285_v30, 16  ;;  %5667 = vmatpush3.bf16.msra.mxu1 %v5947_v21  ;;  %v5975_v21 = vld [vmem:[%s7918_s3 + $0x1f0] sm:$0xff]  }
 0x192   :  { %5736 = vmatprep.subr.bf16.mxu0 %v5968_v22  ;;  %v1985_v55 = vshll.u32 %v5524_v23, 16  ;;  %4604 = vmatprep.mubr.bf16.mxu0 %v5936_v35  ;;  %v2657_v1 = vsel %vm6996_vm8, %v5345_v29, %v2656_v49  ;;  %v2363_v4 = vshll.u32 %v2286_v46, 16  ;;  %v2296_v14 = vld [vmem:[#allocation3 + $0x54] sm:$0x1]  ;;  %v2287_v19 = vld [vmem:[#allocation3 + $0x20] sm:$0xf]  ;;  %v2352_v49 = vsel %vm6080_vm2, %v2347_v16, %v2351_v11 }
 0x193   :  { %v1984_v54 = vrot.slane %v1982_v32, 7  ;;  %v1990_v59 = vshrl.u32 %v5525_v33, 16  ;;  %v1993_v58 = vshll.u32 %v5525_v33, 16  ;;  %v2356_v2 = vrot.slane %v2354_v51, 4  ;;  %5668 = vmatprep.subr.bf16.mxu1 %v5948_v27  ;;  %v7112_v27 = vld [vmem:[#allocation3 + $0x54] sm:$0x1] }
 0x194   :  { %v2359_v3 = vrot.slane %v2357_v56, 5  ;;  %v5359_v13 = vcombine.low %v2653_v37, %v2657_v1  ;;  %v2365_v29 = vrot.slane %v2363_v4, 5  ;;  %v2433_v30 = vshll.u32 %v2296_v14, 16  ;;  %v5977_v51 = vld [vmem:[%s7918_s3 + $0x1f8] sm:$0xff]   ;;  %v7153_v14 = vld [vmem:[#allocation3 + $0x10] sm:$0xf] }
 0x195   :  { %v1987_v8 = vor.u32 %v1985_v55, %v1984_v54  ;;  %v1988_v9 = vrot.slane %v1984_v54, 4  ;;  %v1992_v12 = vrot.slane %v1990_v59, 7  ;;  %5737 = vmatpush3.bf16.msra.mxu0 %v5969_v31  ;;  %5669 = vmatpush3.bf16.msra.mxu1 %v5950_v42  ;;  %v5958_v31 = vld [vmem:[%s7918_s3 + $0x160] sm:$0xff]   ;;  %v2368_v37 = vshrl.u32 %v2287_v19, 16 }
 0x196   :  { %v2360_v17 = vor.u32 %v2359_v3, %v2356_v2  ;;  %5738 = vmatprep.subr.bf16.mxu0 %v5970_v53  ;;  %4605 = vmatmul.mubr.bf16.gmra.mrb[36].mxu0 %v5359_v13  ;;  %v2371_v42 = vshll.u32 %v2287_v19, 16  ;;  %v2583_v55 = vld [vmem:[#allocation3 + $0x20] sm:$0xe]  ;;  %v2584_v59 = vld [vmem:[#allocation3 + $0x24] sm:$0x1]  ;;  %v2676_v3 = vrot.slane %v7112_v27, 5 }
 0x197   :  { %v2136_v22 = vsel %vm6978_vm5, %v1987_v8, %v2135_v47  ;;  %v2139_v23 = vsel %vm6765_vm0, %v1988_v9, %v2138_v34  ;;  %v1995_v24 = vor.u32 %v1993_v58, %v1992_v12  ;;  %v1996_v26 = vrot.slane %v1992_v12, 4  ;;  %5670 = vmatprep.subr.bf16.mxu1 %v5951_v5  ;;  %v5960_v58 = vld [vmem:[%s7918_s3 + $0x120] sm:$0xff]   ;;  %v5937_v2 = vld [vmem:[#allocation3 + $0x10] ss:$8 sps:$4 sm:$0xff]   ;;  %v5965_v5 = vld [vmem:[%s7918_s3 + $0x168] sm:$0xff]  }
 0x198   :  { %2137 = vst [vmem:[#allocation3 + $0x28] sm:$0xf] %v2136_v22  ;;  %2140 = vst [vmem:[#allocation3 + $0x2c] sm:$0x1] %v2139_v23  ;;  %v2361_v28 = vrot.slane %v2360_v17, 4  ;;  %v1620_v35 = vpop.f32.mrb[12].mxu0 }
 0x199   :  { %v2142_v32 = vsel %vm6978_vm5, %v1995_v24, %v2141_v60  ;;  %v2145_v33 = vsel %vm6765_vm0, %v1996_v26, %v2144_v63  ;;  %5739 = vmatpush3.bf16.msra.mxu0 %v5971_v15  ;;  %v1693_v47 = vmul.f32 %v6952_v38, %v1620_v35  ;;  %v1622_v34 = vpop.f32.mrb[13].mxu0  ;;  %5671 = vmatpush3.bf16.msra.mxu1 %v5953_v44  ;;  %v7144_v4 = vrot.slane %v2433_v30, 5  ;;  %v5978_v15 = vld [vmem:[%s7918_s3 + $0x1b8] sm:$0xff]   ;;  %v5967_v22 = vld [vmem:[%s7918_s3 + $0x128] sm:$0xff]  }
 0x19a   :  { %2143 = vst [vmem:[#allocation3 + $0x30] sm:$0xf] %v2142_v32  ;;  %2146 = vst [vmem:[#allocation3 + $0x34] sm:$0x1] %v2145_v33  ;;  %v2366_v46 = vsel %vm6080_vm2, %v2361_v28, %v2365_v29  ;;  %5740 = vmatprep.subr.bf16.mxu0 %v5975_v21  ;;  %v1694_v56 = vmul.f32 %v6789_v61, %v1622_v34  ;;  %v1624_v53 = vpop.f32.mrb[14].mxu0  ;;  %5672 = vmatprep.subr.bf16.mxu1 %v5958_v31  ;;  %v2370_v12 = vrot.slane %v2368_v37, 4 }
 0x19b   :  { %v5335_v54 = vcombine.low %v2352_v49, %v2366_v46  ;;  %v1738_v60 = vadd.f32 %v6959_v43, %v1693_v47  ;;  %v1695_v63 = vmul.f32 %v6952_v38, %v1624_v53  ;;  %v1626_v1 = vpop.f32.mrb[15].mxu0  ;;  %v2373_v13 = vrot.slane %v2371_v42, 5  ;;  %v2288_v21 = vld [vmem:[#allocation3 + $0x24] sm:$0x1]  ;;  %v5972_v32 = vld [vmem:[%s7918_s3 + $0x170] sm:$0xff]  }
 0x19c   :  { %v7150_v8 = vadd.f32 %v6796_v0, %v1694_v56  ;;  %v1696_v9 = vmul.f32 %v6789_v61, %v1626_v1  ;;  %v5346_v19 = vrot.slane %v2583_v55, 9  ;;  %v2660_v45 = vrot.slane %v2584_v59, 5  ;;  %v2147_v46 = vld [vmem:[#allocation3 + $0x38] sm:$0xf]  ;;  %v5974_v55 = vld [vmem:[%s7918_s3 + $0x130] sm:$0xff]  }
 0x19d   :  { %4507 = vmatprep.mubr.bf16.mxu1 %v5335_v54  ;;  %5741 = vmatpush3.bf16.msra.mxu0 %v5976_v39  ;;  %v1764_v16 = vmax.f32 %v1738_v60, 0.0  ;;  %v1740_v17 = vadd.f32 %v6959_v43, %v1695_v63  ;;  %v2430_v44 = vor.u32 %v7132_v50, %v7102_v20  ;;  %v2374_v35 = vor.u32 %v2373_v13, %v2370_v12  ;;  %v2150_v50 = vld [vmem:[#allocation3 + $0x3c] sm:$0x1] }
 0x19e   :  { %4508 = vmatmul.mubr.bf16.gmra.mrb[4].mxu1 %v5937_v2  ;;  %5742 = vmatprep.subr.bf16.mxu0 %v5977_v51  ;;  %v7163_v23 = vadd.f32 %v6796_v0, %v1696_v9  ;;  %v3388_v37 = vshrl.u32 %v7153_v14, 16  ;;  %v3391_v42 = vshll.u32 %v7153_v14, 16  ;;  %v2661_v47 = vsel %vm6996_vm8, %v5346_v19, %v2660_v45  ;;  %v5979_v1 = vld [vmem:[%s7918_s3 + $0x178] sm:$0xff]   ;;  %v2153_v2 = vld [vmem:[#allocation3 + $0x40] sm:$0xf] }
 0x19f   :  { %v2585_v24 = vld [vmem:[#allocation3 + $0x28] sm:$0xe]  ;;  %v2586_v26 = vld [vmem:[#allocation3 + $0x2c] sm:$0x1]  ;;  %5673 = vmatpush3.bf16.msra.mxu1 %v5960_v58  ;;  %v5526_v11 = vpack.c.bf16 %v1764_v16, %v1764_v16  ;;  %v1765_v28 = vmax.f32 %v1740_v17, 0.0  ;;  %v2377_v56 = vshll.u32 %v2288_v21, 16 }
 0x1a0   :  { %v5347_v29 = vrot.slane %v2585_v24, 9  ;;  %v2664_v30 = vrot.slane %v2586_v26, 5  ;;  %v2289_v31 = vld [vmem:[#allocation3 + $0x28] sm:$0xf]  ;;  %5674 = vmatprep.subr.bf16.mxu1 %v5965_v5  ;;  %v2290_v49 = vld [vmem:[#allocation3 + $0x2c] sm:$0x1] }
 0x1a1   :  { %v5938_v33 = vld [vmem:[#allocation3 + $0x28] ss:$8 sps:$4 sm:$0xff]   ;;  %5743 = vmatpush3.bf16.msra.mxu0 %v5978_v15  ;;  %v1998_v39 = vshrl.u32 %v5526_v11, 16  ;;  %v5527_v20 = vpack.c.bf16 %v1765_v28, %v1765_v28  ;;  %v2382_v53 = vshrl.u32 %v2289_v31, 16  ;;  %v2385_v54 = vshll.u32 %v2289_v31, 16 }
 0x1a2   :  { %v2665_v34 = vsel %vm6996_vm8, %v5347_v29, %v2664_v30  ;;  %4612 = vmatprep.mubr.bf16.mxu0 %v5938_v33  ;;  %v2001_v58 = vshll.u32 %v5526_v11, 16  ;;  %v7179_v63 = vrot.slane %v2430_v44, 4  ;;  %v2156_v5 = vld [vmem:[#allocation3 + $0x44] sm:$0x1]  ;;  %v2375_v9 = vrot.slane %v2374_v35, 4  ;;  %v5981_v11 = vld [vmem:[%s7918_s3 + $0x138] sm:$0xff]  }
 0x1a3   :  { %v5360_v51 = vcombine.low %v2661_v47, %v2665_v34  ;;  %5675 = vmatpush3.bf16.msra.mxu1 %v5967_v22  ;;  %v2000_v59 = vrot.slane %v1998_v39, 7  ;;  %v2006_v60 = vshrl.u32 %v5527_v20, 16  ;;  %v2384_v12 = vrot.slane %v2382_v53, 4  ;;  %v7184_v15 = vld [vmem:[#allocation3 + $0x14] sm:$0x1] }
 0x1a4   :  { %5676 = vmatprep.subr.bf16.mxu1 %v5972_v32  ;;  %v2387_v13 = vrot.slane %v2385_v54, 5  ;;  %v2391_v14 = vshll.u32 %v2290_v49, 16  ;;  %v2009_v45 = vshll.u32 %v5527_v20, 16  ;;  %v3357_v21 = vld [vmem:[#allocation3 + $0x18] sm:$0xf]  ;;  %v2379_v22 = vrot.slane %v2377_v56, 5 }
 0x1a5   :  { %4613 = vmatmul.mubr.bf16.gmra.mrb[40].mxu0 %v5360_v51  ;;  %v2003_v16 = vor.u32 %v2001_v58, %v2000_v59  ;;  %v2004_v17 = vrot.slane %v2000_v59, 4  ;;  %v2008_v19 = vrot.slane %v2006_v60, 7  ;;  %v7186_v26 = vrot.slane %v3388_v37, 4  ;;  %v7193_v28 = vld [vmem:[#allocation3 + $0x8] sm:$0xe]  ;;  %v5983_v37 = vld [vmem:[%s7918_s3 + $0x200] sm:$0xff]  }
 0x1a6   :  { %v2388_v24 = vor.u32 %v2387_v13, %v2384_v12  ;;  %v7188_v44 = vrot.slane %v3391_v42, 5  ;;  %v7195_v29 = vld [vmem:[#allocation3 + $0xc] sm:$0x1]  ;;  %v2291_v35 = vld [vmem:[#allocation3 + $0x30] sm:$0xf]  ;;  %v2393_v39 = vrot.slane %v2391_v14, 5 }
 0x1a7   :  { %5677 = vmatpush3.bf16.msra.mxu1 %v5974_v55  ;;  %v2148_v30 = vsel %vm6978_vm5, %v2003_v16, %v2147_v46  ;;  %v2151_v31 = vsel %vm6765_vm0, %v2004_v17, %v2150_v50  ;;  %v2011_v32 = vor.u32 %v2009_v45, %v2008_v19  ;;  %v2012_v33 = vrot.slane %v2008_v19, 4  ;;  %v2587_v51 = vld [vmem:[#allocation3 + $0x30] sm:$0xe]  ;;  %v2588_v59 = vld [vmem:[#allocation3 + $0x34] sm:$0x1] }
 0x1a8   :  { %5678 = vmatprep.subr.bf16.mxu1 %v5979_v1  ;;  %2149 = vst [vmem:[#allocation3 + $0x38] sm:$0xf] %v2148_v30  ;;  %2152 = vst [vmem:[#allocation3 + $0x3c] sm:$0x1] %v2151_v31  ;;  %v2389_v42 = vrot.slane %v2388_v24, 4  ;;  %v3402_v20 = vshrl.u32 %v3357_v21, 16  ;;  %v2380_v50 = vsel %vm6080_vm2, %v2375_v9, %v2379_v22 }
 0x1a9   :  { %v3405_v47 = vshll.u32 %v3357_v21, 16  ;;  %v2154_v34 = vsel %vm6978_vm5, %v2011_v32, %v2153_v2  ;;  %v2157_v49 = vsel %vm6765_vm0, %v2012_v33, %v2156_v5  ;;  %v1630_v46 = vpop.f32.mrb[16].mxu0  ;;  %v3397_v56 = vshll.u32 %v7184_v15, 16  ;;  %v5939_v16 = vld [vmem:[#allocation3 + $0x20] ss:$8 sps:$4 sm:$0xff]  }
 0x1aa   :  { %2155 = vst [vmem:[#allocation3 + $0x40] sm:$0xf] %v2154_v34  ;;  %2158 = vst [vmem:[#allocation3 + $0x44] sm:$0x1] %v2157_v49  ;;  %v1697_v53 = vmul.f32 %v6952_v38, %v1630_v46  ;;  %v1632_v54 = vpop.f32.mrb[17].mxu0  ;;  %v2394_v55 = vsel %vm6080_vm2, %v2389_v42, %v2393_v39  ;;  %v2396_v58 = vshrl.u32 %v2291_v35, 16 }
 0x1ab   :  { %v2399_v60 = vshll.u32 %v2291_v35, 16  ;;  %5679 = vmatpush3.bf16.msra.mxu1 %v5981_v11  ;;  %v1698_v1 = vmul.f32 %v6789_v61, %v1632_v54  ;;  %v1634_v2 = vpop.f32.mrb[18].mxu0  ;;  %v5336_v5 = vcombine.low %v2380_v50, %v2394_v55  ;;  %v3180_v12 = vrot.slane %v7195_v29, 5  ;;  %v2292_v46 = vld [vmem:[#allocation3 + $0x34] sm:$0x1] }
 0x1ac   :  { %5808 = vmatprep.subr.bf16.mxu1 %v5983_v37  ;;  %v1742_v13 = vadd.f32 %v6959_v43, %v1697_v53  ;;  %v1699_v14 = vmul.f32 %v6952_v38, %v1634_v2  ;;  %v1636_v15 = vpop.f32.mrb[19].mxu0  ;;  %v7219_v17 = vrot.slane %v3402_v20, 4  ;;  %v7221_v19 = vrot.slane %v3405_v47, 5 }
 0x1ad   :  { %v7224_v45 = vadd.f32 %v6796_v0, %v1698_v1  ;;  %v1700_v21 = vmul.f32 %v6789_v61, %v1636_v15  ;;  %4515 = vmatprep.mubr.bf16.mxu1 %v5336_v5  ;;  %v5348_v22 = vrot.slane %v2587_v51, 9  ;;  %v2668_v24 = vrot.slane %v2588_v59, 5 }
 0x1ae   :  { %v1766_v11 = vmax.f32 %v1742_v13, 0.0  ;;  %v1744_v30 = vadd.f32 %v6959_v43, %v1699_v14  ;;  %4516 = vmatmul.mubr.bf16.gmra.mrb[8].mxu1 %v5939_v16  ;;  %v2398_v31 = vrot.slane %v2396_v58, 4  ;;  %v2401_v32 = vrot.slane %v2399_v60, 5  ;;  %v2159_v58 = vld [vmem:[#allocation3 + $0x58] sm:$0xf] }
 0x1af   :  { %v7229_v33 = vadd.f32 %v6796_v0, %v1700_v21  ;;  %v2589_v35 = vld [vmem:[#allocation3 + $0x38] sm:$0xe]  ;;  %v2590_v37 = vld [vmem:[#allocation3 + $0x3c] sm:$0x1]  ;;  %v3394_v50 = vor.u32 %v7188_v44, %v7186_v26  ;;  %v2669_v54 = vsel %vm6996_vm8, %v5348_v22, %v2668_v24  ;;  %v7237_v44 = vrot.slane %v3397_v56, 5 }
 0x1b0   :  { %v5528_v42 = vpack.c.bf16 %v1766_v11, %v1766_v11  ;;  %v1767_v39 = vmax.f32 %v1744_v30, 0.0  ;;  %v5349_v20 = vrot.slane %v2589_v35, 9  ;;  %v2672_v47 = vrot.slane %v2590_v37, 5  ;;  %v2293_v34 = vld [vmem:[#allocation3 + $0x38] sm:$0xf] }
 0x1b1   :  { %v5940_v49 = vld [vmem:[#allocation3 + $0x38] ss:$8 sps:$4 sm:$0xff]   ;;  %v2294_v59 = vld [vmem:[#allocation3 + $0x3c] sm:$0x1]  ;;  %v2402_v2 = vor.u32 %v2401_v32, %v2398_v31  ;;  %v2410_v5 = vshrl.u32 %v2293_v34, 16  ;;  %v2413_v13 = vshll.u32 %v2293_v34, 16 }
 0x1b2   :  { %v2014_v51 = vshrl.u32 %v5528_v42, 16  ;;  %v5529_v53 = vpack.c.bf16 %v1767_v39, %v1767_v39  ;;  %v2673_v55 = vsel %vm6996_vm8, %v5349_v20, %v2672_v47  ;;  %v2162_v60 = vld [vmem:[#allocation3 + $0x5c] sm:$0x1]  ;;  %4620 = vmatprep.mubr.bf16.mxu0 %v5940_v49  ;;  %v2017_v16 = vshll.u32 %v5528_v42, 16  ;;  %v3359_v21 = vld [vmem:[#allocation3 + $0x20] sm:$0xf] }
 0x1b3   :  { %v5361_v1 = vcombine.low %v2669_v54, %v2673_v55  ;;  %v3358_v14 = vld [vmem:[#allocation3 + $0x1c] sm:$0x1]  ;;  %v2405_v22 = vshll.u32 %v2292_v46, 16  ;;  %v2412_v24 = vrot.slane %v2410_v5, 4  ;;  %v2415_v11 = vrot.slane %v2413_v13, 5 }
 0x1b4   :  { %v2016_v15 = vrot.slane %v2014_v51, 7  ;;  %v2022_v26 = vshrl.u32 %v5529_v53, 16  ;;  %v2419_v30 = vshll.u32 %v2294_v59, 16  ;;  %v2025_v20 = vshll.u32 %v5529_v53, 16  ;;  %v2165_v47 = vld [vmem:[#allocation3 + $0x60] sm:$0xf] }
 0x1b5   :  { %4621 = vmatmul.mubr.bf16.gmra.mrb[44].mxu0 %v5361_v1  ;;  %v2168_v31 = vld [vmem:[#allocation3 + $0x64] sm:$0x1]  ;;  %v2403_v32 = vrot.slane %v2402_v2, 4  ;;  %v2416_v34 = vor.u32 %v2415_v11, %v2412_v24  ;;  %v3408_v42 = vor.u32 %v7221_v19, %v7219_v17  ;;  %v3411_v49 = vshll.u32 %v3358_v14, 16  ;;  %v7245_v55 = vld [vmem:[#allocation3 + $0x10] sm:$0xe] }
 0x1b6   :  { %v2019_v35 = vor.u32 %v2017_v16, %v2016_v15  ;;  %v2020_v37 = vrot.slane %v2016_v15, 4  ;;  %v2024_v39 = vrot.slane %v2022_v26, 7  ;;  %v2407_v53 = vrot.slane %v2405_v22, 5  ;;  %v3361_v24 = vld [vmem:[#allocation3 + $0x28] sm:$0xf] }
 0x1b7   :  { %v2417_v59 = vrot.slane %v2416_v34, 4  ;;  %v2421_v1 = vrot.slane %v2419_v30, 5  ;;  %v3416_v2 = vshrl.u32 %v3359_v21, 16  ;;  %v7251_v5 = vrot.slane %v3394_v50, 4 }
 0x1b8   :  { %v2160_v56 = vsel %vm6978_vm5, %v2019_v35, %v2159_v58  ;;  %v2163_v46 = vsel %vm6765_vm0, %v2020_v37, %v2162_v60  ;;  %v2027_v51 = vor.u32 %v2025_v20, %v2024_v39  ;;  %v2028_v54 = vrot.slane %v2024_v39, 4  ;;  %v1640_v58 = vpop.f32.mrb[20].mxu0  ;;  %v3360_v60 = vld [vmem:[#allocation3 + $0x24] sm:$0x1]  ;;  %v7264_v37 = vld [vmem:[#allocation3 + $0x14] sm:$0x1] }
 0x1b9   :  { %2161 = vst [vmem:[#allocation3 + $0x58] sm:$0xf] %v2160_v56  ;;  %2164 = vst [vmem:[#allocation3 + $0x5c] sm:$0x1] %v2163_v46  ;;  %v3419_v13 = vshll.u32 %v3359_v21, 16  ;;  %v1701_v14 = vmul.f32 %v6952_v38, %v1640_v58  ;;  %v1642_v15 = vpop.f32.mrb[21].mxu0  ;;  %v2408_v16 = vsel %vm6080_vm2, %v2403_v32, %v2407_v53  ;;  %v2422_v26 = vsel %vm6080_vm2, %v2417_v59, %v2421_v1 }
 0x1ba   :  { %v2166_v17 = vsel %vm6978_vm5, %v2027_v51, %v2165_v47  ;;  %v2169_v19 = vsel %vm6765_vm0, %v2028_v54, %v2168_v31  ;;  %v1702_v11 = vmul.f32 %v6789_v61, %v1642_v15  ;;  %v1644_v50 = vpop.f32.mrb[22].mxu0  ;;  %v5337_v30 = vcombine.low %v2408_v16, %v2422_v26  ;;  %v5941_v31 = vld [vmem:[#allocation3 + $0x30] ss:$8 sps:$4 sm:$0xff]   ;;  %v7274_v59 = vld [vmem:[#allocation3 + $0x2c] sm:$0x1] }
 0x1bb   :  { %2167 = vst [vmem:[#allocation3 + $0x60] sm:$0xf] %v2166_v17  ;;  %2170 = vst [vmem:[#allocation3 + $0x64] sm:$0x1] %v2169_v19  ;;  %v7260_v35 = vrot.slane %v3408_v42, 4  ;;  %v7262_v21 = vrot.slane %v3411_v49, 5  ;;  %v1746_v39 = vadd.f32 %v6959_v43, %v1701_v14  ;;  %v1703_v20 = vmul.f32 %v6952_v38, %v1644_v50 }
 0x1bc   :  { %v1646_v47 = vpop.f32.mrb[23].mxu0  ;;  %v3418_v32 = vrot.slane %v3416_v2, 4  ;;  %v3425_v34 = vshll.u32 %v3360_v60, 16  ;;  %v7269_v56 = vadd.f32 %v6796_v0, %v1702_v11  ;;  %4523 = vmatprep.mubr.bf16.mxu1 %v5337_v30  ;;  %v3421_v42 = vrot.slane %v3419_v13, 5  ;;  %v7285_v60 = vld [vmem:[#allocation3 + $0x8] sm:$0xf] }
 0x1bd   :  { %v1704_v46 = vmul.f32 %v6789_v61, %v1646_v47  ;;  %v3430_v51 = vshrl.u32 %v3361_v24, 16  ;;  %v1768_v49 = vmax.f32 %v1746_v39, 0.0  ;;  %v1748_v54 = vadd.f32 %v6959_v43, %v1703_v20  ;;  %4524 = vmatmul.mubr.bf16.gmra.mrb[12].mxu1 %v5941_v31  ;;  %v2171_v47 = vld [vmem:[#allocation3 + $0x68] sm:$0xf]  ;;  %v2180_v53 = vld [vmem:[#allocation3 + $0x74] sm:$0x1] }
 0x1be   :  { %v3433_v1 = vshll.u32 %v3361_v24, 16  ;;  %v2677_v58 = vsel %vm6996_vm8, %v5350_v10, %v2676_v3  ;;  %v2436_v11 = vsel %vm6080_vm2, %v7179_v63, %v7144_v4  ;;  %v3422_v50 = vor.u32 %v3421_v42, %v3418_v32  ;;  %v2174_v42 = vld [vmem:[#allocation3 + $0x6c] sm:$0x1] }
 0x1bf   :  { %v7277_v2 = vadd.f32 %v6796_v0, %v1704_v46  ;;  %v5530_v13 = vpack.c.bf16 %v1768_v49, %v1768_v49  ;;  %v1769_v14 = vmax.f32 %v1748_v54, 0.0  ;;  %v7291_v27 = vrot.slane %v3425_v34, 5 }
 0x1c0   :  { %v2593_v17 = vld [vmem:[#allocation3 + $0x58] sm:$0xe]  ;;  %v2594_v19 = vld [vmem:[#allocation3 + $0x5c] sm:$0x1]  ;;  %v7293_v36 = vrot.slane %v3430_v51, 4  ;;  %v7297_v20 = vrot.slane %v3433_v1, 5 }
 0x1c1   :  { %v5351_v15 = vrot.slane %v2593_v17, 9  ;;  %v2680_v16 = vrot.slane %v2594_v19, 5  ;;  %v2297_v26 = vld [vmem:[#allocation3 + $0x58] sm:$0xf]  ;;  %v2030_v30 = vshrl.u32 %v5530_v13, 16  ;;  %v5531_v10 = vpack.c.bf16 %v1769_v14, %v1769_v14 }
 0x1c2   :  { %v5943_v24 = vld [vmem:[#allocation3 + $0x58] ss:$8 sps:$4 sm:$0xff]   ;;  %v2298_v39 = vld [vmem:[#allocation3 + $0x5c] sm:$0x1]  ;;  %v2438_v46 = vshrl.u32 %v2297_v26, 16  ;;  %v2441_v49 = vshll.u32 %v2297_v26, 16 }
 0x1c3   :  { %v2681_v3 = vsel %vm6996_vm8, %v5351_v15, %v2680_v16  ;;  %4628 = vmatprep.mubr.bf16.mxu0 %v5943_v24  ;;  %v2032_v32 = vrot.slane %v2030_v30, 7  ;;  %v2033_v34 = vshll.u32 %v5530_v13, 16  ;;  %v2038_v51 = vshrl.u32 %v5531_v10, 16  ;;  %v2177_v19 = vld [vmem:[#allocation3 + $0x70] sm:$0xf] }
 0x1c4   :  { %v5362_v31 = vcombine.low %v2677_v58, %v2681_v3  ;;  %v2851_v17 = vshrl.u32 %v7285_v60, 16  ;;  %v2440_v14 = vrot.slane %v2438_v46, 4  ;;  %v2443_v15 = vrot.slane %v2441_v49, 5  ;;  %v2299_v1 = vld [vmem:[#allocation3 + $0x60] sm:$0xf] }
 0x1c5   :  { %v2447_v16 = vshll.u32 %v2298_v39, 16  ;;  %v7301_v22 = vrot.slane %v3422_v50, 4  ;;  %v2035_v24 = vor.u32 %v2033_v34, %v2032_v32  ;;  %v2036_v58 = vrot.slane %v2032_v32, 4  ;;  %v2300_v30 = vld [vmem:[#allocation3 + $0x64] sm:$0x1] }
 0x1c6   :  { %4629 = vmatmul.mubr.bf16.gmra.mrb[48].mxu0 %v5362_v31  ;;  %v2040_v3 = vrot.slane %v2038_v51, 7  ;;  %v2041_v26 = vshll.u32 %v5531_v10, 16  ;;  %v2444_v54 = vor.u32 %v2443_v15, %v2440_v14  ;;  %v2452_v13 = vshrl.u32 %v2299_v1, 16  ;;  %v7311_v32 = vld [vmem:[#allocation3 + $0xc] sm:$0x1] }
 0x1c7   :  { %v2455_v9 = vshll.u32 %v2299_v1, 16  ;;  %v3400_v31 = vsel %vm6080_vm2, %v7251_v5, %v7237_v44  ;;  %v2172_v39 = vsel %vm6978_vm5, %v2035_v24, %v2171_v47  ;;  %v2175_v50 = vsel %vm6765_vm0, %v2036_v58, %v2174_v42  ;;  %v7313_v10 = vld [vmem:[#allocation3 + $0x10] sm:$0xf]  ;;  %v2595_v15 = vld [vmem:[#allocation3 + $0x60] sm:$0xe] }
 0x1c8   :  { %v2043_v46 = vor.u32 %v2041_v26, %v2040_v3  ;;  %v2044_v49 = vrot.slane %v2040_v3, 4  ;;  %2173 = vst [vmem:[#allocation3 + $0x68] sm:$0xf] %v2172_v39  ;;  %2176 = vst [vmem:[#allocation3 + $0x6c] sm:$0x1] %v2175_v50  ;;  %v2445_v34 = vrot.slane %v2444_v54, 4  ;;  %v3414_v54 = vsel %vm6080_vm2, %v7260_v35, %v7262_v21 }
 0x1c9   :  { %v2449_v51 = vrot.slane %v2447_v16, 5  ;;  %v7315_v14 = vrot.slane %v2851_v17, 4  ;;  %v2854_v44 = vshll.u32 %v7285_v60, 16  ;;  %v1650_v42 = vpop.f32.mrb[24].mxu0  ;;  %v2596_v1 = vld [vmem:[#allocation3 + $0x64] sm:$0x1] }
 0x1ca   :  { %v2178_v5 = vsel %vm6978_vm5, %v2043_v46, %v2177_v19  ;;  %v2181_v47 = vsel %vm6765_vm0, %v2044_v49, %v2180_v53  ;;  %v2461_v24 = vshll.u32 %v2300_v30, 16  ;;  %v1705_v17 = vmul.f32 %v6952_v38, %v1650_v42  ;;  %v1652_v60 = vpop.f32.mrb[25].mxu0  ;;  %v5946_v46 = vld [vmem:[#allocation3 + $0x50] ss:$8 sps:$4 sm:$0xff]  }
 0x1cb   :  { %2179 = vst [vmem:[#allocation3 + $0x70] sm:$0xf] %v2178_v5  ;;  %2182 = vst [vmem:[#allocation3 + $0x74] sm:$0x1] %v2181_v47  ;;  %v2450_v19 = vsel %vm6080_vm2, %v2445_v34, %v2449_v51  ;;  %v2860_v16 = vshll.u32 %v7311_v32, 16  ;;  %v2865_v53 = vshrl.u32 %v7313_v10, 16  ;;  %v1706_v58 = vmul.f32 %v6789_v61, %v1652_v60 }
 0x1cc   :  { %v1654_v3 = vpop.f32.mrb[26].mxu0  ;;  %v5338_v35 = vcombine.low %v2436_v11, %v2450_v19  ;;  %v2454_v21 = vrot.slane %v2452_v13, 4  ;;  %v2457_v26 = vrot.slane %v2455_v9, 5  ;;  %v1750_v30 = vadd.f32 %v6959_v43, %v1705_v17 }
 0x1cd   :  { %v1707_v39 = vmul.f32 %v6952_v38, %v1654_v3  ;;  %v1656_v50 = vpop.f32.mrb[27].mxu0  ;;  %v5352_v49 = vrot.slane %v2595_v15, 9  ;;  %v2684_v34 = vrot.slane %v2596_v1, 5  ;;  %v7340_v51 = vadd.f32 %v6796_v0, %v1706_v58 }
 0x1ce   :  { %v1708_v5 = vmul.f32 %v6789_v61, %v1656_v50  ;;  %4531 = vmatprep.mubr.bf16.mxu1 %v5338_v35  ;;  %v7343_v47 = vrot.slane %v2461_v24, 5  ;;  %v7345_v4 = vrot.slane %v2854_v44, 5  ;;  %v1770_v63 = vmax.f32 %v1750_v30, 0.0 }
 0x1cf   :  { %7932 = vst [vmem:[#allocation6_spill] sm:$0xff] %v7340_v51  ;;  %v1752_v9 = vadd.f32 %v6959_v43, %v1707_v39  ;;  %4532 = vmatmul.mubr.bf16.gmra.mrb[16].mxu1 %v5946_v46  ;;  %v7348_v11 = vrot.slane %v2865_v53, 4  ;;  %v2868_v13 = vshll.u32 %v7313_v10, 16  ;;  %v2597_v15 = vld [vmem:[#allocation3 + $0x68] sm:$0xe]  ;;  %v2458_v17 = vor.u32 %v2457_v26, %v2454_v21 }
 0x1d0   :  { %v7352_v42 = vadd.f32 %v6796_v0, %v1708_v5  ;;  %v2598_v1 = vld [vmem:[#allocation3 + $0x6c] sm:$0x1]  ;;  %v7354_v60 = vcombine.low %v3400_v31, %v3414_v54  ;;  %v7934_v44 = vrot.slane %v7193_v28, 9  ;;  %v5532_v19 = vpack.c.bf16 %v1770_v63, %v1770_v63  ;;  %v2301_v3 = vld [vmem:[#allocation3 + $0x68] sm:$0xf] }
 0x1d1   :  { %v1771_v53 = vmax.f32 %v1752_v9, 0.0  ;;  %v5353_v58 = vrot.slane %v2597_v15, 9  ;;  %v2688_v10 = vrot.slane %v2598_v1, 5  ;;  %v2685_v30 = vsel %vm6996_vm8, %v5352_v49, %v2684_v34  ;;  %v2302_v21 = vld [vmem:[#allocation3 + $0x6c] sm:$0x1] }
 0x1d2   :  { %7933 = vst [vmem:[#allocation7_spill] sm:$0xff] %v7352_v42  ;;  %v7362_v24 = vsel %vm6996_vm8, %v7934_v44, %v3180_v12  ;;  %v5949_v35 = vld [vmem:[#allocation3 + $0x68] ss:$8 sps:$4 sm:$0xff]   ;;  %v7935_v31 = vrot.slane %v7264_v37, 5  ;;  %v7936_v29 = vrot.slane %v7245_v55, 9  ;;  %v3436_v12 = vor.u32 %v7297_v20, %v7293_v36 }
 0x1d3   :  { %v2857_v54 = vor.u32 %v7345_v4, %v7315_v14  ;;  %v2046_v26 = vshrl.u32 %v5532_v19, 16  ;;  %v5533_v39 = vpack.c.bf16 %v1771_v53, %v1771_v53  ;;  %v2689_v50 = vsel %vm6996_vm8, %v5353_v58, %v2688_v10  ;;  %v2821_v46 = vld [vmem:[#allocation3 + $0x14] sm:$0x1]  ;;  %v2183_v37 = vld [vmem:[#allocation3 + $0x78] sm:$0xf]  ;;  %4636 = vmatprep.mubr.bf16.mxu0 %v5949_v35 }
 0x1d4   :  { %v7372_v28 = vsel %vm6996_vm8, %v7936_v29, %v7935_v31  ;;  %v7380_v49 = vrot.slane %v2868_v13, 5  ;;  %v5363_v55 = vcombine.low %v2685_v30, %v2689_v50  ;;  %v2466_v34 = vshrl.u32 %v2301_v3, 16  ;;  %v2186_v36 = vld [vmem:[#allocation3 + $0x7c] sm:$0x1]  ;;  %v2189_v4 = vld [vmem:[#allocation3 + $0x80] sm:$0xf] }
 0x1d5   :  { %v2469_v5 = vshll.u32 %v2301_v3, 16  ;;  %v2475_v63 = vshll.u32 %v2302_v21, 16  ;;  %v2048_v9 = vrot.slane %v2046_v26, 7  ;;  %v2049_v15 = vshll.u32 %v5532_v19, 16  ;;  %v2303_v58 = vld [vmem:[#allocation3 + $0x70] sm:$0xf] }
 0x1d6   :  { %v2054_v20 = vshrl.u32 %v5533_v39, 16  ;;  %v2459_v1 = vrot.slane %v2458_v17, 4  ;;  %v2057_v14 = vshll.u32 %v5533_v39, 16  ;;  %4637 = vmatmul.mubr.bf16.gmra.mrb[52].mxu0 %v5363_v55  ;;  %v2468_v44 = vrot.slane %v2466_v34, 4  ;;  %v2304_v35 = vld [vmem:[#allocation3 + $0x74] sm:$0x1] }
 0x1d7   :  { %v2471_v53 = vrot.slane %v2469_v5, 5  ;;  %v2874_v10 = vshll.u32 %v2821_v46, 16  ;;  %v2051_v13 = vor.u32 %v2049_v15, %v2048_v9  ;;  %v2052_v31 = vrot.slane %v2048_v9, 4  ;;  %v2192_v50 = vld [vmem:[#allocation3 + $0x84] sm:$0x1] }
 0x1d8   :  { %v2056_v29 = vrot.slane %v2054_v20, 7  ;;  %v2480_v30 = vshrl.u32 %v2303_v58, 16  ;;  %v2477_v21 = vrot.slane %v2475_v63, 5  ;;  %v2483_v26 = vshll.u32 %v2303_v58, 16  ;;  %v2599_v5 = vld [vmem:[#allocation3 + $0x70] sm:$0xe] }
 0x1d9   :  { %v2472_v3 = vor.u32 %v2471_v53, %v2468_v44  ;;  %v2871_v19 = vor.u32 %v7380_v49, %v7348_v11  ;;  %v2184_v17 = vsel %vm6978_vm5, %v2051_v13, %v2183_v37  ;;  %v2187_v39 = vsel %vm6765_vm0, %v2052_v31, %v2186_v36  ;;  %v2600_v49 = vld [vmem:[#allocation3 + $0x74] sm:$0x1]  ;;  %v7398_v44 = vld [vmem:[#allocation3 + $0x18] sm:$0xe]  ;;  %v3119_v13 = vld [vmem:[#allocation3 + $0x1c] sm:$0x1] }
 0x1da   :  { %v2059_v55 = vor.u32 %v2057_v14, %v2056_v29  ;;  %v2060_v46 = vrot.slane %v2056_v29, 4  ;;  %2185 = vst [vmem:[#allocation3 + $0x78] sm:$0xf] %v2184_v17  ;;  %2188 = vst [vmem:[#allocation3 + $0x7c] sm:$0x1] %v2187_v39  ;;  %v2482_v9 = vrot.slane %v2480_v30, 4  ;;  %v2464_v53 = vsel %vm6080_vm2, %v2459_v1, %v7343_v47 }
 0x1db   :  { %v2473_v34 = vrot.slane %v2472_v3, 4  ;;  %v2485_v15 = vrot.slane %v2483_v26, 5  ;;  %v2489_v20 = vshll.u32 %v2304_v35, 16  ;;  %v7392_v37 = vrot.slane %v3436_v12, 4  ;;  %v7415_v3 = vld [vmem:[#allocation3 + $0x30] sm:$0xf] }
 0x1dc   :  { %v2190_v63 = vsel %vm6978_vm5, %v2059_v55, %v2189_v4  ;;  %v2193_v11 = vsel %vm6765_vm0, %v2060_v46, %v2192_v50  ;;  %v7937_v36 = vshll.u32 %v7274_v59, 16  ;;  %v7407_v12 = vrot.slane %v2860_v16, 5  ;;  %v7409_v59 = vld [vmem:[#allocation3 + $0x20] sm:$0xe]  ;;  %v1660_v31 = vpop.f32.mrb[28].mxu0 }
 0x1dd   :  { %2191 = vst [vmem:[#allocation3 + $0x80] sm:$0xf] %v2190_v63  ;;  %2194 = vst [vmem:[#allocation3 + $0x84] sm:$0x1] %v2193_v11  ;;  %v2478_v4 = vsel %vm6080_vm2, %v2473_v34, %v2477_v21  ;;  %v2486_v58 = vor.u32 %v2485_v15, %v2482_v9  ;;  %v5354_v35 = vrot.slane %v2599_v5, 9  ;;  %v7411_v30 = vrot.slane %v2857_v54, 4 }
 0x1de   :  { %v7396_v14 = vrot.slane %v7937_v36, 5  ;;  %v5339_v29 = vcombine.low %v2464_v53, %v2478_v4  ;;  %v7413_v50 = vrot.slane %v2874_v10, 5  ;;  %v1709_v47 = vmul.f32 %v6952_v38, %v1660_v31  ;;  %v1662_v1 = vpop.f32.mrb[29].mxu0  ;;  %v5952_v21 = vld [vmem:[#allocation3 + $0x60] ss:$8 sps:$4 sm:$0xff]  }
 0x1df   :  { %v2692_v26 = vrot.slane %v2600_v49, 5  ;;  %v7418_v32 = vrot.slane %v2489_v20, 5  ;;  %v7420_v16 = vrot.slane %v2871_v19, 4  ;;  %v1710_v17 = vmul.f32 %v6789_v61, %v1662_v1  ;;  %v1664_v39 = vpop.f32.mrb[30].mxu0  ;;  %v7429_v15 = vld [vmem:[#allocation3 + $0x24] sm:$0x1] }
 0x1e0   :  { %4539 = vmatprep.mubr.bf16.mxu1 %v5339_v29  ;;  %v5384_v54 = vrot.slane %v7398_v44, 9  ;;  %v3188_v55 = vrot.slane %v3119_v13, 5  ;;  %v1754_v46 = vadd.f32 %v6959_v43, %v1709_v47  ;;  %v1711_v34 = vmul.f32 %v6952_v38, %v1664_v39  ;;  %v1666_v5 = vpop.f32.mrb[31].mxu0  ;;  %v3364_v36 = vld [vmem:[#allocation3 + $0x34] sm:$0x1] }
 0x1e1   :  { %4540 = vmatmul.mubr.bf16.gmra.mrb[20].mxu1 %v5952_v21  ;;  %v7427_v9 = vrot.slane %v2486_v58, 4  ;;  %v3444_v19 = vshrl.u32 %v7415_v3, 16  ;;  %v7433_v20 = vadd.f32 %v6796_v0, %v1710_v17  ;;  %v1712_v63 = vmul.f32 %v6789_v61, %v1666_v5  ;;  %v2601_v11 = vld [vmem:[#allocation3 + $0x78] sm:$0xe]  ;;  %v2602_v49 = vld [vmem:[#allocation3 + $0x7c] sm:$0x1] }
 0x1e2   :  { %v1772_v44 = vmax.f32 %v1754_v46, 0.0  ;;  %v1756_v53 = vadd.f32 %v6959_v43, %v1711_v34  ;;  %v5355_v4 = vrot.slane %v2601_v11, 9  ;;  %v2696_v58 = vrot.slane %v2602_v49, 5  ;;  %v2305_v13 = vld [vmem:[#allocation3 + $0x78] sm:$0xf] }
 0x1e3   :  { %v7446_v61 = vadd.f32 %v6796_v0, %v1712_v63  ;;  %v2693_v29 = vsel %vm6996_vm8, %v5354_v35, %v2692_v26  ;;  %v2306_v47 = vld [vmem:[#allocation3 + $0x7c] sm:$0x1]  ;;  %v2494_v39 = vshrl.u32 %v2305_v13, 16  ;;  %v2497_v35 = vshll.u32 %v2305_v13, 16  ;;  %v3365_v51 = vld [vmem:[#allocation3 + $0x38] sm:$0xf] }
 0x1e4   :  { %v5959_v31 = vld [vmem:[#allocation3 + $0x78] ss:$8 sps:$4 sm:$0xff]   ;;  %v5534_v21 = vpack.c.bf16 %v1772_v44, %v1772_v44  ;;  %v1773_v17 = vmax.f32 %v1756_v53, 0.0  ;;  %v2697_v0 = vsel %vm6996_vm8, %v5355_v4, %v2696_v58  ;;  %v2503_v26 = vshll.u32 %v2306_v47, 16  ;;  %v2195_v44 = vld [vmem:[#allocation3 + $0x88] sm:$0xf] }
 0x1e5   :  { %7938 = vst [vmem:[#allocation8_spill] sm:$0xff] %v7446_v61  ;;  %4644 = vmatprep.mubr.bf16.mxu0 %v5959_v31  ;;  %v5364_v46 = vcombine.low %v2693_v29, %v2697_v0  ;;  %v3192_v34 = vrot.slane %v7429_v15, 5  ;;  %v2496_v11 = vrot.slane %v2494_v39, 4  ;;  %v2307_v49 = vld [vmem:[#allocation3 + $0x80] sm:$0xf]  ;;  %v7463_v1 = vsel %vm6996_vm8, %v5384_v54, %v3188_v55 }
 0x1e6   :  { %v2062_v5 = vshrl.u32 %v5534_v21, 16  ;;  %v5535_v63 = vpack.c.bf16 %v1773_v17, %v1773_v17  ;;  %v2198_v53 = vld [vmem:[#allocation3 + $0x8c] sm:$0x1]  ;;  %v2492_v4 = vsel %vm6080_vm2, %v7427_v9, %v7418_v32  ;;  %v2499_v58 = vrot.slane %v2497_v35, 5  ;;  %v2308_v13 = vld [vmem:[#allocation3 + $0x84] sm:$0x1] }
 0x1e7   :  { %4645 = vmatmul.mubr.bf16.gmra.mrb[56].mxu0 %v5364_v46  ;;  %v3446_v31 = vrot.slane %v3444_v19, 4  ;;  %v3447_v15 = vshll.u32 %v7415_v3, 16  ;;  %v2065_v47 = vshll.u32 %v5534_v21, 16  ;;  %v2508_v0 = vshrl.u32 %v2307_v49, 16  ;;  %v2201_v54 = vld [vmem:[#allocation3 + $0x90] sm:$0xf] }
 0x1e8   :  { %v2064_v29 = vrot.slane %v2062_v5, 7  ;;  %v2070_v17 = vshrl.u32 %v5535_v63, 16  ;;  %v2073_v39 = vshll.u32 %v5535_v63, 16  ;;  %v2204_v55 = vld [vmem:[#allocation3 + $0x94] sm:$0x1]  ;;  %v2500_v43 = vor.u32 %v2499_v58, %v2496_v11 }
 0x1e9   :  { %v2505_v38 = vrot.slane %v2503_v26, 5  ;;  %v2511_v46 = vshll.u32 %v2307_v49, 16  ;;  %v2510_v32 = vrot.slane %v2508_v0, 4  ;;  %v2517_v19 = vshll.u32 %v2308_v13, 16  ;;  %v2603_v26 = vld [vmem:[#allocation3 + $0x80] sm:$0xe] }
 0x1ea   :  { %v2067_v10 = vor.u32 %v2065_v47, %v2064_v29  ;;  %v2068_v42 = vrot.slane %v2064_v29, 4  ;;  %v2072_v61 = vrot.slane %v2070_v17, 7  ;;  %v2501_v9 = vrot.slane %v2500_v43, 4  ;;  %v2604_v49 = vld [vmem:[#allocation3 + $0x84] sm:$0x1] }
 0x1eb   :  { %v2513_v35 = vrot.slane %v2511_v46, 5  ;;  %v3449_v3 = vrot.slane %v3447_v15, 5  ;;  %v3453_v13 = vshll.u32 %v3364_v36, 16  ;;  %v2822_v47 = vld [vmem:[#allocation3 + $0x18] sm:$0xf]  ;;  %v3461_v7 = vshll.u32 %v3365_v51, 16 }
 0x1ec   :  { %v2196_v21 = vsel %vm6978_vm5, %v2067_v10, %v2195_v44  ;;  %v2199_v5 = vsel %vm6765_vm0, %v2068_v42, %v2198_v53  ;;  %v2075_v63 = vor.u32 %v2073_v39, %v2072_v61  ;;  %v2076_v11 = vrot.slane %v2072_v61, 4  ;;  %v2823_v15 = vld [vmem:[#allocation3 + $0x1c] sm:$0x1]  ;;  %v2824_v17 = vld [vmem:[#allocation3 + $0x20] sm:$0xf] }
 0x1ed   :  { %2197 = vst [vmem:[#allocation3 + $0x88] sm:$0xf] %v2196_v21  ;;  %2200 = vst [vmem:[#allocation3 + $0x8c] sm:$0x1] %v2199_v5  ;;  %v2506_v58 = vsel %vm6080_vm2, %v2501_v9, %v2505_v38  ;;  %v2514_v43 = vor.u32 %v2513_v35, %v2510_v32  ;;  %v3450_v29 = vor.u32 %v3449_v3, %v3446_v31  ;;  %v3366_v61 = vld [vmem:[#allocation3 + $0x3c] sm:$0x1] }
 0x1ee   :  { %v2202_v10 = vsel %vm6978_vm5, %v2075_v63, %v2201_v54  ;;  %v2205_v42 = vsel %vm6765_vm0, %v2076_v11, %v2204_v55  ;;  %v5340_v44 = vcombine.low %v2492_v4, %v2506_v58  ;;  %v3458_v53 = vshrl.u32 %v3365_v51, 16  ;;  %v5966_v0 = vld [vmem:[#allocation3 + $0x70] ss:$8 sps:$4 sm:$0xff]   ;;  %v2825_v4 = vld [vmem:[#allocation3 + $0x24] sm:$0x1] }
 0x1ef   :  { %2203 = vst [vmem:[#allocation3 + $0x90] sm:$0xf] %v2202_v10  ;;  %2206 = vst [vmem:[#allocation3 + $0x94] sm:$0x1] %v2205_v42  ;;  %v5356_v39 = vrot.slane %v2603_v26, 9  ;;  %v2700_v38 = vrot.slane %v2604_v49, 5  ;;  %v5398_v58 = vcombine.low %v7362_v24, %v7372_v28 }
 0x1f0   :  { %v7939_v31 = vrot.slane %v7409_v59, 9  ;;  %4547 = vmatprep.mubr.bf16.mxu1 %v5340_v44  ;;  %v7486_v54 = vrot.slane %v2517_v19, 5  ;;  %v3460_v52 = vrot.slane %v3458_v53, 4  ;;  %v2879_v55 = vshrl.u32 %v2822_v47, 16  ;;  %v5984_v24 = vld [vmem:[#allocation3 + $0x20] ss:$8 sps:$4 sm:$0xff]  }
 0x1f1   :  { %v2882_v46 = vshll.u32 %v2822_v47, 16  ;;  %4548 = vmatmul.mubr.bf16.gmra.mrb[24].mxu1 %v5966_v0  ;;  %v7488_v32 = vrot.slane %v2514_v43, 4  ;;  %v3451_v9 = vrot.slane %v3450_v29, 4  ;;  %v3455_v35 = vrot.slane %v3453_v13, 5  ;;  %v3123_v0 = vld [vmem:[#allocation3 + $0x2c] sm:$0x1] }
 0x1f2   :  { %v7484_v36 = vsel %vm6996_vm8, %v7939_v31, %v3192_v34  ;;  %v3463_v3 = vrot.slane %v3461_v7, 5  ;;  %v3467_v21 = vshll.u32 %v3366_v61, 16  ;;  %v2881_v59 = vrot.slane %v2879_v55, 4  ;;  %v3124_v31 = vld [vmem:[#allocation3 + $0x30] sm:$0xe]  ;;  %v5985_v28 = vld [vmem:[%s7918_s3 + $0x208] sm:$0xff]  }
 0x1f3   :  { %v2884_v5 = vrot.slane %v2882_v46, 5  ;;  %v2888_v63 = vshll.u32 %v2823_v15, 16  ;;  %v2893_v11 = vshrl.u32 %v2824_v17, 16  ;;  %v2896_v51 = vshll.u32 %v2824_v17, 16  ;;  %v3122_v17 = vld [vmem:[#allocation3 + $0x28] sm:$0xe] }
 0x1f4   :  { %v3464_v34 = vor.u32 %v3463_v3, %v3460_v52  ;;  %v2902_v26 = vshll.u32 %v2825_v4, 16  ;;  %v2605_v19 = vld [vmem:[#allocation3 + $0x88] sm:$0xe]  ;;  %v2606_v49 = vld [vmem:[#allocation3 + $0x8c] sm:$0x1]  ;;  %v7940_v43 = vsel %vm6080_vm2, %v7392_v37, %v7396_v14  ;;  %v7941_v29 = vsel %vm6080_vm2, %v7301_v22, %v7291_v27 }
 0x1f5   :  { %v7502_v13 = vcombine.low %v7941_v29, %v7940_v43  ;;  %v7942_v47 = vsel %vm6080_vm2, %v7420_v16, %v7413_v50  ;;  %v7943_v15 = vsel %vm6080_vm2, %v7411_v30, %v7407_v12  ;;  %v5399_v37 = vcombine.low %v7463_v1, %v7484_v36  ;;  %v2309_v42 = vld [vmem:[#allocation3 + $0x88] sm:$0xf]  ;;  %v2310_v44 = vld [vmem:[#allocation3 + $0x8c] sm:$0x1]  ;;  %v3125_v4 = vld [vmem:[#allocation3 + $0x34] sm:$0x1] }
 0x1f6   :  { %v7514_v10 = vcombine.low %v7943_v15, %v7942_v47  ;;  %v2701_v22 = vsel %vm6996_vm8, %v5356_v39, %v2700_v38  ;;  %v5357_v27 = vrot.slane %v2605_v19, 9  ;;  %v2704_v14 = vrot.slane %v2606_v49, 5  ;;  %v5973_v53 = vld [vmem:[#allocation3 + $0x88] ss:$8 sps:$4 sm:$0xff]   ;;  %v3368_v19 = vld [vmem:[#allocation3 + $0x44] sm:$0x1] }
 0x1f7   :  { %v2885_v61 = vor.u32 %v2884_v5, %v2881_v59  ;;  %v2520_v50 = vsel %vm6080_vm2, %v7488_v32, %v7486_v54  ;;  %v2522_v12 = vshrl.u32 %v2309_v42, 16  ;;  %v2525_v30 = vshll.u32 %v2309_v42, 16  ;;  %4652 = vmatprep.mubr.bf16.mxu0 %v5973_v53  ;;  %v3367_v32 = vld [vmem:[#allocation3 + $0x40] sm:$0xf]  ;;  %v3130_v36 = vld [vmem:[#allocation3 + $0x58] sm:$0xe] }
 0x1f8   :  { %v3456_v16 = vsel %vm6080_vm2, %v3451_v9, %v3455_v35  ;;  %v2705_v39 = vsel %vm6996_vm8, %v5357_v27, %v2704_v14  ;;  %v2531_v38 = vshll.u32 %v2310_v44, 16  ;;  %v3465_v7 = vrot.slane %v3464_v34, 4  ;;  %v3369_v34 = vld [vmem:[#allocation3 + $0x48] sm:$0xf] }
 0x1f9   :  { %v3469_v52 = vrot.slane %v3467_v21, 5  ;;  %v5365_v55 = vcombine.low %v2701_v22, %v2705_v39  ;;  %v2524_v46 = vrot.slane %v2522_v12, 4  ;;  %v2527_v3 = vrot.slane %v2525_v30, 5  ;;  %v3370_v12 = vld [vmem:[#allocation3 + $0x4c] sm:$0x1] }
 0x1fa   :  { %v2890_v54 = vrot.slane %v2888_v63, 5  ;;  %v2886_v9 = vrot.slane %v2885_v61, 4  ;;  %v2895_v35 = vrot.slane %v2893_v11, 4  ;;  %v2898_v5 = vrot.slane %v2896_v51, 5 }
 0x1fb   :  { %v3470_v59 = vsel %vm6080_vm2, %v3465_v7, %v3469_v52  ;;  %4653 = vmatmul.mubr.bf16.gmra.mrb[60].mxu0 %v5365_v55  ;;  %v2528_v49 = vor.u32 %v2527_v3, %v2524_v46  ;;  %v2533_v43 = vrot.slane %v2531_v38, 5  ;;  %v2904_v21 = vrot.slane %v2902_v26, 5  ;;  %v2827_v52 = vld [vmem:[#allocation3 + $0x2c] sm:$0x1]  ;;  %v5980_v55 = vld [vmem:[#allocation3 + $0x80] ss:$8 sps:$4 sm:$0xff]  }
 0x1fc   :  { %v7530_v29 = vcombine.low %v3456_v16, %v3470_v59  ;;  %4790 = vmatprep.mubr.bf16.mxu0 %v7354_v60  ;;  %v2899_v47 = vor.u32 %v2898_v5, %v2895_v35  ;;  %v5386_v15 = vrot.slane %v3122_v17, 9  ;;  %v3196_v63 = vrot.slane %v3123_v0, 5  ;;  %v2826_v17 = vld [vmem:[#allocation3 + $0x28] sm:$0xf]  ;;  %v2829_v35 = vld [vmem:[#allocation3 + $0x34] sm:$0x1] }
 0x1fd   :  { %v5387_v22 = vrot.slane %v3124_v31, 9  ;;  %v2529_v27 = vrot.slane %v2528_v49, 4  ;;  %v3200_v14 = vrot.slane %v3125_v4, 5  ;;  %v3472_v42 = vshrl.u32 %v3367_v32, 16  ;;  %v5982_v31 = vld [vmem:[#allocation3 + $0x10] ss:$8 sps:$4 sm:$0xff]  }
 0x1fe   :  { %v3475_v44 = vshll.u32 %v3367_v32, 16  ;;  %v2900_v11 = vrot.slane %v2899_v47, 4  ;;  %v7535_v51 = vsel %vm6996_vm8, %v5386_v15, %v3196_v63  ;;  %v3481_v61 = vshll.u32 %v3368_v19, 16  ;;  %v2828_v4 = vld [vmem:[#allocation3 + $0x30] sm:$0xf] }
 0x1ff   :  { %v3486_v53 = vshrl.u32 %v3369_v34, 16  ;;  %v2534_v26 = vsel %vm6080_vm2, %v2529_v27, %v2533_v43  ;;  %v7541_v60 = vsel %vm6996_vm8, %v5387_v22, %v3200_v14  ;;  %v3474_v30 = vrot.slane %v3472_v42, 4  ;;  %v3126_v5 = vld [vmem:[#allocation3 + $0x38] sm:$0xe]  ;;  %v3128_v43 = vld [vmem:[#allocation3 + $0x40] sm:$0xe] }
 0x200   :  { %v3477_v16 = vrot.slane %v3475_v44, 5  ;;  %v5341_v0 = vcombine.low %v2520_v50, %v2534_v26  ;;  %v2891_v39 = vsel %vm6080_vm2, %v2886_v9, %v2890_v54  ;;  %v2905_v38 = vsel %vm6080_vm2, %v2900_v11, %v2904_v21  ;;  %v3127_v50 = vld [vmem:[#allocation3 + $0x3c] sm:$0x1]  ;;  %v3129_v42 = vld [vmem:[#allocation3 + $0x44] sm:$0x1] }
 0x201   :  { %v5400_v7 = vcombine.low %v7535_v51, %v7541_v60  ;;  %v3483_v3 = vrot.slane %v3481_v61, 5  ;;  %v3488_v32 = vrot.slane %v3486_v53, 4  ;;  %v3489_v59 = vshll.u32 %v3369_v34, 16  ;;  %v3371_v26 = vld [vmem:[#allocation3 + $0x60] sm:$0xf] }
 0x202   :  { %v3478_v46 = vor.u32 %v3477_v16, %v3474_v30  ;;  %4555 = vmatprep.mubr.bf16.mxu1 %v5341_v0  ;;  %v7549_v19 = vcombine.low %v2891_v39, %v2905_v38  ;;  %v3495_v54 = vshll.u32 %v3370_v12, 16  ;;  %v2907_v9 = vshrl.u32 %v2826_v17, 16  ;;  %v3372_v39 = vld [vmem:[#allocation3 + $0x64] sm:$0x1] }
 0x203   :  { %v2910_v49 = vshll.u32 %v2826_v17, 16  ;;  %4556 = vmatmul.mubr.bf16.gmra.mrb[28].mxu1 %v5980_v55  ;;  %4791 = vmatmul.mubr.bf16.vlgmr.msra.gmra.mrb[64].mxu0 %v5982_v31  ;;  %v3491_v47 = vrot.slane %v3489_v59, 5  ;;  %v2921_v15 = vshrl.u32 %v2828_v4, 16  ;;  %v2924_v63 = vshll.u32 %v2828_v4, 16  ;;  %v3373_v55 = vld [vmem:[#allocation3 + $0x68] sm:$0xf] }
 0x204   :  { %v3479_v21 = vrot.slane %v3478_v46, 4  ;;  %4693 = vmatprep.mubr.bf16.mxu1 %v5398_v58  ;;  %4798 = vmatprep.mubr.bf16.mxu0 %v7502_v13  ;;  %v3497_v34 = vrot.slane %v3495_v54, 5  ;;  %v2909_v22 = vrot.slane %v2907_v9, 4  ;;  %v2916_v14 = vshll.u32 %v2827_v52, 16  ;;  %v5991_v60 = vld [vmem:[%s7918_s3 + $0x220] sm:$0xff]  }
 0x205   :  { %v2912_v27 = vrot.slane %v2910_v49, 5  ;;  %v3492_v11 = vor.u32 %v3491_v47, %v3488_v32  ;;  %v2923_v61 = vrot.slane %v2921_v15, 4  ;;  %v2926_v53 = vrot.slane %v2924_v63, 5 }
 0x206   :  { %v3484_v44 = vsel %vm6080_vm2, %v3479_v21, %v3483_v3  ;;  %v2930_v30 = vshll.u32 %v2829_v35, 16  ;;  %v5388_v16 = vrot.slane %v3126_v5, 9  ;;  %v3204_v17 = vrot.slane %v3127_v50, 5  ;;  %v3374_v35 = vld [vmem:[#allocation3 + $0x6c] sm:$0x1] }
 0x207   :  { %v2913_v12 = vor.u32 %v2912_v27, %v2909_v22  ;;  %v3493_v58 = vrot.slane %v3492_v11, 4  ;;  %v2927_v13 = vor.u32 %v2926_v53, %v2923_v61  ;;  %v5389_v0 = vrot.slane %v3128_v43, 9  ;;  %v2830_v50 = vld [vmem:[#allocation3 + $0x38] sm:$0xf]  ;;  %v2831_v21 = vld [vmem:[#allocation3 + $0x3c] sm:$0x1] }
 0x208   :  { %v3208_v31 = vrot.slane %v3129_v42, 5  ;;  %v2918_v52 = vrot.slane %v2916_v14, 5  ;;  %v2932_v4 = vrot.slane %v2930_v30, 5  ;;  %v3500_v46 = vshrl.u32 %v3371_v26, 16  ;;  %v2832_v22 = vld [vmem:[#allocation3 + $0x40] sm:$0xf] }
 0x209   :  { %v2914_v38 = vrot.slane %v2913_v12, 4  ;;  %v3498_v3 = vsel %vm6080_vm2, %v3493_v58, %v3497_v34  ;;  %v2928_v32 = vrot.slane %v2927_v13, 4  ;;  %v3503_v5 = vshll.u32 %v3371_v26, 16  ;;  %v5998_v27 = vld [vmem:[%s7918_s3 + $0x200] sm:$0xff]   ;;  %v5986_v13 = vld [vmem:[#allocation3 + $0x30] ss:$8 sps:$4 sm:$0xff]  }
 0x20a   :  { %v7564_v59 = vsel %vm6996_vm8, %v5389_v0, %v3208_v31  ;;  %v7566_v54 = vcombine.low %v3484_v44, %v3498_v3  ;;  %v7572_v49 = vsel %vm6996_vm8, %v5388_v16, %v3204_v17  ;;  %v3502_v43 = vrot.slane %v3500_v46, 4  ;;  %v2833_v11 = vld [vmem:[#allocation3 + $0x44] sm:$0x1]  ;;  %v3132_v58 = vld [vmem:[#allocation3 + $0x60] sm:$0xe] }
 0x20b   :  { %v2919_v9 = vsel %vm6080_vm2, %v2914_v38, %v2918_v52  ;;  %4694 = vmatmul.mubr.bf16.vlgmr.msra.gmra.mrb[32].mxu1 %v7514_v10  ;;  %4799 = vmatmul.mubr.bf16.gmra.mrb[68].mxu0 %v5984_v24  ;;  %v2933_v47 = vsel %vm6080_vm2, %v2928_v32, %v2932_v4  ;;  %v3505_v15 = vrot.slane %v3503_v5, 5  ;;  %v3509_v63 = vshll.u32 %v3372_v39, 16  ;;  %v5987_v10 = vld [vmem:[%s7918_s3 + $0x210] sm:$0xff]   ;;  %v3133_v52 = vld [vmem:[#allocation3 + $0x64] sm:$0x1] }
 0x20c   :  { %v3514_v34 = vshrl.u32 %v3373_v55, 16  ;;  %5809 = vmatpush3.bf16.msra.mxu1 %v5998_v27  ;;  %4701 = vmatprep.mubr.bf16.mxu1 %v5399_v37  ;;  %v5401_v14 = vcombine.low %v7572_v49, %v7564_v59  ;;  %v3517_v42 = vshll.u32 %v3373_v55, 16  ;;  %v3523_v44 = vshll.u32 %v3374_v35, 16  ;;  %v3131_v37 = vld [vmem:[#allocation3 + $0x5c] sm:$0x1] }
 0x20d   :  { %v2935_v61 = vshrl.u32 %v2830_v50, 16  ;;  %4806 = vmatprep.mubr.bf16.mxu0 %v7530_v29  ;;  %5810 = vmatprep.subr.bf16.mxu1 %v5985_v28  ;;  %v7589_v53 = vcombine.low %v2919_v9, %v2933_v47  ;;  %v3506_v26 = vor.u32 %v3505_v15, %v3502_v43  ;;  %v2938_v1 = vshll.u32 %v2830_v50, 16  ;;  %v3375_v3 = vld [vmem:[#allocation3 + $0x70] sm:$0xf]  ;;  %v3376_v9 = vld [vmem:[#allocation3 + $0x74] sm:$0x1] }
 0x20e   :  { %v3516_v12 = vrot.slane %v3514_v34, 4  ;;  %v3511_v30 = vrot.slane %v3509_v63, 5  ;;  %v3519_v16 = vrot.slane %v3517_v42, 5  ;;  %v2944_v24 = vshll.u32 %v2831_v21, 16  ;;  %v5989_v47 = vld [vmem:[%s7918_s3 + $0x218] sm:$0xff]  }
 0x20f   :  { %v2937_v17 = vrot.slane %v2935_v61, 4  ;;  %v3507_v0 = vrot.slane %v3506_v26, 4  ;;  %v2940_v31 = vrot.slane %v2938_v1, 5  ;;  %v2949_v39 = vshrl.u32 %v2832_v22, 16  ;;  %v3377_v27 = vld [vmem:[#allocation3 + $0x78] sm:$0xf] }
 0x210   :  { %v2952_v38 = vshll.u32 %v2832_v22, 16  ;;  %5811 = vmatpush3.bf16.msra.mxu1 %v5985_v28  ;;  %v3520_v29 = vor.u32 %v3519_v16, %v3516_v12  ;;  %v3525_v4 = vrot.slane %v3523_v44, 5  ;;  %v2946_v55 = vrot.slane %v2944_v24, 5  ;;  %v3378_v61 = vld [vmem:[#allocation3 + $0x7c] sm:$0x1] }
 0x211   :  { %v2958_v46 = vshll.u32 %v2833_v11, 16  ;;  %5812 = vmatprep.subr.bf16.mxu1 %v5987_v10  ;;  %v2941_v32 = vor.u32 %v2940_v31, %v2937_v17  ;;  %v2951_v35 = vrot.slane %v2949_v39, 4  ;;  %v5390_v50 = vrot.slane %v3130_v36, 9  ;;  %v2836_v17 = vld [vmem:[#allocation3 + $0x60] sm:$0xf] }
 0x212   :  { %v2954_v5 = vrot.slane %v2952_v38, 5  ;;  %v3512_v43 = vsel %vm6080_vm2, %v3507_v0, %v3511_v30  ;;  %v3521_v21 = vrot.slane %v3520_v29, 4  ;;  %v3212_v28 = vrot.slane %v3131_v37, 5  ;;  %v2837_v24 = vld [vmem:[#allocation3 + $0x64] sm:$0x1] }
 0x213   :  { %v5391_v15 = vrot.slane %v3132_v58, 9  ;;  %4702 = vmatmul.mubr.bf16.gmra.mrb[36].mxu1 %v7549_v19  ;;  %4807 = vmatmul.mubr.bf16.gmra.mrb[72].mxu0 %v5986_v13  ;;  %v2942_v63 = vrot.slane %v2941_v32, 4  ;;  %v3216_v22 = vrot.slane %v3133_v52, 5  ;;  %v3528_v42 = vshrl.u32 %v3375_v3, 16  ;;  %v5988_v58 = vld [vmem:[#allocation3 + $0x40] ss:$8 sps:$4 sm:$0xff]  }
 0x214   :  { %v2955_v34 = vor.u32 %v2954_v5, %v2951_v35  ;;  %4709 = vmatprep.mubr.bf16.mxu1 %v5400_v7  ;;  %4814 = vmatprep.mubr.bf16.mxu0 %v7566_v54  ;;  %v3526_v44 = vsel %vm6080_vm2, %v3521_v21, %v3525_v4  ;;  %v2960_v11 = vrot.slane %v2958_v46, 5  ;;  %v3531_v26 = vshll.u32 %v3375_v3, 16  ;;  %v2834_v7 = vld [vmem:[#allocation3 + $0x58] sm:$0xf]  ;;  %v2835_v54 = vld [vmem:[#allocation3 + $0x5c] sm:$0x1] }
 0x215   :  { %v3537_v12 = vshll.u32 %v3376_v9, 16  ;;  %5813 = vmatpush3.bf16.msra.mxu1 %v5987_v10  ;;  %v5418_v19 = vcombine.low %v3512_v43, %v3526_v44  ;;  %v7605_v36 = vsel %vm6996_vm8, %v5390_v50, %v3212_v28  ;;  %v7609_v51 = vsel %vm6996_vm8, %v5391_v15, %v3216_v22  ;;  %v3134_v38 = vld [vmem:[#allocation3 + $0x68] sm:$0xe]  ;;  %v3136_v50 = vld [vmem:[#allocation3 + $0x70] sm:$0xe] }
 0x216   :  { %v2956_v1 = vrot.slane %v2955_v34, 4  ;;  %5814 = vmatprep.subr.bf16.mxu1 %v5989_v47  ;;  %v2947_v10 = vsel %vm6080_vm2, %v2942_v63, %v2946_v55  ;;  %v5402_v37 = vcombine.low %v7605_v36, %v7609_v51  ;;  %v3530_v30 = vrot.slane %v3528_v42, 4  ;;  %v3135_v55 = vld [vmem:[#allocation3 + $0x6c] sm:$0x1]  ;;  %v3137_v63 = vld [vmem:[#allocation3 + $0x74] sm:$0x1] }
 0x217   :  { %v3533_v16 = vrot.slane %v3531_v26, 5  ;;  %v3542_v0 = vshrl.u32 %v3377_v27, 16  ;;  %v3545_v31 = vshll.u32 %v3377_v27, 16  ;;  %v3551_v39 = vshll.u32 %v3378_v61, 16  ;;  %v5993_v9 = vld [vmem:[%s7918_s3 + $0x228] sm:$0xff]  }
 0x218   :  { %v2961_v13 = vsel %vm6080_vm2, %v2956_v1, %v2960_v11  ;;  %v3539_v29 = vrot.slane %v3537_v12, 5  ;;  %v2963_v4 = vshrl.u32 %v2834_v7, 16  ;;  %v2966_v46 = vshll.u32 %v2834_v7, 16  ;;  %v3379_v42 = vld [vmem:[#allocation3 + $0x80] sm:$0xf] }
 0x219   :  { %v3534_v52 = vor.u32 %v3533_v16, %v3530_v30  ;;  %v5377_v3 = vcombine.low %v2947_v10, %v2961_v13  ;;  %5815 = vmatpush3.bf16.msra.mxu1 %v5989_v47  ;;  %v3544_v32 = vrot.slane %v3542_v0, 4  ;;  %v3547_v35 = vrot.slane %v3545_v31, 5  ;;  %v5995_v10 = vld [vmem:[%s7918_s3 + $0x230] sm:$0xff]   ;;  %v3382_v13 = vld [vmem:[#allocation3 + $0x8c] sm:$0x1] }
 0x21a   :  { %v2972_v5 = vshll.u32 %v2835_v54, 16  ;;  %5816 = vmatprep.subr.bf16.mxu1 %v5991_v60  ;;  %v2965_v21 = vrot.slane %v2963_v4, 4  ;;  %v2968_v28 = vrot.slane %v2966_v46, 5  ;;  %v2977_v15 = vshrl.u32 %v2836_v17, 16  ;;  %v2838_v54 = vld [vmem:[#allocation3 + $0x68] sm:$0xf] }
 0x21b   :  { %v3535_v43 = vrot.slane %v3534_v52, 4  ;;  %4710 = vmatmul.mubr.bf16.gmra.mrb[40].mxu1 %v7589_v53  ;;  %4815 = vmatmul.mubr.bf16.gmra.mrb[76].mxu0 %v5988_v58  ;;  %v3548_v34 = vor.u32 %v3547_v35, %v3544_v32  ;;  %v3553_v22 = vrot.slane %v3551_v39, 5  ;;  %v2980_v47 = vshll.u32 %v2836_v17, 16  ;;  %v3381_v58 = vld [vmem:[#allocation3 + $0x88] sm:$0xf]  ;;  %v5997_v35 = vld [vmem:[%s7918_s3 + $0x238] sm:$0xff]  }
 0x21c   :  { %v2986_v27 = vshll.u32 %v2837_v24, 16  ;;  %4717 = vmatprep.mubr.bf16.mxu1 %v5401_v14  ;;  %4822 = vmatprep.mubr.bf16.mxu0 %v5418_v19  ;;  %v2969_v44 = vor.u32 %v2968_v28, %v2965_v21  ;;  %v2974_v11 = vrot.slane %v2972_v5, 5  ;;  %v2979_v61 = vrot.slane %v2977_v15, 4  ;;  %v3380_v14 = vld [vmem:[#allocation3 + $0x84] sm:$0x1] }
 0x21d   :  { %v5392_v26 = vrot.slane %v3134_v38, 9  ;;  %v3540_v12 = vsel %vm6080_vm2, %v3535_v43, %v3539_v29  ;;  %v3549_v1 = vrot.slane %v3548_v34, 4  ;;  %v2982_v53 = vrot.slane %v2980_v47, 5  ;;  %5817 = vmatpush3.bf16.msra.mxu1 %v5991_v60  ;;  %v5990_v0 = vld [vmem:[#allocation3 + $0x60] ss:$8 sps:$4 sm:$0xff]  }
 0x21e   :  { %v3220_v7 = vrot.slane %v3135_v55, 5  ;;  %v2970_v30 = vrot.slane %v2969_v44, 4  ;;  %v5393_v59 = vrot.slane %v3136_v50, 9  ;;  %v3224_v49 = vrot.slane %v3137_v63, 5  ;;  %5818 = vmatprep.subr.bf16.mxu1 %v5993_v9  ;;  %v2839_v32 = vld [vmem:[#allocation3 + $0x6c] sm:$0x1] }
 0x21f   :  { %v3556_v19 = vshrl.u32 %v3379_v42, 16  ;;  %v3554_v16 = vsel %vm6080_vm2, %v3549_v1, %v3553_v22  ;;  %v2983_v17 = vor.u32 %v2982_v53, %v2979_v61  ;;  %v2988_v24 = vrot.slane %v2986_v27, 5  ;;  %v2840_v21 = vld [vmem:[#allocation3 + $0x70] sm:$0xf]  ;;  %v3138_v47 = vld [vmem:[#allocation3 + $0x78] sm:$0xe] }
 0x220   :  { %v3559_v60 = vshll.u32 %v3379_v42, 16  ;;  %v5419_v31 = vcombine.low %v3540_v12, %v3554_v16  ;;  %v7636_v39 = vsel %vm6996_vm8, %v5392_v26, %v3220_v7  ;;  %v7640_v38 = vsel %vm6996_vm8, %v5393_v59, %v3224_v49  ;;  %v3140_v53 = vld [vmem:[#allocation3 + $0x80] sm:$0xe]  ;;  %v3141_v49 = vld [vmem:[#allocation3 + $0x84] sm:$0x1] }
 0x221   :  { %v3558_v52 = vrot.slane %v3556_v19, 4  ;;  %v2975_v29 = vsel %vm6080_vm2, %v2970_v30, %v2974_v11  ;;  %v2984_v4 = vrot.slane %v2983_v17, 4  ;;  %v3565_v55 = vshll.u32 %v3380_v14, 16  ;;  %5819 = vmatpush3.bf16.msra.mxu1 %v5993_v9  ;;  %v2841_v9 = vld [vmem:[#allocation3 + $0x74] sm:$0x1] }
 0x222   :  { %v3561_v46 = vrot.slane %v3559_v60, 5  ;;  %v3570_v5 = vshrl.u32 %v3381_v58, 16  ;;  %v3573_v50 = vshll.u32 %v3381_v58, 16  ;;  %v3579_v43 = vshll.u32 %v3382_v13, 16  ;;  %5820 = vmatprep.subr.bf16.mxu1 %v5995_v10  ;;  %v3139_v11 = vld [vmem:[#allocation3 + $0x7c] sm:$0x1] }
 0x223   :  { %v2991_v28 = vshrl.u32 %v2838_v54, 16  ;;  %4718 = vmatmul.mubr.bf16.gmra.mrb[44].mxu1 %v5377_v3  ;;  %4823 = vmatmul.mubr.bf16.gmra.mrb[80].mxu0 %v5990_v0  ;;  %v2989_v15 = vsel %vm6080_vm2, %v2984_v4, %v2988_v24  ;;  %v5403_v63 = vcombine.low %v7636_v39, %v7640_v38  ;;  %v2994_v22 = vshll.u32 %v2838_v54, 16  ;;  %v3383_v19 = vld [vmem:[#allocation3 + $0x90] sm:$0xf]  ;;  %v3384_v13 = vld [vmem:[#allocation3 + $0x94] sm:$0x1] }
 0x224   :  { %v3562_v34 = vor.u32 %v3561_v46, %v3558_v52  ;;  %4725 = vmatprep.mubr.bf16.mxu1 %v5402_v37  ;;  %4830 = vmatprep.mubr.bf16.mxu0 %v5419_v31  ;;  %v5378_v27 = vcombine.low %v2975_v29, %v2989_v15  ;;  %v3567_v42 = vrot.slane %v3565_v55, 5  ;;  %v3572_v44 = vrot.slane %v3570_v5, 4  ;;  %v5992_v60 = vld [vmem:[#allocation3 + $0x70] ss:$8 sps:$4 sm:$0xff]   ;;  %v3386_v5 = vld [vmem:[#allocation3 + $0x9c] sm:$0x1] }
 0x225   :  { %v3575_v3 = vrot.slane %v3573_v50, 5  ;;  %v2993_v26 = vrot.slane %v2991_v28, 4  ;;  %v2996_v12 = vrot.slane %v2994_v22, 5  ;;  %v3000_v1 = vshll.u32 %v2839_v32, 16  ;;  %5821 = vmatpush3.bf16.msra.mxu1 %v5995_v10  ;;  %v3385_v29 = vld [vmem:[#allocation3 + $0x98] sm:$0xf] }
 0x226   :  { %v3563_v61 = vrot.slane %v3562_v34, 4  ;;  %v3581_v30 = vrot.slane %v3579_v43, 5  ;;  %v3005_v54 = vshrl.u32 %v2840_v21, 16  ;;  %v3008_v59 = vshll.u32 %v2840_v21, 16  ;;  %5822 = vmatprep.subr.bf16.mxu1 %v5997_v35  ;;  %v2842_v43 = vld [vmem:[#allocation3 + $0x78] sm:$0xf] }
 0x227   :  { %v3576_v7 = vor.u32 %v3575_v3, %v3572_v44  ;;  %v2997_v51 = vor.u32 %v2996_v12, %v2993_v26  ;;  %v3002_v37 = vrot.slane %v3000_v1, 5  ;;  %v3014_v14 = vshll.u32 %v2841_v9, 16  ;;  %v2843_v44 = vld [vmem:[#allocation3 + $0x7c] sm:$0x1]  ;;  %v2844_v3 = vld [vmem:[#allocation3 + $0x80] sm:$0xf] }
 0x228   :  { %v3568_v36 = vsel %vm6080_vm2, %v3563_v61, %v3567_v42  ;;  %v3007_v17 = vrot.slane %v3005_v54, 4  ;;  %v3010_v24 = vrot.slane %v3008_v59, 5  ;;  %v5394_v58 = vrot.slane %v3138_v47, 9  ;;  %v5994_v61 = vld [vmem:[#allocation3 + $0x80] ss:$8 sps:$4 sm:$0xff]  }
 0x229   :  { %v3577_v16 = vrot.slane %v3576_v7, 4  ;;  %v2998_v10 = vrot.slane %v2997_v51, 4  ;;  %v3228_v0 = vrot.slane %v3139_v11, 5  ;;  %v5395_v31 = vrot.slane %v3140_v53, 9  ;;  %5823 = vmatpush3.bf16.msra.mxu1 %v5997_v35  ;;  %v2845_v53 = vld [vmem:[#allocation3 + $0x84] sm:$0x1] }
 0x22a   :  { %v3232_v39 = vrot.slane %v3141_v49, 5  ;;  %v3011_v52 = vor.u32 %v3010_v24, %v3007_v17  ;;  %v3584_v4 = vshrl.u32 %v3383_v19, 16  ;;  %v3587_v46 = vshll.u32 %v3383_v19, 16 }
 0x22b   :  { %v3582_v38 = vsel %vm6080_vm2, %v3577_v16, %v3581_v30  ;;  %4726 = vmatmul.mubr.bf16.gmra.mrb[48].mxu1 %v5378_v27  ;;  %4831 = vmatmul.mubr.bf16.gmra.mrb[84].mxu0 %v5992_v60  ;;  %v3016_v32 = vrot.slane %v3014_v14, 5  ;;  %v3593_v50 = vshll.u32 %v3384_v13, 16  ;;  %v3003_v21 = vsel %vm6080_vm2, %v2998_v10, %v3002_v37  ;;  %v3145_v16 = vld [vmem:[#allocation3 + $0x94] sm:$0x1]  ;;  %v3142_v60 = vld [vmem:[#allocation3 + $0x88] sm:$0xe] }
 0x22c   :  { %v5420_v55 = vcombine.low %v3568_v36, %v3582_v38  ;;  %4733 = vmatprep.mubr.bf16.mxu1 %v5403_v63  ;;  %v3012_v28 = vrot.slane %v3011_v52, 4  ;;  %v3586_v35 = vrot.slane %v3584_v4, 4  ;;  %v3589_v15 = vrot.slane %v3587_v46, 5  ;;  %v3144_v36 = vld [vmem:[#allocation3 + $0x90] sm:$0xe] }
 0x22d   :  { %v3229_v34 = vsel %vm6996_vm8, %v5394_v58, %v3228_v0  ;;  %v3233_v9 = vsel %vm6996_vm8, %v5395_v31, %v3232_v39  ;;  %v3598_v22 = vshrl.u32 %v3385_v29, 16  ;;  %v3601_v47 = vshll.u32 %v3385_v29, 16  ;;  %v2846_v10 = vld [vmem:[#allocation3 + $0x88] sm:$0xf]  ;;  %v3143_v52 = vld [vmem:[#allocation3 + $0x8c] sm:$0x1] }
 0x22e   :  { %4838 = vmatprep.mubr.bf16.mxu0 %v5420_v55  ;;  %v3017_v27 = vsel %vm6080_vm2, %v3012_v28, %v3016_v32  ;;  %v3590_v42 = vor.u32 %v3589_v15, %v3586_v35  ;;  %v3607_v63 = vshll.u32 %v3386_v5, 16  ;;  %v3019_v11 = vshrl.u32 %v2842_v43, 16  ;;  %v2848_v5 = vld [vmem:[#allocation3 + $0x90] sm:$0xf] }
 0x22f   :  { %v3595_v26 = vrot.slane %v3593_v50, 5  ;;  %v3600_v12 = vrot.slane %v3598_v22, 4  ;;  %v3603_v1 = vrot.slane %v3601_v47, 5  ;;  %v3022_v7 = vshll.u32 %v2842_v43, 16  ;;  %v2847_v22 = vld [vmem:[#allocation3 + $0x8c] sm:$0x1] }
 0x230   :  { %v5379_v30 = vcombine.low %v3003_v21, %v3017_v27  ;;  %v3591_v54 = vrot.slane %v3590_v42, 4  ;;  %v3609_v59 = vrot.slane %v3607_v63, 5  ;;  %v3021_v49 = vrot.slane %v3019_v11, 4  ;;  %v2849_v42 = vld [vmem:[#allocation3 + $0x94] sm:$0x1] }
 0x231   :  { %v3604_v51 = vor.u32 %v3603_v1, %v3600_v12  ;;  %v3024_v37 = vrot.slane %v3022_v7, 5  ;;  %v3033_v14 = vshrl.u32 %v2844_v3, 16  ;;  %v3036_v19 = vshll.u32 %v2844_v3, 16  ;;  %v3653_v12 = vld [vmem:[#allocation3 + $0x18] sm:$0xe] }
 0x232   :  { %v5404_v17 = vcombine.low %v3229_v34, %v3233_v9  ;;  %v3596_v24 = vsel %vm6080_vm2, %v3591_v54, %v3595_v26  ;;  %v3028_v58 = vshll.u32 %v2843_v44, 16  ;;  %v3042_v13 = vshll.u32 %v2845_v53, 16  ;;  %v5996_v26 = vld [vmem:[#allocation3 + $0x90] ss:$8 sps:$4 sm:$0xff]   ;;  %v3654_v1 = vld [vmem:[#allocation3 + $0x1c] sm:$0x1] }
 0x233   :  { %4734 = vmatmul.mubr.bf16.gmra.mrb[52].mxu1 %v5379_v30  ;;  %4839 = vmatmul.mubr.bf16.gmra.mrb[88].mxu0 %v5994_v61  ;;  %v3605_v0 = vrot.slane %v3604_v51, 4  ;;  %v3025_v31 = vor.u32 %v3024_v37, %v3021_v49  ;;  %v3035_v39 = vrot.slane %v3033_v14, 4  ;;  %v3038_v38 = vrot.slane %v3036_v19, 5  ;;  %v3652_v14 = vld [vmem:[#allocation3 + $0x14] sm:$0x1] }
 0x234   :  { %4741 = vmatprep.mubr.bf16.mxu1 %v5404_v17  ;;  %v5397_v29 = vrot.slane %v3144_v36, 9  ;;  %v3240_v4 = vrot.slane %v3145_v16, 5  ;;  %v3047_v50 = vshrl.u32 %v2846_v10, 16  ;;  %v5396_v21 = vrot.slane %v3142_v60, 9 }
 0x235   :  { %v3610_v46 = vsel %vm6080_vm2, %v3605_v0, %v3609_v59  ;;  %v3026_v55 = vrot.slane %v3025_v31, 4  ;;  %v3039_v32 = vor.u32 %v3038_v38, %v3035_v39  ;;  %v3236_v28 = vrot.slane %v3143_v52, 5  ;;  %v3651_v59 = vld [vmem:[#allocation3 + $0x10] sm:$0xe]  ;;  %v3657_v39 = vld [vmem:[#allocation3 + $0x28] sm:$0xe] }
 0x236   :  { %v5421_v43 = vcombine.low %v3596_v24, %v3610_v46  ;;  %v3050_v35 = vshll.u32 %v2846_v10, 16  ;;  %v3030_v15 = vrot.slane %v3028_v58, 5  ;;  %v3044_v9 = vrot.slane %v3042_v13, 5  ;;  %v3658_v38 = vld [vmem:[#allocation3 + $0x2c] sm:$0x1] }
 0x237   :  { %v3040_v34 = vrot.slane %v3039_v32, 4  ;;  %v3049_v47 = vrot.slane %v3047_v50, 4  ;;  %v3241_v27 = vsel %vm6996_vm8, %v5397_v29, %v3240_v4  ;;  %v3061_v44 = vshrl.u32 %v2848_v5, 16  ;;  %v3661_v4 = vld [vmem:[#allocation3 + $0x38] sm:$0xe] }
 0x238   :  { %4846 = vmatprep.mubr.bf16.mxu0 %v5421_v43  ;;  %v3052_v63 = vrot.slane %v3050_v35, 5  ;;  %v3064_v3 = vshll.u32 %v2848_v5, 16  ;;  %v3031_v11 = vsel %vm6080_vm2, %v3026_v55, %v3030_v15  ;;  %v3237_v7 = vsel %vm6996_vm8, %v5396_v21, %v3236_v28  ;;  %v3662_v46 = vld [vmem:[#allocation3 + $0x3c] sm:$0x1]  ;;  %v3655_v5 = vld [vmem:[#allocation3 + $0x20] sm:$0xe] }
 0x239   :  { %v3045_v61 = vsel %vm6080_vm2, %v3040_v34, %v3044_v9  ;;  %v3063_v54 = vrot.slane %v3061_v44, 4  ;;  %v5405_v49 = vcombine.low %v3237_v7, %v3241_v27  ;;  %v3056_v36 = vshll.u32 %v2847_v22, 16  ;;  %v3656_v50 = vld [vmem:[#allocation3 + $0x24] sm:$0x1]  ;;  %v3659_v35 = vld [vmem:[#allocation3 + $0x30] sm:$0xe] }
 0x23a   :  { %v5380_v53 = vcombine.low %v3031_v11, %v3045_v61  ;;  %v3053_v30 = vor.u32 %v3052_v63, %v3049_v47  ;;  %v3066_v51 = vrot.slane %v3064_v3, 5  ;;  %v3070_v37 = vshll.u32 %v2849_v42, 16  ;;  %v3660_v15 = vld [vmem:[#allocation3 + $0x34] sm:$0x1]  ;;  %v3663_v63 = vld [vmem:[#allocation3 + $0x40] sm:$0xe] }
 0x23b   :  { %4847 = vmatmul.mubr.bf16.gmra.mrb[92].mxu0 %v5996_v26  ;;  %v5423_v19 = vrot.slane %v3653_v12, 9  ;;  %v3721_v16 = vrot.slane %v3654_v1, 5  ;;  %v5422_v58 = vrot.slane %v3651_v59, 9  ;;  %v3717_v13 = vrot.slane %v3652_v14, 5  ;;  %v3664_v3 = vld [vmem:[#allocation3 + $0x44] sm:$0x1] }
 0x23c   :  { %4742 = vmatmul.mubr.bf16.gmra.mrb[56].mxu1 %v5380_v53  ;;  %v3054_v17 = vrot.slane %v3053_v30, 4  ;;  %v3067_v24 = vor.u32 %v3066_v51, %v3063_v54  ;;  %v3058_v60 = vrot.slane %v3056_v36, 5  ;;  %v3072_v0 = vrot.slane %v3070_v37, 5  ;;  %v3665_v11 = vld [vmem:[#allocation3 + $0x48] sm:$0xe] }
 0x23d   :  { %4749 = vmatprep.mubr.bf16.mxu1 %v5405_v49  ;;  %v3722_v31 = vsel %vm6996_vm8, %v5423_v19, %v3721_v16  ;;  %v3718_v32 = vsel %vm6996_vm8, %v5422_v58, %v3717_v13  ;;  %v5425_v21 = vrot.slane %v3657_v39, 9  ;;  %v3729_v28 = vrot.slane %v3658_v38, 5  ;;  %v3666_v61 = vld [vmem:[#allocation3 + $0x4c] sm:$0x1]  ;;  %v3669_v12 = vld [vmem:[#allocation3 + $0x68] sm:$0xe] }
 0x23e   :  { %v3068_v10 = vrot.slane %v3067_v24, 4  ;;  %v3059_v52 = vsel %vm6080_vm2, %v3054_v17, %v3058_v60  ;;  %v5438_v43 = vcombine.low %v3718_v32, %v3722_v31  ;;  %v5427_v34 = vrot.slane %v3661_v4, 9  ;;  %v3670_v1 = vld [vmem:[#allocation3 + $0x6c] sm:$0x1]  ;;  %v3667_v54 = vld [vmem:[#allocation3 + $0x60] sm:$0xe] }
 0x23f   :  { %v3737_v9 = vrot.slane %v3662_v46, 5  ;;  %v5424_v22 = vrot.slane %v3655_v5, 9  ;;  %v3725_v25 = vrot.slane %v3656_v50, 5  ;;  %v5426_v47 = vrot.slane %v3659_v35, 9  ;;  %v3668_v37 = vld [vmem:[#allocation3 + $0x64] sm:$0x1] }
 0x240   :  { %v3073_v29 = vsel %vm6080_vm2, %v3068_v10, %v3072_v0  ;;  %v3733_v27 = vrot.slane %v3660_v15, 5  ;;  %v3730_v42 = vsel %vm6996_vm8, %v5425_v21, %v3729_v28  ;;  %v5428_v30 = vrot.slane %v3663_v63, 9  ;;  %v3673_v60 = vld [vmem:[#allocation3 + $0x78] sm:$0xe]  ;;  %v3674_v10 = vld [vmem:[#allocation3 + $0x7c] sm:$0x1] }
 0x241   :  { %v5381_v55 = vcombine.low %v3059_v52, %v3073_v29  ;;  %v3738_v44 = vsel %vm6996_vm8, %v5427_v34, %v3737_v9  ;;  %v3726_v26 = vsel %vm6996_vm8, %v5424_v22, %v3725_v25  ;;  %v3741_v49 = vrot.slane %v3664_v3, 5  ;;  %v3677_v0 = vld [vmem:[#allocation3 + $0x88] sm:$0xe]  ;;  %v3678_v31 = vld [vmem:[#allocation3 + $0x8c] sm:$0x1] }
 0x242   :  { %v5439_v53 = vcombine.low %v3726_v26, %v3730_v42  ;;  %v3734_v7 = vsel %vm6996_vm8, %v5426_v47, %v3733_v27  ;;  %v5429_v36 = vrot.slane %v3665_v11, 9  ;;  %v3745_v51 = vrot.slane %v3666_v61, 5  ;;  %v3671_v52 = vld [vmem:[#allocation3 + $0x70] sm:$0xe]  ;;  %v3672_v29 = vld [vmem:[#allocation3 + $0x74] sm:$0x1] }
 0x243   :  { %v5440_v59 = vcombine.low %v3734_v7, %v3738_v44  ;;  %v5431_v14 = vrot.slane %v3669_v12, 9  ;;  %v3753_v19 = vrot.slane %v3670_v1, 5  ;;  %v5430_v16 = vrot.slane %v3667_v54, 9  ;;  %v3675_v32 = vld [vmem:[#allocation3 + $0x80] sm:$0xe] }
 0x244   :  { %4750 = vmatmul.mubr.bf16.gmra.mrb[60].mxu1 %v5381_v55  ;;  %v3749_v17 = vrot.slane %v3668_v37, 5  ;;  %v3742_v24 = vsel %vm6996_vm8, %v5428_v30, %v3741_v49  ;;  %v3746_v58 = vsel %vm6996_vm8, %v5429_v36, %v3745_v51  ;;  %v5433_v46 = vrot.slane %v3673_v60, 9  ;;  %v3676_v5 = vld [vmem:[#allocation3 + $0x84] sm:$0x1]  ;;  %v3679_v25 = vld [vmem:[#allocation3 + $0x90] sm:$0xe] }
 0x245   :  { %5824 = vmatprep.mubr.bf16.mxu1 %v5438_v43  ;;  %v3754_v13 = vsel %vm6996_vm8, %v5431_v14, %v3753_v19  ;;  %v5441_v39 = vcombine.low %v3742_v24, %v3746_v58  ;;  %v3761_v55 = vrot.slane %v3674_v10, 5  ;;  %v5435_v50 = vrot.slane %v3677_v0, 9  ;;  %v3680_v47 = vld [vmem:[#allocation3 + $0x94] sm:$0x1]  ;;  %v3681_v44 = vld [vmem:[#allocation3 + $0x98] sm:$0xe] }
 0x246   :  { %v3750_v38 = vsel %vm6996_vm8, %v5430_v16, %v3749_v17  ;;  %v3769_v43 = vrot.slane %v3678_v31, 5  ;;  %v5432_v21 = vrot.slane %v3671_v52, 9  ;;  %v3757_v28 = vrot.slane %v3672_v29, 5  ;;  %v3682_v3 = vld [vmem:[#allocation3 + $0x9c] sm:$0x1] }
 0x247   :  { %v5442_v4 = vcombine.low %v3750_v38, %v3754_v13  ;;  %v5434_v35 = vrot.slane %v3675_v32, 9  ;;  %v3765_v15 = vrot.slane %v3676_v5, 5  ;;  %v3762_v9 = vsel %vm6996_vm8, %v5433_v46, %v3761_v55 }
 0x248   :  { %v3770_v27 = vsel %vm6996_vm8, %v5435_v50, %v3769_v43  ;;  %v3758_v11 = vsel %vm6996_vm8, %v5432_v21, %v3757_v28  ;;  %v5436_v1 = vrot.slane %v3679_v25, 9  ;;  %v3773_v30 = vrot.slane %v3680_v47, 5 }
 0x249   :  { %v5443_v26 = vcombine.low %v3758_v11, %v3762_v9  ;;  %v3766_v12 = vsel %vm6996_vm8, %v5434_v35, %v3765_v15  ;;  %v5437_v54 = vrot.slane %v3681_v44, 9 }
 0x24a   :  { %v5444_v7 = vcombine.low %v3766_v12, %v3770_v27  ;;  %v3774_v49 = vsel %vm6996_vm8, %v5436_v1, %v3773_v30 }
 0x24c   :  { %5825 = vmatmul.mubr.bf16.vlgmr.msra.gmra.mrb[64].mxu1 %v5439_v53 }
 0x24d   :  { %5828 = vmatprep.mubr.bf16.mxu1 %v5440_v59  ;;  %v3777_v59 = vrot.slane %v3682_v3, 5 }
 0x24f   :  { %v3778_v36 = vsel %vm6996_vm8, %v5437_v54, %v3777_v59 }
 0x250   :  { %v5445_v14 = vcombine.low %v3774_v49, %v3778_v36 }
 0x254   :  { %5829 = vmatmul.mubr.bf16.gmra.mrb[68].mxu1 %v5441_v39 }
 0x255   :  { %5832 = vmatprep.mubr.bf16.mxu1 %v5442_v4 }
 0x257   :  { %v5616_v34 = vpop.f32.mrb[32].mxu0 }
 0x258   :  { %v5617_v22 = vpop.f32.mrb[33].mxu0 }
 0x259   :  { %v5618_v42 = vadd.f32 %v5617_v22, %v5616_v34  ;;  %v5619_v63 = vpop.f32.mrb[34].mxu0 }
 0x25a   :  { %v5620_v61 = vpop.f32.mrb[35].mxu0 }
 0x25b   :  { %v5621_v53 = vadd.f32 %v5620_v61, %v5619_v63 }
 0x25c   :  { %5833 = vmatmul.mubr.bf16.gmra.mrb[72].mxu1 %v5443_v26 }
 0x25d   :  { %5836 = vmatprep.mubr.bf16.mxu1 %v5444_v7 }
 0x25f   :  { %v5552_v51 = vpop.f32.mrb[0].mxu1 }
 0x260   :  { %v5553_v37 = vpop.f32.mrb[1].mxu1 }
 0x261   :  { %v5554_v19 = vadd.f32 %v5553_v37, %v5552_v51  ;;  %v5555_v16 = vpop.f32.mrb[2].mxu1 }
 0x262   :  { %v5556_v17 = vpop.f32.mrb[3].mxu1 }
 0x263   :  { %v7714_v24 = vadd.f32 %v5618_v42, %v5554_v19  ;;  %v5557_v58 = vadd.f32 %v5556_v17, %v5555_v16 }
 0x264   :  { %5837 = vmatmul.mubr.bf16.gmra.mrb[76].mxu1 %v5445_v14 }
 0x265   :  { %v7716_v13 = vadd.f32 %v5621_v53, %v5557_v58 }
 0x269   :  { %v5622_v60 = vpop.f32.mrb[36].mxu0 }
 0x26a   :  { %v5623_v10 = vpop.f32.mrb[37].mxu0 }
 0x26b   :  { %v5624_v0 = vadd.f32 %v5623_v10, %v5622_v60  ;;  %v5625_v31 = vpop.f32.mrb[38].mxu0 }
 0x26c   :  { %v5626_v39 = vpop.f32.mrb[39].mxu0 }
 0x26d   :  { %v5627_v38 = vadd.f32 %v5626_v39, %v5625_v31 }
 0x271   :  { %v5558_v40 = vpop.f32.mrb[4].mxu1 }
 0x272   :  { %v5559_v52 = vpop.f32.mrb[5].mxu1 }
 0x273   :  { %v5560_v29 = vadd.f32 %v5559_v52, %v5558_v40  ;;  %v5561_v4 = vpop.f32.mrb[6].mxu1 }
 0x274   :  { %v5562_v46 = vpop.f32.mrb[7].mxu1 }
 0x275   :  { %v7718_v55 = vadd.f32 %v5624_v0, %v5560_v29  ;;  %v5563_v32 = vadd.f32 %v5562_v46, %v5561_v4 }
 0x277   :  { %v7720_v5 = vadd.f32 %v5627_v38, %v5563_v32 }
 0x278   :  { %v5628_v50 = vpop.f32.mrb[40].mxu0 }
 0x279   :  { %v5629_v43 = vpop.f32.mrb[41].mxu0 }
 0x27a   :  { %v5630_v21 = vadd.f32 %v5629_v43, %v5628_v50  ;;  %v5631_v28 = vpop.f32.mrb[42].mxu0 }
 0x27b   :  { %v5632_v35 = vpop.f32.mrb[43].mxu0 }
 0x27c   :  { %v5633_v15 = vadd.f32 %v5632_v35, %v5631_v28 }
 0x281   :  { %v5564_v34 = vpop.f32.mrb[8].mxu1 }
 0x282   :  { %v5565_v9 = vpop.f32.mrb[9].mxu1 }
 0x283   :  { %v5566_v22 = vadd.f32 %v5565_v9, %v5564_v34  ;;  %v5567_v25 = vpop.f32.mrb[10].mxu1 }
 0x284   :  { %v5568_v47 = vpop.f32.mrb[11].mxu1 }
 0x285   :  { %v7722_v27 = vadd.f32 %v5630_v21, %v5566_v22  ;;  %v5569_v42 = vadd.f32 %v5568_v47, %v5567_v25 }
 0x287   :  { %v7724_v63 = vadd.f32 %v5633_v15, %v5569_v42 }
 0x288   :  { %v5634_v44 = vpop.f32.mrb[44].mxu0 }
 0x289   :  { %v5635_v3 = vpop.f32.mrb[45].mxu0 }
 0x28a   :  { %v5636_v11 = vadd.f32 %v5635_v3, %v5634_v44  ;;  %v5637_v61 = vpop.f32.mrb[46].mxu0 }
 0x28b   :  { %v5638_v26 = vpop.f32.mrb[47].mxu0 }
 0x28c   :  { %v5639_v12 = vadd.f32 %v5638_v26, %v5637_v61 }
 0x290   :  { %v5570_v1 = vpop.f32.mrb[12].mxu1 }
 0x291   :  { %v5571_v53 = vpop.f32.mrb[13].mxu1 }
 0x292   :  { %v5572_v7 = vadd.f32 %v5571_v53, %v5570_v1  ;;  %v5573_v30 = vpop.f32.mrb[14].mxu1 }
 0x293   :  { %v5574_v54 = vpop.f32.mrb[15].mxu1 }
 0x294   :  { %v7726_v59 = vadd.f32 %v5636_v11, %v5572_v7  ;;  %v5575_v49 = vadd.f32 %v5574_v54, %v5573_v30 }
 0x296   :  { %v7728_v36 = vadd.f32 %v5639_v12, %v5575_v49 }
 0x299   :  { %v5640_v51 = vpop.f32.mrb[48].mxu0 }
 0x29a   :  { %v5641_v37 = vpop.f32.mrb[49].mxu0 }
 0x29b   :  { %v5642_v14 = vadd.f32 %v5641_v37, %v5640_v51  ;;  %v5643_v19 = vpop.f32.mrb[50].mxu0 }
 0x29c   :  { %v5644_v16 = vpop.f32.mrb[51].mxu0 }
 0x29d   :  { %v5645_v17 = vadd.f32 %v5644_v16, %v5643_v19 }
 0x2a2   :  { %v5576_v58 = vpop.f32.mrb[16].mxu1 }
 0x2a3   :  { %v5577_v60 = vpop.f32.mrb[17].mxu1 }
 0x2a4   :  { %v5578_v10 = vadd.f32 %v5577_v60, %v5576_v58  ;;  %v5579_v0 = vpop.f32.mrb[18].mxu1 }
 0x2a5   :  { %v5580_v31 = vpop.f32.mrb[19].mxu1 }
 0x2a6   :  { %v7730_v39 = vadd.f32 %v5642_v14, %v5578_v10  ;;  %v5581_v38 = vadd.f32 %v5580_v31, %v5579_v0 }
 0x2a8   :  { %v7732_v40 = vadd.f32 %v5645_v17, %v5581_v38 }
 0x2a9   :  { %v5646_v52 = vpop.f32.mrb[52].mxu0 }
 0x2aa   :  { %v5647_v29 = vpop.f32.mrb[53].mxu0 }
 0x2ab   :  { %v5648_v4 = vadd.f32 %v5647_v29, %v5646_v52  ;;  %v5649_v46 = vpop.f32.mrb[54].mxu0 }
 0x2ac   :  { %v5650_v32 = vpop.f32.mrb[55].mxu0 }
 0x2ad   :  { %v5651_v50 = vadd.f32 %v5650_v32, %v5649_v46 }
 0x2b4   :  { %v5582_v43 = vpop.f32.mrb[20].mxu1 }
 0x2b5   :  { %v5583_v21 = vpop.f32.mrb[21].mxu1 }
 0x2b6   :  { %v5584_v28 = vadd.f32 %v5583_v21, %v5582_v43  ;;  %v5585_v35 = vpop.f32.mrb[22].mxu1 }
 0x2b7   :  { %v5586_v15 = vpop.f32.mrb[23].mxu1 }
 0x2b8   :  { %v7734_v34 = vadd.f32 %v5648_v4, %v5584_v28  ;;  %v5587_v9 = vadd.f32 %v5586_v15, %v5585_v35 }
 0x2ba   :  { %v7736_v22 = vadd.f32 %v5651_v50, %v5587_v9  ;;  %v5652_v25 = vpop.f32.mrb[56].mxu0 }
 0x2bb   :  { %v5653_v47 = vpop.f32.mrb[57].mxu0 }
 0x2bc   :  { %v5654_v42 = vadd.f32 %v5653_v47, %v5652_v25  ;;  %v5655_v44 = vpop.f32.mrb[58].mxu0 }
 0x2bd   :  { %v5656_v3 = vpop.f32.mrb[59].mxu0 }
 0x2be   :  { %v5657_v11 = vadd.f32 %v5656_v3, %v5655_v44 }
 0x2c4   :  { %v5588_v61 = vpop.f32.mrb[24].mxu1 }
 0x2c5   :  { %v5589_v26 = vpop.f32.mrb[25].mxu1 }
 0x2c6   :  { %v5590_v12 = vadd.f32 %v5589_v26, %v5588_v61  ;;  %v5591_v1 = vpop.f32.mrb[26].mxu1 }
 0x2c7   :  { %v5592_v53 = vpop.f32.mrb[27].mxu1 }
 0x2c8   :  { %v7738_v7 = vadd.f32 %v5654_v42, %v5590_v12  ;;  %v5593_v30 = vadd.f32 %v5592_v53, %v5591_v1 }
 0x2ca   :  { %v7740_v54 = vadd.f32 %v5657_v11, %v5593_v30 }
 0x2ce   :  { %v5658_v49 = vpop.f32.mrb[60].mxu0 }
 0x2cf   :  { %v5659_v51 = vpop.f32.mrb[61].mxu0 }
 0x2d0   :  { %v5660_v37 = vadd.f32 %v5659_v51, %v5658_v49  ;;  %v5661_v14 = vpop.f32.mrb[62].mxu0 }
 0x2d1   :  { %v5662_v19 = vpop.f32.mrb[63].mxu0 }
 0x2d2   :  { %v5663_v16 = vadd.f32 %v5662_v19, %v5661_v14 }
 0x2d6   :  { %v5594_v17 = vpop.f32.mrb[28].mxu1  ;;  %v5744_v58 = vpop.f32.mrb[64].mxu0 }
 0x2d7   :  { %v5595_v60 = vpop.f32.mrb[29].mxu1  ;;  %v5745_v10 = vpop.f32.mrb[65].mxu0 }
 0x2d8   :  { %v5596_v0 = vadd.f32 %v5595_v60, %v5594_v17  ;;  %v5597_v31 = vpop.f32.mrb[30].mxu1  ;;  %v5746_v38 = vadd.f32 %v5745_v10, %v5744_v58  ;;  %v5747_v52 = vpop.f32.mrb[66].mxu0 }
 0x2d9   :  { %v5598_v29 = vpop.f32.mrb[31].mxu1  ;;  %v5748_v4 = vpop.f32.mrb[67].mxu0 }
 0x2da   :  { %v7742_v46 = vadd.f32 %v5660_v37, %v5596_v0  ;;  %v5599_v32 = vadd.f32 %v5598_v29, %v5597_v31  ;;  %v5749_v50 = vadd.f32 %v5748_v4, %v5747_v52 }
 0x2dc   :  { %v7744_v43 = vadd.f32 %v5663_v16, %v5599_v32 }
 0x2de   :  { %v5680_v21 = vpop.f32.mrb[32].mxu1  ;;  %v5750_v28 = vpop.f32.mrb[68].mxu0 }
 0x2df   :  { %v5681_v35 = vpop.f32.mrb[33].mxu1  ;;  %v5751_v15 = vpop.f32.mrb[69].mxu0 }
 0x2e0   :  { %v5682_v9 = vadd.f32 %v5681_v35, %v5680_v21  ;;  %v5683_v25 = vpop.f32.mrb[34].mxu1  ;;  %v5752_v47 = vadd.f32 %v5751_v15, %v5750_v28  ;;  %v5753_v42 = vpop.f32.mrb[70].mxu0 }
 0x2e1   :  { %v5684_v44 = vpop.f32.mrb[35].mxu1  ;;  %v5754_v3 = vpop.f32.mrb[71].mxu0 }
 0x2e2   :  { %v4696_v11 = vadd.f32 %v5682_v9, %v7714_v24  ;;  %v5685_v61 = vadd.f32 %v5684_v44, %v5683_v25  ;;  %v5755_v26 = vadd.f32 %v5754_v3, %v5753_v42 }
 0x2e4   :  { %v4699_v12 = vadd.f32 %v5685_v61, %v7716_v13  ;;  %v7748_v1 = vadd.f32 %v5746_v38, %v4696_v11 }
 0x2e6   :  { %v5686_v53 = vpop.f32.mrb[36].mxu1  ;;  %v5756_v30 = vpop.f32.mrb[72].mxu0  ;;  %v7750_v49 = vadd.f32 %v5749_v50, %v4699_v12 }
 0x2e7   :  { %v5687_v51 = vpop.f32.mrb[37].mxu1  ;;  %v5757_v37 = vpop.f32.mrb[73].mxu0 }
 0x2e8   :  { %v5688_v14 = vadd.f32 %v5687_v51, %v5686_v53  ;;  %v5689_v19 = vpop.f32.mrb[38].mxu1  ;;  %v5758_v16 = vadd.f32 %v5757_v37, %v5756_v30  ;;  %v5759_v17 = vpop.f32.mrb[74].mxu0 }
 0x2e9   :  { %v5690_v58 = vpop.f32.mrb[39].mxu1  ;;  %v5760_v60 = vpop.f32.mrb[75].mxu0 }
 0x2ea   :  { %v4704_v24 = vadd.f32 %v5688_v14, %v7718_v55  ;;  %v5691_v10 = vadd.f32 %v5690_v58, %v5689_v19  ;;  %v5761_v0 = vadd.f32 %v5760_v60, %v5759_v17 }
 0x2ec   :  { %v4707_v13 = vadd.f32 %v5691_v10, %v7720_v5  ;;  %v7754_v31 = vadd.f32 %v5752_v47, %v4704_v24 }
 0x2ee   :  { %v5692_v38 = vpop.f32.mrb[40].mxu1  ;;  %v5762_v52 = vpop.f32.mrb[76].mxu0  ;;  %v7756_v29 = vadd.f32 %v5755_v26, %v4707_v13 }
 0x2ef   :  { %v5693_v4 = vpop.f32.mrb[41].mxu1  ;;  %v5763_v32 = vpop.f32.mrb[77].mxu0 }
 0x2f0   :  { %v5694_v50 = vadd.f32 %v5693_v4, %v5692_v38  ;;  %v5695_v21 = vpop.f32.mrb[42].mxu1  ;;  %v5764_v28 = vadd.f32 %v5763_v32, %v5762_v52  ;;  %v5765_v35 = vpop.f32.mrb[78].mxu0 }
 0x2f1   :  { %v5696_v15 = vpop.f32.mrb[43].mxu1  ;;  %v5766_v9 = vpop.f32.mrb[79].mxu0 }
 0x2f2   :  { %v4712_v55 = vadd.f32 %v5694_v50, %v7722_v27  ;;  %v5697_v25 = vadd.f32 %v5696_v15, %v5695_v21  ;;  %v5767_v42 = vadd.f32 %v5766_v9, %v5765_v35 }
 0x2f4   :  { %v4715_v5 = vadd.f32 %v5697_v25, %v7724_v63  ;;  %v7760_v47 = vadd.f32 %v5758_v16, %v4712_v55 }
 0x2f6   :  { %v5698_v44 = vpop.f32.mrb[44].mxu1  ;;  %v5768_v3 = vpop.f32.mrb[80].mxu0  ;;  %v7762_v11 = vadd.f32 %v5761_v0, %v4715_v5 }
 0x2f7   :  { %v5699_v61 = vpop.f32.mrb[45].mxu1  ;;  %v5769_v26 = vpop.f32.mrb[81].mxu0 }
 0x2f8   :  { %v5700_v12 = vadd.f32 %v5699_v61, %v5698_v44  ;;  %v5701_v53 = vpop.f32.mrb[46].mxu1  ;;  %v5770_v30 = vadd.f32 %v5769_v26, %v5768_v3  ;;  %v5771_v51 = vpop.f32.mrb[82].mxu0 }
 0x2f9   :  { %v5702_v37 = vpop.f32.mrb[47].mxu1  ;;  %v5772_v14 = vpop.f32.mrb[83].mxu0 }
 0x2fa   :  { %v4720_v27 = vadd.f32 %v5700_v12, %v7726_v59  ;;  %v5703_v19 = vadd.f32 %v5702_v37, %v5701_v53  ;;  %v5773_v17 = vadd.f32 %v5772_v14, %v5771_v51 }
 0x2fc   :  { %v4723_v63 = vadd.f32 %v5703_v19, %v7728_v36  ;;  %v7766_v16 = vadd.f32 %v5764_v28, %v4720_v27 }
 0x2fe   :  { %v5704_v58 = vpop.f32.mrb[48].mxu1  ;;  %v5774_v60 = vpop.f32.mrb[84].mxu0  ;;  %v7768_v24 = vadd.f32 %v5767_v42, %v4723_v63 }
 0x2ff   :  { %v5705_v10 = vpop.f32.mrb[49].mxu1  ;;  %v5775_v0 = vpop.f32.mrb[85].mxu0 }
 0x300   :  { %v5706_v13 = vadd.f32 %v5705_v10, %v5704_v58  ;;  %v5707_v38 = vpop.f32.mrb[50].mxu1  ;;  %v5776_v52 = vadd.f32 %v5775_v0, %v5774_v60  ;;  %v5777_v4 = vpop.f32.mrb[86].mxu0 }
 0x301   :  { %v5708_v32 = vpop.f32.mrb[51].mxu1  ;;  %v5778_v50 = vpop.f32.mrb[87].mxu0 }
 0x302   :  { %v4728_v59 = vadd.f32 %v5706_v13, %v7730_v39  ;;  %v5709_v21 = vadd.f32 %v5708_v32, %v5707_v38  ;;  %v5779_v35 = vadd.f32 %v5778_v50, %v5777_v4 }
 0x304   :  { %v4731_v36 = vadd.f32 %v5709_v21, %v7732_v40  ;;  %v7772_v28 = vadd.f32 %v5770_v30, %v4728_v59 }
 0x306   :  { %v5710_v15 = vpop.f32.mrb[52].mxu1  ;;  %v5780_v9 = vpop.f32.mrb[88].mxu0  ;;  %v7774_v55 = vadd.f32 %v5773_v17, %v4731_v36 }
 0x307   :  { %v5711_v25 = vpop.f32.mrb[53].mxu1  ;;  %v5781_v42 = vpop.f32.mrb[89].mxu0 }
 0x308   :  { %v5712_v5 = vadd.f32 %v5711_v25, %v5710_v15  ;;  %v5713_v44 = vpop.f32.mrb[54].mxu1  ;;  %v5782_v3 = vadd.f32 %v5781_v42, %v5780_v9  ;;  %v5783_v61 = vpop.f32.mrb[90].mxu0 }
 0x309   :  { %v5714_v26 = vpop.f32.mrb[55].mxu1  ;;  %v5784_v12 = vpop.f32.mrb[91].mxu0 }
 0x30a   :  { %v4736_v39 = vadd.f32 %v5712_v5, %v7734_v34  ;;  %v5715_v53 = vadd.f32 %v5714_v26, %v5713_v44  ;;  %v5785_v51 = vadd.f32 %v5784_v12, %v5783_v61 }
 0x30c   :  { %v4739_v40 = vadd.f32 %v5715_v53, %v7736_v22  ;;  %v7778_v30 = vadd.f32 %v5776_v52, %v4736_v39 }
 0x30e   :  { %v5786_v37 = vpop.f32.mrb[92].mxu0  ;;  %v7780_v14 = vadd.f32 %v5779_v35, %v4739_v40 }
 0x30f   :  { %v5716_v27 = vpop.f32.mrb[56].mxu1  ;;  %v5787_v19 = vpop.f32.mrb[93].mxu0 }
 0x310   :  { %v5717_v17 = vpop.f32.mrb[57].mxu1  ;;  %v5788_v63 = vadd.f32 %v5787_v19, %v5786_v37  ;;  %v5789_v58 = vpop.f32.mrb[94].mxu0 }
 0x311   :  { %v5718_v60 = vadd.f32 %v5717_v17, %v5716_v27  ;;  %v5719_v10 = vpop.f32.mrb[58].mxu1  ;;  %v5790_v0 = vpop.f32.mrb[95].mxu0 }
 0x312   :  { %v5720_v13 = vpop.f32.mrb[59].mxu1  ;;  %v5791_v38 = vadd.f32 %v5790_v0, %v5789_v58 }
 0x313   :  { %v4744_v34 = vadd.f32 %v5718_v60, %v7738_v7  ;;  %v5721_v4 = vadd.f32 %v5720_v13, %v5719_v10 }
 0x315   :  { %v4747_v22 = vadd.f32 %v5721_v4, %v7740_v54  ;;  %v7784_v52 = vadd.f32 %v5782_v3, %v4744_v34  ;;  %v7795_v54 = vld [vmem:[%s7920_s4] ss:$0 sm:$0xff] }
 0x317   :  { %v5722_v32 = vpop.f32.mrb[60].mxu1  ;;  %v7786_v50 = vadd.f32 %v5785_v51, %v4747_v22 }
 0x318   :  { %v5723_v59 = vpop.f32.mrb[61].mxu1 }
 0x319   :  { %v5724_v21 = vadd.f32 %v5723_v59, %v5722_v32  ;;  %v5725_v35 = vpop.f32.mrb[62].mxu1 }
 0x31a   :  { %v5726_v36 = vpop.f32.mrb[63].mxu1 }
 0x31b   :  { %v4752_v15 = vadd.f32 %v5724_v21, %v7742_v46  ;;  %v5727_v9 = vadd.f32 %v5726_v36, %v5725_v35  ;;  %v7803_v46 = vld [vmem:[%s7920_s4 + $0x1] ss:$0 sm:$0xff] }
 0x31d   :  { %v4755_v25 = vadd.f32 %v5727_v9, %v7744_v43  ;;  %v7790_v42 = vadd.f32 %v5788_v63, %v4752_v15 }
 0x31f   :  { %v5826_v7 = vpop.f32.mrb[64].mxu1  ;;  %v7797_v5 = vadd.f32 %v5791_v38, %v4755_v25 }
 0x320   :  { %v4898_v44 = vadd.f32 %v5826_v7, %v7754_v31  ;;  %v4889_v3 = vpop.f32.mrb[65].mxu1 }
 0x321   :  { %v4890_v43 = vadd.f32 %v4889_v3, %v7748_v1  ;;  %v5827_v61 = vpop.f32.mrb[66].mxu1 }
 0x322   :  { %v4959_v26 = vmul.f32 %v7795_v54, %v4898_v44  ;;  %v4901_v12 = vadd.f32 %v5827_v61, %v7756_v29  ;;  %v4892_v39 = vpop.f32.mrb[67].mxu1 }
 0x323   :  { %v4957_v53 = vmul.f32 %v7795_v54, %v4890_v43  ;;  %v4893_v51 = vadd.f32 %v4892_v39, %v7750_v49 }
 0x324   :  { %v4980_v31 = vadd.f32 %v7803_v46, %v4959_v26  ;;  %v4960_v40 = vmul.f32 %v7795_v54, %v4901_v12 }
 0x325   :  { %v4978_v37 = vadd.f32 %v7803_v46, %v4957_v53  ;;  %v4958_v27 = vmul.f32 %v7795_v54, %v4893_v51 }
 0x326   :  { %v4996_v19 = vmax.f32 %v4980_v31, 0.0  ;;  %v4981_v1 = vadd.f32 %v7803_v46, %v4960_v40 }
 0x327   :  { %v4994_v17 = vmax.f32 %v4978_v37, 0.0  ;;  %v4979_v63 = vadd.f32 %v7803_v46, %v4958_v27  ;;  %v5830_v29 = vpop.f32.mrb[68].mxu1 }
 0x328   :  { %v5028_v58 = vadd.f32 %v4996_v19, %v7001_v41  ;;  %v4997_v60 = vmax.f32 %v4981_v1, 0.0  ;;  %v4914_v49 = vadd.f32 %v5830_v29, %v7766_v16  ;;  %v4905_v10 = vpop.f32.mrb[69].mxu1 }
 0x329   :  { %v5026_v0 = vadd.f32 %v4994_v17, %v6970_v57  ;;  %v4995_v13 = vmax.f32 %v4979_v63, 0.0  ;;  %v4906_v38 = vadd.f32 %v4905_v10, %v7760_v47  ;;  %v5831_v34 = vpop.f32.mrb[70].mxu1 }
 0x32a   :  { %v5044_v4 = vmax.f32 %v5028_v58, 0.0  ;;  %v5029_v22 = vadd.f32 %v4997_v60, %v7006_v48  ;;  %v4963_v32 = vmul.f32 %v7795_v54, %v4914_v49  ;;  %v4917_v59 = vadd.f32 %v5831_v34, %v7768_v24  ;;  %v4908_v21 = vpop.f32.mrb[71].mxu1 }
 0x32b   :  { %v5042_v35 = vmax.f32 %v5026_v0, 0.0  ;;  %v5027_v41 = vadd.f32 %v4995_v13, %v6975_v62  ;;  %v4961_v16 = vmul.f32 %v7795_v54, %v4906_v38  ;;  %v4909_v36 = vadd.f32 %v4908_v21, %v7762_v11 }
 0x32c   :  { %5060 = vst [vmem:[%s7921_s5 + $0x10] sm:$0xff] %v5044_v4  ;;  %v5045_v57 = vmax.f32 %v5029_v22, 0.0  ;;  %v4984_v47 = vadd.f32 %v7803_v46, %v4963_v32  ;;  %v4964_v48 = vmul.f32 %v7795_v54, %v4917_v59 }
 0x32d   :  { %5058 = vst [vmem:[%s7921_s5] sm:$0xff] %v5042_v35  ;;  %v5043_v24 = vmax.f32 %v5027_v41, 0.0  ;;  %v4982_v62 = vadd.f32 %v7803_v46, %v4961_v16  ;;  %v4962_v15 = vmul.f32 %v7795_v54, %v4909_v36 }
 0x32e   :  { %5061 = vst [vmem:[%s7921_s5 + $0x18] sm:$0xff] %v5045_v57  ;;  %v5000_v11 = vmax.f32 %v4984_v47, 0.0  ;;  %v4985_v9 = vadd.f32 %v7803_v46, %v4964_v48 }
 0x32f   :  { %5059 = vst [vmem:[%s7921_s5 + $0x8] sm:$0xff] %v5043_v24  ;;  %v4998_v25 = vmax.f32 %v4982_v62, 0.0  ;;  %v4983_v7 = vadd.f32 %v7803_v46, %v4962_v15  ;;  %v5834_v44 = vpop.f32.mrb[72].mxu1 }
 0x330   :  { %v5032_v3 = vadd.f32 %v5000_v11, %v7150_v8  ;;  %v5001_v43 = vmax.f32 %v4985_v9, 0.0  ;;  %v4930_v61 = vadd.f32 %v5834_v44, %v7778_v30  ;;  %v4921_v26 = vpop.f32.mrb[73].mxu1  ;;  %v7944_v9 = vld [vmem:[#allocation6_spill] sm:$0xff]  ;;  %v7945_v44 = vld [vmem:[#allocation8_spill] sm:$0xff] }
 0x331   :  { %v5030_v12 = vadd.f32 %v4998_v25, %v7054_v6  ;;  %v4999_v39 = vmax.f32 %v4983_v7, 0.0  ;;  %v4922_v53 = vadd.f32 %v4921_v26, %v7772_v28  ;;  %v5835_v51 = vpop.f32.mrb[74].mxu1 }
 0x332   :  { %v5048_v31 = vmax.f32 %v5032_v3, 0.0  ;;  %v5033_v40 = vadd.f32 %v5001_v43, %v7163_v23  ;;  %v4967_v37 = vmul.f32 %v7795_v54, %v4930_v61  ;;  %v4933_v27 = vadd.f32 %v5835_v51, %v7780_v14  ;;  %v4924_v19 = vpop.f32.mrb[75].mxu1  ;;  %v7946_v61 = vld [vmem:[#allocation7_spill] sm:$0xff] }
 0x333   :  { %v5046_v1 = vmax.f32 %v5030_v12, 0.0  ;;  %v5031_v8 = vadd.f32 %v4999_v39, %v7067_v18  ;;  %v4965_v30 = vmul.f32 %v7795_v54, %v4922_v53  ;;  %v4925_v17 = vadd.f32 %v4924_v19, %v7774_v55 }
 0x334   :  { %5064 = vst [vmem:[%s7921_s5 + $0x30] sm:$0xff] %v5048_v31  ;;  %v5049_v6 = vmax.f32 %v5033_v40, 0.0  ;;  %v4988_v28 = vadd.f32 %v7803_v46, %v4967_v37  ;;  %v4968_v23 = vmul.f32 %v7795_v54, %v4933_v27 }
 0x335   :  { %5062 = vst [vmem:[%s7921_s5 + $0x20] sm:$0xff] %v5046_v1  ;;  %v5047_v14 = vmax.f32 %v5031_v8, 0.0  ;;  %v4986_v18 = vadd.f32 %v7803_v46, %v4965_v30  ;;  %v4966_v63 = vmul.f32 %v7795_v54, %v4925_v17 }
 0x336   :  { %5065 = vst [vmem:[%s7921_s5 + $0x38] sm:$0xff] %v5049_v6  ;;  %v5004_v55 = vmax.f32 %v4988_v28, 0.0  ;;  %v4989_v29 = vadd.f32 %v7803_v46, %v4968_v23 }
 0x337   :  { %5063 = vst [vmem:[%s7921_s5 + $0x28] sm:$0xff] %v5047_v14  ;;  %v5002_v58 = vmax.f32 %v4986_v18, 0.0  ;;  %v4987_v60 = vadd.f32 %v7803_v46, %v4966_v63  ;;  %v5838_v49 = vpop.f32.mrb[76].mxu1 }
 0x338   :  { %v5036_v10 = vadd.f32 %v5004_v55, %v7269_v56  ;;  %v5005_v0 = vmax.f32 %v4989_v29, 0.0  ;;  %v4946_v13 = vadd.f32 %v5838_v49, %v7790_v42  ;;  %v4937_v38 = vpop.f32.mrb[77].mxu1 }
 0x339   :  { %v5034_v34 = vadd.f32 %v5002_v58, %v7224_v45  ;;  %v5003_v4 = vmax.f32 %v4987_v60, 0.0  ;;  %v4938_v22 = vadd.f32 %v4937_v38, %v7784_v52  ;;  %v5839_v32 = vpop.f32.mrb[78].mxu1 }
 0x33a   :  { %v5052_v59 = vmax.f32 %v5036_v10, 0.0  ;;  %v5037_v21 = vadd.f32 %v5005_v0, %v7277_v2  ;;  %v4971_v35 = vmul.f32 %v7795_v54, %v4946_v13  ;;  %v4949_v41 = vadd.f32 %v5839_v32, %v7797_v5  ;;  %v4940_v16 = vpop.f32.mrb[79].mxu1 }
 0x33b   :  { %v5050_v36 = vmax.f32 %v5034_v34, 0.0  ;;  %v5035_v56 = vadd.f32 %v5003_v4, %v7229_v33  ;;  %v4969_v42 = vmul.f32 %v7795_v54, %v4938_v22  ;;  %v4941_v57 = vadd.f32 %v4940_v16, %v7786_v50 }
 0x33c   :  { %5068 = vst [vmem:[%s7921_s5 + $0x50] sm:$0xff] %v5052_v59  ;;  %v5053_v45 = vmax.f32 %v5037_v21, 0.0  ;;  %v4992_v52 = vadd.f32 %v7803_v46, %v4971_v35  ;;  %v4972_v2 = vmul.f32 %v7795_v54, %v4949_v41 }
 0x33d   :  { %5066 = vst [vmem:[%s7921_s5 + $0x40] sm:$0xff] %v5050_v36  ;;  %v5051_v5 = vmax.f32 %v5035_v56, 0.0  ;;  %v4990_v33 = vadd.f32 %v7803_v46, %v4969_v42  ;;  %v4970_v47 = vmul.f32 %v7795_v54, %v4941_v57 }
 0x33e   :  { %5069 = vst [vmem:[%s7921_s5 + $0x58] sm:$0xff] %v5053_v45  ;;  %v5008_v50 = vmax.f32 %v4992_v52, 0.0  ;;  %v4993_v48 = vadd.f32 %v7803_v46, %v4972_v2 }
 0x33f   :  { %5067 = vst [vmem:[%s7921_s5 + $0x48] sm:$0xff] %v5051_v5  ;;  %v5006_v24 = vmax.f32 %v4990_v33, 0.0  ;;  %v4991_v62 = vadd.f32 %v7803_v46, %v4970_v47 }
 0x340   :  { %v5040_v15 = vadd.f32 %v5008_v50, %v7433_v20  ;;  %v5009_v11 = vmax.f32 %v4993_v48, 0.0 }
 0x341   :  { %v5038_v25 = vadd.f32 %v5006_v24, %v7944_v9  ;;  %v5007_v54 = vmax.f32 %v4991_v62, 0.0 }
 0x342   :  { %v5056_v7 = vmax.f32 %v5040_v15, 0.0  ;;  %v5041_v3 = vadd.f32 %v5009_v11, %v7945_v44 }
 0x343   :  { %v5054_v43 = vmax.f32 %v5038_v25, 0.0  ;;  %v5039_v26 = vadd.f32 %v5007_v54, %v7946_v61 }
 0x344   :  { %5072 = vst [vmem:[%s7921_s5 + $0x70] sm:$0xff] %v5056_v7  ;;  %v5057_v12 = vmax.f32 %v5041_v3, 0.0 }
 0x345   :  { %5070 = vst [vmem:[%s7921_s5 + $0x60] sm:$0xff] %v5054_v43  ;;  %v5055_v20 = vmax.f32 %v5039_v26, 0.0 }
 0x346   :  { %5073 = vst [vmem:[%s7921_s5 + $0x78] sm:$0xff] %v5057_v12 }
 0x347   :  { %5071 = vst [vmem:[%s7921_s5 + $0x68] sm:$0xff] %v5055_v20 }

</bundles_post_ra>
